<compile_context>
chip_gen: v6e
topology: v6e:2x2x1
jax: 0.10.0
libtpu: 0.0.40
codegen_flags: <defaults>
</compile_context>

<pallas_src>
import math

import jax
import jax.numpy as jnp
from jax import lax
from jax.experimental import pallas as pl
from jax.experimental.pallas import tpu as pltpu

_MASK_VALUE = -1e30  # large finite negative: exp underflows to exactly 0, no -inf NaN traps


def _head_kernel(x_ref, wq_ref, wk_ref, wv_ref, o_ref):
    # x_ref: (T, C); w*_ref: (C, H) resident (scale pre-folded into wq); o_ref: (T, H)
    x = x_ref[...]
    dt = x.dtype

    # Fused Q/K/V projection: one pass over x, f32 accumulation on the MXU.
    q = jnp.dot(x, wq_ref[...], preferred_element_type=jnp.float32)   # (T, H), already scaled
    k = jnp.dot(x, wk_ref[...], preferred_element_type=jnp.float32)   # (T, H)
    v = jnp.dot(x, wv_ref[...], preferred_element_type=jnp.float32)   # (T, H)

    # Scores: contract the head axes directly (no explicit K transpose before the MXU).
    s = lax.dot_general(q.astype(dt), k.astype(dt),
                        dimension_numbers=(((1,), (1,)), ((), ())),
                        preferred_element_type=jnp.float32)            # (T, T)

    # Causal mask (tril).
    row = lax.broadcasted_iota(jnp.int32, s.shape, 0)
    col = lax.broadcasted_iota(jnp.int32, s.shape, 1)
    s = jnp.where(col <= row, s, _MASK_VALUE)

    # Single-pass softmax (T <= block_size, so no online-softmax machinery needed).
    m = jnp.max(s, axis=-1, keepdims=True)
    p = jnp.exp(s - m)
    l = jnp.sum(p, axis=-1, keepdims=True)
    # TODO(synk): dropout on p would go here when training; identity in eval mode.

    pv = jnp.dot(p.astype(dt), v.astype(dt), preferred_element_type=jnp.float32)  # (T, H)
    # Normalize after the PV matmul: (T, H) divide instead of a (T, T) one.
    o_ref[...] = (pv * pl.reciprocal(l, approx=False)).astype(o_ref.dtype)


def head_forward(x, w_key, w_query, w_value):
    """x: (B, T, C). w_*: (H, C) PyTorch-style Linear weights (no bias). Returns (B, T, H)."""
    B, T, C = x.shape
    H = w_key.shape[0]
    dtype = x.dtype
    scale = C ** (-0.5)  # intentionally n_embd**-0.5 (matches the PyTorch module)

    # Host-side weight prep (runs once): transpose to (C, H), fold the score scale into Wq.
    wq_t = (jnp.swapaxes(w_query, 0, 1) * scale).astype(dtype)
    wk_t = jnp.swapaxes(w_key, 0, 1).astype(dtype)
    wv_t = jnp.swapaxes(w_value, 0, 1).astype(dtype)

    return pl.pallas_call(
        _head_kernel,
        out_shape=jax.ShapeDtypeStruct((B, T, H), dtype),
        grid_spec=pltpu.PrefetchScalarGridSpec(
            num_scalar_prefetch=0,
            grid=(B,),
            in_specs=[
                pl.BlockSpec((None, T, C), lambda b: (b, 0, 0)),   # x: one batch element
                pl.BlockSpec((C, H), lambda b: (0, 0)),            # Wq (resident)
                pl.BlockSpec((C, H), lambda b: (0, 0)),            # Wk (resident)
                pl.BlockSpec((C, H), lambda b: (0, 0)),            # Wv (resident)
            ],
            out_specs=pl.BlockSpec((None, T, H), lambda b: (b, 0, 0)),
        ),
        compiler_params=pltpu.CompilerParams(
            dimension_semantics=("parallel",),          # batch axis shards across TCs (v7x)
            vmem_limit_bytes=32 * 1024 * 1024,          # safe on v5e/v6e (128 MiB) and v7x (64 MiB)
        ),
    )(x, wq_t, wk_t, wv_t)


def head_forward_ref(x, w_key, w_query, w_value):
    """Pure-JAX reference matching the PyTorch forward (eval mode)."""
    B, T, C = x.shape
    k = x @ w_key.T
    q = x @ w_query.T
    v = x @ w_value.T
    wei = (q @ jnp.swapaxes(k, -2, -1)) * C ** (-0.5)
    mask = jnp.tril(jnp.ones((T, T), dtype=bool))
    wei = jnp.where(mask[None, :, :], wei, -jnp.inf)
    wei = jax.nn.softmax(wei, axis=-1)
    return wei @ v


if __name__ == "__main__":
    # Shapes implied by the module: T <= block_size (256), C = n_embd (384), H = head_size.
    B, T, C, H = 2, 256, 384, 64

    key = jax.random.PRNGKey(0)
    kx, kk, kq, kv = jax.random.split(key, 4)

    x = jax.random.normal(kx, (B, T, C), dtype=jnp.float32)
    bound = 1.0 / math.sqrt(C)
    w_key = jax.random.uniform(kk, (H, C), jnp.float32, -bound, bound)
    w_query = jax.random.uniform(kq, (H, C), jnp.float32, -bound, bound)
    w_value = jax.random.uniform(kv, (H, C), jnp.float32, -bound, bound)

    out = head_forward(x, w_key, w_query, w_value)
    out = jax.block_until_ready(out)

    ref = head_forward_ref(x, w_key, w_query, w_value)
    assert out.shape == (B, T, H)
    assert jnp.allclose(out, ref, atol=2e-4, rtol=2e-4), "mismatch vs reference"

    print("KERNEL_OK")
</pallas_src>

<mosaic_0001>
module attributes {stable_mosaic.version = 11 : i64} {
  func.func @_head_kernel(%arg0: i32, %arg1: memref<1x256x384xf32, #tpu.memory_space<vmem>>, %arg2: memref<384x64xf32, #tpu.memory_space<vmem>>, %arg3: memref<384x64xf32, #tpu.memory_space<vmem>>, %arg4: memref<384x64xf32, #tpu.memory_space<vmem>>, %arg5: memref<1x256x64xf32, #tpu.memory_space<vmem>>) attributes {dimension_semantics = [#tpu.dimension_semantics<parallel>], iteration_bounds = array<i64: 2>, scalar_prefetch = 0 : i64, scratch_operands = 0 : i64, tpu.core_type = #tpu.core_type<tc>, window_params = [{transform_indices = @transform_0, window_bounds = array<i64: 1, 256, 384>}, {pipeline_mode = #tpu.pipeline_mode<synchronous>, transform_indices = @transform_1, window_bounds = array<i64: 384, 64>}, {pipeline_mode = #tpu.pipeline_mode<synchronous>, transform_indices = @transform_2, window_bounds = array<i64: 384, 64>}, {pipeline_mode = #tpu.pipeline_mode<synchronous>, transform_indices = @transform_3, window_bounds = array<i64: 384, 64>}, {transform_indices = @transform_4, window_bounds = array<i64: 1, 256, 64>}]} {
    %c0 = arith.constant 0 : index
    %c0_0 = arith.constant 0 : index
    %c0_1 = arith.constant 0 : index
    %0 = vector.load %arg1[%c0, %c0_0, %c0_1] : memref<1x256x384xf32, #tpu.memory_space<vmem>>, vector<1x256x384xf32>
    %1 = vector.shape_cast %0 : vector<1x256x384xf32> to vector<256x384xf32>
    %c0_2 = arith.constant 0 : index
    %c0_3 = arith.constant 0 : index
    %2 = vector.load %arg2[%c0_2, %c0_3] : memref<384x64xf32, #tpu.memory_space<vmem>>, vector<384x64xf32>
    %cst = arith.constant dense<0.000000e+00> : vector<256x64xf32>
    %3 = tpu.matmul %1, %2, %cst {dimension_numbers = #tpu.dot_dimension_numbers<[1], [0], [0], [1], [0, 0, 1, 1], [], []>} : vector<256x384xf32>, vector<384x64xf32>, vector<256x64xf32> -> vector<256x64xf32>
    %c0_4 = arith.constant 0 : index
    %c0_5 = arith.constant 0 : index
    %4 = vector.load %arg3[%c0_4, %c0_5] : memref<384x64xf32, #tpu.memory_space<vmem>>, vector<384x64xf32>
    %cst_6 = arith.constant dense<0.000000e+00> : vector<256x64xf32>
    %5 = tpu.matmul %1, %4, %cst_6 {dimension_numbers = #tpu.dot_dimension_numbers<[1], [0], [0], [1], [0, 0, 1, 1], [], []>} : vector<256x384xf32>, vector<384x64xf32>, vector<256x64xf32> -> vector<256x64xf32>
    %c0_7 = arith.constant 0 : index
    %c0_8 = arith.constant 0 : index
    %6 = vector.load %arg4[%c0_7, %c0_8] : memref<384x64xf32, #tpu.memory_space<vmem>>, vector<384x64xf32>
    %cst_9 = arith.constant dense<0.000000e+00> : vector<256x64xf32>
    %7 = tpu.matmul %1, %6, %cst_9 {dimension_numbers = #tpu.dot_dimension_numbers<[1], [0], [0], [1], [0, 0, 1, 1], [], []>} : vector<256x384xf32>, vector<384x64xf32>, vector<256x64xf32> -> vector<256x64xf32>
    %cst_10 = arith.constant dense<0.000000e+00> : vector<256x256xf32>
    %8 = tpu.matmul %3, %5, %cst_10 {dimension_numbers = #tpu.dot_dimension_numbers<[1], [1], [0], [0], [0, 0, 1, 0], [], []>} : vector<256x64xf32>, vector<256x64xf32>, vector<256x256xf32> -> vector<256x256xf32>
    %9 = tpu.iota {dimensions = array<i32: 0>} : vector<256x256xi32>
    %10 = tpu.iota {dimensions = array<i32: 1>} : vector<256x256xi32>
    %11 = arith.cmpi sle, %10, %9 : vector<256x256xi32>
    %cst_11 = arith.constant -1.000000e+30 : f32
    %12 = vector.broadcast %cst_11 : f32 to vector<256x256xf32>
    %13 = arith.select %11, %8, %12 : vector<256x256xi1>, vector<256x256xf32>
    %cst_12 = arith.constant dense<0xFF800000> : vector<256xf32>
    %14 = vector.multi_reduction <maximumf>, %13, %cst_12 [1] : vector<256x256xf32> to vector<256xf32>
    %15 = vector.shape_cast %14 : vector<256xf32> to vector<256x1xf32>
    %16 = vector.broadcast %15 : vector<256x1xf32> to vector<256x256xf32>
    %17 = arith.subf %13, %16 : vector<256x256xf32>
    %18 = math.exp %17 : vector<256x256xf32>
    %cst_13 = arith.constant dense<0.000000e+00> : vector<256xf32>
    %19 = vector.multi_reduction <add>, %18, %cst_13 [1] : vector<256x256xf32> to vector<256xf32>
    %20 = vector.shape_cast %19 : vector<256xf32> to vector<256x1xf32>
    %cst_14 = arith.constant dense<0.000000e+00> : vector<256x64xf32>
    %21 = tpu.matmul %18, %7, %cst_14 {dimension_numbers = #tpu.dot_dimension_numbers<[1], [0], [0], [1], [0, 0, 1, 1], [], []>} : vector<256x256xf32>, vector<256x64xf32>, vector<256x64xf32> -> vector<256x64xf32>
    %22 = tpu.reciprocal %20 : vector<256x1xf32> -> vector<256x1xf32>
    %23 = vector.broadcast %22 : vector<256x1xf32> to vector<256x64xf32>
    %24 = arith.mulf %21, %23 : vector<256x64xf32>
    %c0_15 = arith.constant 0 : index
    %c0_16 = arith.constant 0 : index
    %c0_17 = arith.constant 0 : index
    %25 = vector.load %arg5[%c0_15, %c0_16, %c0_17] : memref<1x256x64xf32, #tpu.memory_space<vmem>>, vector<1x256x64xf32>
    %26 = vector.shape_cast %25 : vector<1x256x64xf32> to vector<256x64xf32>
    %27 = vector.shape_cast %24 : vector<256x64xf32> to vector<1x256x64xf32>
    tpu.vector_store %arg5[%c0_15, %c0_16, %c0_17], %27 {strides = array<i32>} : memref<1x256x64xf32, #tpu.memory_space<vmem>>, vector<1x256x64xf32>,
    return
  }
  func.func @transform_0(%arg0: i32) -> (i32, i32, i32) {
    %c0_i32 = arith.constant 0 : i32
    %c0_i32_0 = arith.constant 0 : i32
    %c0_i32_1 = arith.constant 0 : i32
    return %arg0, %c0_i32, %c0_i32_0 : i32, i32, i32
  }
  func.func @transform_1(%arg0: i32) -> (i32, i32) {
    %c0_i32 = arith.constant 0 : i32
    %c0_i32_0 = arith.constant 0 : i32
    %c0_i32_1 = arith.constant 0 : i32
    return %c0_i32, %c0_i32_0 : i32, i32
  }
  func.func @transform_2(%arg0: i32) -> (i32, i32) {
    %c0_i32 = arith.constant 0 : i32
    %c0_i32_0 = arith.constant 0 : i32
    %c0_i32_1 = arith.constant 0 : i32
    return %c0_i32, %c0_i32_0 : i32, i32
  }
  func.func @transform_3(%arg0: i32) -> (i32, i32) {
    %c0_i32 = arith.constant 0 : i32
    %c0_i32_0 = arith.constant 0 : i32
    %c0_i32_1 = arith.constant 0 : i32
    return %c0_i32, %c0_i32_0 : i32, i32
  }
  func.func @transform_4(%arg0: i32) -> (i32, i32, i32) {
    %c0_i32 = arith.constant 0 : i32
    %c0_i32_0 = arith.constant 0 : i32
    %c0_i32_1 = arith.constant 0 : i32
    return %arg0, %c0_i32, %c0_i32_0 : i32, i32, i32
  }
}

</mosaic_0001>

<bundles_post_ra>
// kernel: tpu_custom_call.1
= control target key start
LH: loop header
LB: loop body
LE: loop exit
PB: predicated region body
PF: predicated region fallthrough
CT: control target
= control target key end

     0   :  { %s4062_s15 = smov 0   ;;  %s6308_s0 = inlined_call_operand.vmem [shape: f32[2,256,384], index: 0, kind: input, shape index: {}]   ;;  %s6309_s1 = inlined_call_operand.vmem [shape: f32[384,64], index: 1, kind: input, shape index: {}]   ;;  %s6310_s2 = inlined_call_operand.vmem [shape: f32[384,64], index: 2, kind: input, shape index: {}]   ;;  %s6311_s3 = inlined_call_operand.vmem [shape: f32[384,64], index: 3, kind: input, shape index: {}]   ;;  %s6312_s4 = inlined_call_operand.vmem [shape: f32[2,256,64], index: 4, kind: output, shape index: {}]  }
   0x1 LB: > { %s3162_s16 = sadd.s32 4294967295, %s4034_s15   ;;  %p3166_p0 = scmp.ge.s32.totalorder %s4034_s15, 1  ;;  %s4034_s15 = sphi %s4062_s15, %s14_s15  }
   0x2   : > { %p162_p1 = scmp.lt.s32.totalorder %s4034_s15, 3 }
   0x4   : > { %p163_p2 = pnand %p3166_p0, %p162_p1 }
   0x6   : > { %166 = sbr.rel (%p163_p2) target bundleno = 1214 (0x4be), region = 36 }
   0xb   : > { %v309_v0 = vld [vmem:[%s6309_s1 + $0x78] sm:$0xff]  ;;  %v6323_v1 = vmov 0.0   ;;  %v308_v2 = vld [vmem:[%s6309_s1 + $0x70] sm:$0xff]  ;;  %v307_v3 = vld [vmem:[%s6309_s1 + $0x68] sm:$0xff]  ;;  %p188_p3 = scmp.lt.s32.totalorder %s3162_s16, 1  ;;  %vm1788_vm0 = vcmask 523264  }
   0xc   : > { %342 = vmatprep.subr.mxu0 %v6323_v1  ;;  %v306_v4 = vld [vmem:[%s6309_s1 + $0x60] sm:$0xff]  ;;  %v341_v5 = vld [vmem:[%s6309_s1 + $0x178] sm:$0xff]  ;;  %v340_v6 = vld [vmem:[%s6309_s1 + $0x170] sm:$0xff] }
   0xd   : > { %343 = vmatpush1.msra.mxu0 %v309_v0  ;;  %3477 = vmatprep.subr.mxu1 %v341_v5  ;;  %v305_v7 = vld [vmem:[%s6309_s1 + $0x58] sm:$0xff]  ;;  %v339_v8 = vld [vmem:[%s6309_s1 + $0x168] sm:$0xff]  ;;  %v304_v9 = vld [vmem:[%s6309_s1 + $0x50] sm:$0xff]  ;;  %s6480_s16 = smov (!%p188_p3, %s3162_s16), 1 }
   0xe   : > { %344 = vmatprep.subr.mxu0 %v6323_v1  ;;  %3478 = vmatpush3.msra.mxu1 %v341_v5  ;;  %v338_v10 = vld [vmem:[%s6309_s1 + $0x160] sm:$0xff]  ;;  %v303_v11 = vld [vmem:[%s6309_s1 + $0x48] sm:$0xff]  ;;  %v337_v12 = vld [vmem:[%s6309_s1 + $0x158] sm:$0xff]  ;;  %s3781_s25 = smul.u32 768, %s6480_s16 }
   0xf   : > { %345 = vmatpush1.msra.mxu0 %v308_v2  ;;  %3479 = vmatprep.subr.mxu1 %v340_v6  ;;  %v302_v13 = vld [vmem:[%s6309_s1 + $0x40] sm:$0xff]  ;;  %v336_v14 = vld [vmem:[%s6309_s1 + $0x150] sm:$0xff]  ;;  %v301_v15 = vld [vmem:[%s6309_s1 + $0x38] sm:$0xff] }
  0x10   : > { %346 = vmatprep.subr.mxu0 %v6323_v1  ;;  %3480 = vmatpush3.msra.mxu1 %v340_v6  ;;  %v335_v16 = vld [vmem:[%s6309_s1 + $0x148] sm:$0xff]  ;;  %v300_v17 = vld [vmem:[%s6309_s1 + $0x30] sm:$0xff]  ;;  %v334_v18 = vld [vmem:[%s6309_s1 + $0x140] sm:$0xff]  ;;  %s4192_s10 = scalar_lea.vmem %s6308_s0, %s3781_s25 }
  0x11   : > { %347 = vmatpush1.msra.mxu0 %v307_v3  ;;  %3481 = vmatprep.subr.mxu1 %v339_v8  ;;  %v299_v19 = vld [vmem:[%s6309_s1 + $0x28] sm:$0xff]  ;;  %v333_v20 = vld [vmem:[%s6309_s1 + $0x138] sm:$0xff]  ;;  %v298_v21 = vld [vmem:[%s6309_s1 + $0x20] sm:$0xff] }
  0x12   : > { %348 = vmatprep.subr.mxu0 %v6323_v1  ;;  %3482 = vmatpush3.msra.mxu1 %v339_v8  ;;  %v332_v22 = vld [vmem:[%s6309_s1 + $0x130] sm:$0xff]  ;;  %v297_v23 = vld [vmem:[%s6309_s1 + $0x18] sm:$0xff]  ;;  %v331_v24 = vld [vmem:[%s6309_s1 + $0x128] sm:$0xff] }
  0x13   : > { %349 = vmatpush1.msra.mxu0 %v306_v4  ;;  %3483 = vmatprep.subr.mxu1 %v338_v10  ;;  %v296_v25 = vld [vmem:[%s6309_s1 + $0x10] sm:$0xff]  ;;  %v330_v26 = vld [vmem:[%s6309_s1 + $0x120] sm:$0xff]  ;;  %v295_v27 = vld [vmem:[%s6309_s1 + $0x8] sm:$0xff] }
  0x14   : > { %350 = vmatprep.subr.mxu0 %v6323_v1  ;;  %3484 = vmatpush3.msra.mxu1 %v338_v10  ;;  %v329_v28 = vld [vmem:[%s6309_s1 + $0x118] sm:$0xff]  ;;  %v294_v29 = vld [vmem:[%s6309_s1] sm:$0xff]  ;;  %v328_v30 = vld [vmem:[%s6309_s1 + $0x110] sm:$0xff] }
  0x15   : > { %351 = vmatpush1.msra.mxu0 %v305_v7  ;;  %3485 = vmatprep.subr.mxu1 %v337_v12  ;;  %v325_v31 = vld [vmem:[%s6309_s1 + $0xf8] sm:$0xff]  ;;  %v327_v32 = vld [vmem:[%s6309_s1 + $0x108] sm:$0xff]  ;;  %v324_v33 = vld [vmem:[%s6309_s1 + $0xf0] sm:$0xff] }
  0x16   : > { %352 = vmatprep.subr.mxu0 %v6323_v1  ;;  %3486 = vmatpush3.msra.mxu1 %v337_v12  ;;  %v326_v34 = vld [vmem:[%s6309_s1 + $0x100] sm:$0xff]  ;;  %v323_v35 = vld [vmem:[%s6309_s1 + $0xe8] sm:$0xff]  ;;  %v4206_v36 = vld [vmem:[%s4192_s10 + $0x10] sm:$0xff] }
  0x17   : > { %353 = vmatpush1.msra.mxu0 %v304_v9  ;;  %3487 = vmatprep.subr.mxu1 %v336_v14  ;;  %v4209_v37 = vld [vmem:[%s4192_s10 + $0x28] sm:$0xff]  ;;  %v322_v38 = vld [vmem:[%s6309_s1 + $0xe0] sm:$0xff]  ;;  %v321_v40 = vld [vmem:[%s6309_s1 + $0xd8] sm:$0xff] }
  0x18   : > { %354 = vmatprep.subr.mxu0 %v6323_v1  ;;  %3488 = vmatpush3.msra.mxu1 %v336_v14  ;;  %v4217_v39 = vld [vmem:[%s4192_s10 + $0x8] sm:$0xff]  ;;  %v807_v41 = vld [vmem:[%s6310_s2 + $0x78] sm:$0xff]  ;;  %v320_v42 = vld [vmem:[%s6309_s1 + $0xd0] sm:$0xff] }
  0x19   : > { %355 = vmatpush1.msra.mxu0 %v303_v11  ;;  %3489 = vmatprep.subr.mxu1 %v335_v16  ;;  %v4234_v43 = vld [vmem:[%s4192_s10 + $0x40] sm:$0xff]  ;;  %v806_v44 = vld [vmem:[%s6310_s2 + $0x70] sm:$0xff]  ;;  %v319_v45 = vld [vmem:[%s6309_s1 + $0xc8] sm:$0xff] }
  0x1a   : > { %356 = vmatprep.subr.mxu0 %v6323_v1  ;;  %3490 = vmatpush3.msra.mxu1 %v335_v16  ;;  %v4245_v46 = vld [vmem:[%s4192_s10 + $0x58] sm:$0xff]  ;;  %v318_v47 = vld [vmem:[%s6309_s1 + $0xc0] sm:$0xff]  ;;  %v805_v48 = vld [vmem:[%s6310_s2 + $0x68] sm:$0xff] }
  0x1b   : > { %357 = vmatpush1.msra.mxu0 %v302_v13  ;;  %3491 = vmatprep.subr.mxu1 %v334_v18  ;;  %v317_v49 = vld [vmem:[%s6309_s1 + $0xb8] sm:$0xff]  ;;  %v4262_v50 = vld [vmem:[%s4192_s10 + $0x70] sm:$0xff]  ;;  %v804_v51 = vld [vmem:[%s6310_s2 + $0x60] sm:$0xff] }
  0x1c   : > { %358 = vmatprep.subr.mxu0 %v6323_v1  ;;  %3492 = vmatpush3.msra.mxu1 %v334_v18  ;;  %v316_v52 = vld [vmem:[%s6309_s1 + $0xb0] sm:$0xff]  ;;  %v4273_v53 = vld [vmem:[%s4192_s10 + $0x88] sm:$0xff]  ;;  %v803_v55 = vld [vmem:[%s6310_s2 + $0x58] sm:$0xff] }
  0x1d   : > { %359 = vmatpush1.msra.mxu0 %v301_v15  ;;  %3493 = vmatprep.subr.mxu1 %v333_v20  ;;  %v315_v54 = vld [vmem:[%s6309_s1 + $0xa8] sm:$0xff]  ;;  %v314_v56 = vld [vmem:[%s6309_s1 + $0xa0] sm:$0xff]  ;;  %v802_v58 = vld [vmem:[%s6310_s2 + $0x50] sm:$0xff] }
  0x1e   : > { %360 = vmatprep.subr.mxu0 %v6323_v1  ;;  %3494 = vmatpush3.msra.mxu1 %v333_v20  ;;  %v4290_v57 = vld [vmem:[%s4192_s10 + $0xa0] sm:$0xff]  ;;  %v313_v59 = vld [vmem:[%s6309_s1 + $0x98] sm:$0xff]  ;;  %v312_v61 = vld [vmem:[%s6309_s1 + $0x90] sm:$0xff] }
  0x1f   : > { %361 = vmatpush1.msra.mxu0 %v300_v17  ;;  %3495 = vmatprep.subr.mxu1 %v332_v22  ;;  %v4301_v60 = vld [vmem:[%s4192_s10 + $0xb8] sm:$0xff]  ;;  %v801_v62 = vld [vmem:[%s6310_s2 + $0x48] sm:$0xff]  ;;  %v4318_v0 = vld [vmem:[%s4192_s10 + $0xd0] sm:$0xff] }
  0x20   : > { %362 = vmatprep.subr.mxu0 %v6323_v1  ;;  %3496 = vmatpush3.msra.mxu1 %v332_v22  ;;  %v311_v63 = vld [vmem:[%s6309_s1 + $0x88] sm:$0xff]  ;;  %v800_v2 = vld [vmem:[%s6310_s2 + $0x40] sm:$0xff]  ;;  %v839_v6 = vld [vmem:[%s6310_s2 + $0x178] sm:$0xff] }
  0x21   : > { %363 = vmatpush1.msra.mxu0 %v299_v19  ;;  %3497 = vmatprep.subr.mxu1 %v331_v24  ;;  %v310_v3 = vld [vmem:[%s6309_s1 + $0x80] sm:$0xff]  ;;  %v4329_v4 = vld [vmem:[%s4192_s10 + $0xe8] sm:$0xff]  ;;  %v838_v8 = vld [vmem:[%s6310_s2 + $0x170] sm:$0xff] }
  0x22   : > { %364 = vmatprep.subr.mxu0 %v6323_v1  ;;  %3498 = vmatpush3.msra.mxu1 %v331_v24  ;;  %v4332_v5 = vld [vmem:[%s4192_s10] sm:$0xff]  ;;  %v799_v9 = vld [vmem:[%s6310_s2 + $0x38] sm:$0xff]  ;;  %v837_v12 = vld [vmem:[%s6310_s2 + $0x168] sm:$0xff] }
  0x23   : > { %365 = vmatpush1.msra.mxu0 %v298_v21  ;;  %3499 = vmatprep.subr.mxu1 %v330_v26  ;;  %v4340_v7 = vld [vmem:[%s4192_s10 + $0x20] sm:$0xff]  ;;  %v4352_v10 = vld [vmem:[%s4192_s10 + $0x18] sm:$0xff]  ;;  %v798_v14 = vld [vmem:[%s6310_s2 + $0x30] sm:$0xff] }
  0x24   : > { %366 = vmatprep.subr.mxu0 %v6323_v1  ;;  %3500 = vmatpush3.msra.mxu1 %v330_v26  ;;  %v4355_v11 = vld [vmem:[%s4192_s10 + $0x38] sm:$0xff]  ;;  %v4362_v13 = vld [vmem:[%s4192_s10 + $0x100] sm:$0xff]  ;;  %v4374_v16 = vld [vmem:[%s4192_s10 + $0x30] sm:$0xff] }
  0x25   : > { %367 = vmatpush1.msra.mxu0 %v297_v23  ;;  %3501 = vmatprep.subr.mxu1 %v329_v28  ;;  %v4370_v15 = vld [vmem:[%s4192_s10 + $0x118] sm:$0xff]  ;;  %v4377_v17 = vld [vmem:[%s4192_s10 + $0x50] sm:$0xff]  ;;  %v797_v18 = vld [vmem:[%s6310_s2 + $0x28] sm:$0xff] }
  0x26   : > { %368 = vmatprep.subr.mxu0 %v6323_v1  ;;  %3502 = vmatpush3.msra.mxu1 %v329_v28  ;;  %v4385_v19 = vld [vmem:[%s4192_s10 + $0x130] sm:$0xff]  ;;  %v796_v20 = vld [vmem:[%s6310_s2 + $0x20] sm:$0xff]  ;;  %v4397_v22 = vld [vmem:[%s4192_s10 + $0x48] sm:$0xff] }
  0x27   : > { %369 = vmatpush1.msra.mxu0 %v296_v25  ;;  %3503 = vmatprep.subr.mxu1 %v328_v30  ;;  %v836_v21 = vld [vmem:[%s6310_s2 + $0x160] sm:$0xff]  ;;  %v4400_v23 = vld [vmem:[%s4192_s10 + $0x148] sm:$0xff]  ;;  %v795_v25 = vld [vmem:[%s6310_s2 + $0x18] sm:$0xff] }
  0x28   : > { %370 = vmatprep.subr.mxu0 %v6323_v1  ;;  %3504 = vmatpush3.msra.mxu1 %v328_v30  ;;  %v4403_v24 = vld [vmem:[%s4192_s10 + $0x68] sm:$0xff]  ;;  %v4411_v26 = vld [vmem:[%s4192_s10 + $0x160] sm:$0xff]  ;;  %v794_v28 = vld [vmem:[%s6310_s2 + $0x10] sm:$0xff] }
  0x29   : > { %371 = vmatpush1.msra.mxu0 %v295_v27  ;;  %3505 = vmatprep.subr.mxu1 %v327_v32  ;;  %v4417_v27 = vld [vmem:[%s4192_s10 + $0x60] sm:$0xff]  ;;  %v4428_v30 = vld [vmem:[%s4192_s10 + $0x178] sm:$0xff] }
  0x2a   : > { %372 = vmatprep.subr.mxu0 %v6323_v1  ;;  %3506 = vmatpush3.msra.mxu1 %v327_v32  ;;  %v793_v32 = vld [vmem:[%s6310_s2 + $0x8] sm:$0xff] }
  0x2b   : > { %373 = vmatpush1.msra.mxu0 %v294_v29  ;;  %3507 = vmatprep.subr.mxu1 %v326_v34  ;;  %v4424_v29 = vld [vmem:[%s4192_s10 + $0x80] sm:$0xff] }
  0x2c   : > { %374 = vmatprep.subr.mxu0 %v6323_v1  ;;  %3508 = vmatpush3.msra.mxu1 %v326_v34  ;;  %v4443_v34 = vld [vmem:[%s4192_s10 + $0x78] sm:$0xff] }
  0x2d   : > { %375 = vmatpush2.msra.mxu0 %v325_v31  ;;  %3509 = vmatprep.mubr.f32.mxu1 %v4206_v36  ;;  %v4432_v31 = vld [vmem:[%s4192_s10 + $0x190] sm:$0xff] }
  0x2e   : > { %376 = vmatprep.subr.mxu0 %v6323_v1  ;;  %3510 = vmatmul.mubr.f32.vlgmr.msra.gmra.mxu1 %v4209_v37 }
  0x2f   : > { %377 = vmatpush2.msra.mxu0 %v324_v33  ;;  %840 = vmatprep.subr.mxu1 %v6323_v1  ;;  %v835_v33 = vld [vmem:[%s6310_s2 + $0x158] sm:$0xff] }
  0x30   : > { %378 = vmatprep.subr.mxu0 %v6323_v1  ;;  %406 = vmatprep.mubr.f32.mxu0 %v4217_v39 }
  0x31   : > { %379 = vmatpush2.msra.mxu0 %v323_v35  ;;  %841 = vmatpush1.msra.mxu1 %v807_v41  ;;  %v4447_v35 = vld [vmem:[%s4192_s10 + $0x98] sm:$0xff] }
  0x32   : > { %380 = vmatprep.subr.mxu0 %v6323_v1  ;;  %842 = vmatprep.subr.mxu1 %v6323_v1  ;;  %v823_v41 = vld [vmem:[%s6310_s2 + $0xf8] sm:$0xff] }
  0x33   : > { %381 = vmatpush2.msra.mxu0 %v322_v38  ;;  %3512 = vmatprep.mubr.f32.mxu1 %v4234_v43  ;;  %v792_v38 = vld [vmem:[%s6310_s2] sm:$0xff] }
  0x34   : > { %382 = vmatprep.subr.mxu0 %v6323_v1  ;;  %843 = vmatpush1.msra.mxu1 %v806_v44  ;;  %v4467_v44 = vld [vmem:[%s4192_s10 + $0x90] sm:$0xff] }
  0x35   : > { %383 = vmatpush2.msra.mxu0 %v321_v40  ;;  %3513 = vmatmul.mubr.f32.gmra.mxu1 %v4245_v46  ;;  %v4455_v40 = vld [vmem:[%s4192_s10 + $0x1a8] sm:$0xff] }
  0x36   : > { %384 = vmatprep.subr.mxu0 %v6323_v1  ;;  %844 = vmatprep.subr.mxu1 %v6323_v1 }
  0x37   : > { %385 = vmatpush2.msra.mxu0 %v320_v42  ;;  %845 = vmatpush1.msra.mxu1 %v805_v48  ;;  %v4463_v42 = vld [vmem:[%s4192_s10 + $0x1c0] sm:$0xff]  ;;  %v4479_v48 = vld [vmem:[%s4192_s10 + $0x1d8] sm:$0xff] }
  0x38   : > { %386 = vmatprep.subr.mxu0 %v6323_v1  ;;  %846 = vmatprep.subr.mxu1 %v6323_v1 }
  0x39   : > { %387 = vmatpush2.msra.mxu0 %v319_v45  ;;  %3515 = vmatprep.mubr.f32.mxu1 %v4262_v50  ;;  %v4470_v45 = vld [vmem:[%s4192_s10 + $0xb0] sm:$0xff] }
  0x3a   : > { %388 = vmatprep.subr.mxu0 %v6323_v1  ;;  %847 = vmatpush1.msra.mxu1 %v804_v51  ;;  %v4488_v51 = vld [vmem:[%s4192_s10 + $0xa8] sm:$0xff] }
  0x3b   : > { %389 = vmatpush2.msra.mxu0 %v318_v47  ;;  %3516 = vmatmul.mubr.f32.gmra.mxu1 %v4273_v53  ;;  %v822_v47 = vld [vmem:[%s6310_s2 + $0xf0] sm:$0xff] }
  0x3c   : > { %390 = vmatprep.subr.mxu0 %v6323_v1  ;;  %848 = vmatprep.subr.mxu1 %v6323_v1 }
  0x3d   : > { %391 = vmatpush2.msra.mxu0 %v317_v49  ;;  %849 = vmatpush1.msra.mxu1 %v803_v55  ;;  %v4484_v49 = vld [vmem:[%s4192_s10 + $0x1f0] sm:$0xff]  ;;  %v820_v55 = vld [vmem:[%s6310_s2 + $0xe0] sm:$0xff] }
  0x3e   : > { %392 = vmatprep.subr.mxu0 %v6323_v1  ;;  %850 = vmatprep.subr.mxu1 %v6323_v1 }
  0x3f   : > { %393 = vmatpush2.msra.mxu0 %v316_v52  ;;  %3518 = vmatprep.mubr.f32.mxu1 %v4290_v57  ;;  %v821_v52 = vld [vmem:[%s6310_s2 + $0xe8] sm:$0xff] }
  0x40   : > { %394 = vmatprep.subr.mxu0 %v6323_v1  ;;  %851 = vmatpush1.msra.mxu1 %v802_v58  ;;  %v4507_v58 = vld [vmem:[%s4192_s10 + $0x208] sm:$0xff] }
  0x41   : > { %395 = vmatpush2.msra.mxu0 %v315_v54  ;;  %3519 = vmatmul.mubr.f32.gmra.mxu1 %v4301_v60  ;;  %v4494_v54 = vld [vmem:[%s4192_s10 + $0xc8] sm:$0xff] }
  0x42   : > { %396 = vmatprep.subr.mxu0 %v6323_v1  ;;  %852 = vmatprep.subr.mxu1 %v6323_v1 }
  0x43   : > { %397 = vmatpush2.msra.mxu0 %v314_v56  ;;  %853 = vmatpush1.msra.mxu1 %v801_v62  ;;  %v834_v56 = vld [vmem:[%s6310_s2 + $0x150] sm:$0xff]  ;;  %v4518_v62 = vld [vmem:[%s4192_s10 + $0xe0] sm:$0xff] }
  0x44   : > { %398 = vmatprep.subr.mxu0 %v6323_v1  ;;  %854 = vmatprep.subr.mxu1 %v6323_v1 }
  0x45   : > { %399 = vmatpush2.msra.mxu0 %v313_v59  ;;  %3521 = vmatprep.mubr.f32.mxu1 %v4318_v0  ;;  %v4511_v59 = vld [vmem:[%s4192_s10 + $0xc0] sm:$0xff] }
  0x46   : > { %400 = vmatprep.subr.mxu0 %v6323_v1  ;;  %855 = vmatpush1.msra.mxu1 %v800_v2  ;;  %v818_v2 = vld [vmem:[%s6310_s2 + $0xd0] sm:$0xff] }
  0x47   : > { %401 = vmatpush2.msra.mxu0 %v312_v61  ;;  %3522 = vmatmul.mubr.f32.gmra.mxu1 %v4329_v4  ;;  %v819_v61 = vld [vmem:[%s6310_s2 + $0xd8] sm:$0xff] }
  0x48   : > { %402 = vmatprep.subr.mxu0 %v6323_v1  ;;  %856 = vmatprep.subr.mxu1 %v6323_v1 }
  0x49   : > { %403 = vmatpush2.msra.mxu0 %v311_v63  ;;  %857 = vmatpush1.msra.mxu1 %v799_v9  ;;  %v4523_v63 = vld [vmem:[%s4192_s10 + $0x220] sm:$0xff]  ;;  %v817_v9 = vld [vmem:[%s6310_s2 + $0xc8] sm:$0xff] }
  0x4a   : > { %404 = vmatprep.subr.mxu0 %v6323_v1  ;;  %858 = vmatprep.subr.mxu1 %v6323_v1 }
  0x4b   : > { %405 = vmatpush2.msra.mxu0 %v310_v3  ;;  %3524 = vmatprep.mubr.f32.mxu1 %v4362_v13  ;;  %v4530_v3 = vld [vmem:[%s4192_s10 + $0x238] sm:$0xff] }
  0x4c   : > { %407 = vmatmul.mubr.f32.vlgmr.msra.gmra.mxu0 %v4332_v5  ;;  %3557 = vmatprep.subr.mxu0 %v839_v6 }
  0x4d   : > { %3558 = vmatpush3.msra.mxu0 %v839_v6  ;;  %411 = vmatprep.mubr.f32.mxu0 %v4340_v7  ;;  %v4534_v6 = vld [vmem:[%s4192_s10 + $0xd8] sm:$0xff] }
  0x4e   : > { %3559 = vmatprep.subr.mxu0 %v838_v8  ;;  %859 = vmatpush1.msra.mxu1 %v798_v14  ;;  %v816_v14 = vld [vmem:[%s6310_s2 + $0xc0] sm:$0xff] }
  0x4f   : > { %3560 = vmatpush3.msra.mxu0 %v838_v8  ;;  %3525 = vmatmul.mubr.f32.gmra.mxu1 %v4370_v15  ;;  %v4538_v8 = vld [vmem:[%s4192_s10 + $0xf8] sm:$0xff] }
  0x50   : > { %412 = vmatmul.mubr.f32.gmra.mxu0 %v4352_v10  ;;  %3561 = vmatprep.subr.mxu0 %v837_v12 }
  0x51   : > { %416 = vmatprep.mubr.f32.mxu0 %v4355_v11  ;;  %3562 = vmatpush3.msra.mxu0 %v837_v12  ;;  %v4546_v12 = vld [vmem:[%s4192_s10 + $0x250] sm:$0xff] }
  0x52   : > { %860 = vmatprep.subr.mxu1 %v6323_v1  ;;  %3527 = vmatprep.mubr.f32.mxu1 %v4385_v19 }
  0x53   : > { %861 = vmatpush1.msra.mxu1 %v797_v18  ;;  %3563 = vmatprep.subr.mxu0 %v836_v21  ;;  %v833_v18 = vld [vmem:[%s6310_s2 + $0x148] sm:$0xff] }
  0x54   : > { %417 = vmatmul.mubr.f32.gmra.mxu0 %v4374_v16  ;;  %862 = vmatprep.subr.mxu1 %v6323_v1 }
  0x55   : > { %421 = vmatprep.mubr.f32.mxu0 %v4377_v17  ;;  %863 = vmatpush1.msra.mxu1 %v796_v20  ;;  %v4558_v20 = vld [vmem:[%s4192_s10 + $0xf0] sm:$0xff] }
  0x56   : > { %3528 = vmatmul.mubr.f32.gmra.mxu1 %v4400_v23  ;;  %864 = vmatprep.subr.mxu1 %v6323_v1  ;;  %6371 = vst [vmem:[#allocation2_spill] sm:$0xff] %v4558_v20 }
  0x57   : > { %865 = vmatpush1.msra.mxu1 %v795_v25  ;;  %3530 = vmatprep.mubr.f32.mxu1 %v4411_v26  ;;  %v4564_v25 = vld [vmem:[%s4192_s10 + $0x110] sm:$0xff] }
  0x58   : > { %422 = vmatmul.mubr.f32.gmra.mxu0 %v4397_v22  ;;  %866 = vmatprep.subr.mxu1 %v6323_v1  ;;  %6372 = vst [vmem:[#allocation3_spill] sm:$0xff] %v4564_v25 }
  0x59   : > { %426 = vmatprep.mubr.f32.mxu0 %v4403_v24  ;;  %3564 = vmatpush3.msra.mxu0 %v836_v21  ;;  %v4561_v21 = vld [vmem:[%s4192_s10 + $0x268] sm:$0xff] }
  0x5a   : > { %867 = vmatpush1.msra.mxu1 %v794_v28  ;;  %3565 = vmatprep.subr.mxu0 %v835_v33  ;;  %v815_v28 = vld [vmem:[%s6310_s2 + $0xb8] sm:$0xff] }
  0x5b   : > { %3531 = vmatmul.mubr.f32.gmra.mxu1 %v4428_v30  ;;  %868 = vmatprep.subr.mxu1 %v6323_v1 }
  0x5c   : > { %427 = vmatmul.mubr.f32.gmra.mxu0 %v4417_v27  ;;  %3533 = vmatprep.mubr.f32.mxu1 %v4432_v31 }
  0x5d   : > { %431 = vmatprep.mubr.f32.mxu0 %v4424_v29  ;;  %869 = vmatpush1.msra.mxu1 %v793_v32  ;;  %v4572_v32 = vld [vmem:[%s4192_s10 + $0x280] sm:$0xff] }
  0x5e   : > { %870 = vmatprep.subr.mxu1 %v6323_v1  ;;  %3566 = vmatpush3.msra.mxu0 %v835_v33  ;;  %6373 = vst [vmem:[#allocation4_spill] sm:$0xff] %v4572_v32  ;;  %v4578_v33 = vld [vmem:[%s4192_s10 + $0x108] sm:$0xff] }
  0x5f   : > { %871 = vmatpush1.msra.mxu1 %v792_v38  ;;  %3567 = vmatprep.subr.mxu0 %v834_v56  ;;  %6374 = vst [vmem:[#allocation5_spill] sm:$0xff] %v4578_v33  ;;  %v814_v38 = vld [vmem:[%s6310_s2 + $0xb0] sm:$0xff] }
  0x60   : > { %432 = vmatmul.mubr.f32.gmra.mxu0 %v4443_v34  ;;  %3534 = vmatmul.mubr.f32.gmra.mxu1 %v4455_v40 }
  0x61   : > { %436 = vmatprep.mubr.f32.mxu0 %v4447_v35  ;;  %872 = vmatprep.subr.mxu1 %v6323_v1 }
  0x62   : > { %873 = vmatpush2.msra.mxu1 %v823_v41  ;;  %3536 = vmatprep.mubr.f32.mxu1 %v4463_v42  ;;  %v4585_v41 = vld [vmem:[%s4192_s10 + $0x128] sm:$0xff] }
  0x63   : > { %874 = vmatprep.subr.mxu1 %v6323_v1  ;;  %3568 = vmatpush3.msra.mxu0 %v834_v56  ;;  %6375 = vst [vmem:[#allocation6_spill] sm:$0xff] %v4585_v41  ;;  %v832_v56 = vld [vmem:[%s6310_s2 + $0x140] sm:$0xff] }
  0x64   : > { %437 = vmatmul.mubr.f32.gmra.mxu0 %v4467_v44  ;;  %875 = vmatpush2.msra.mxu1 %v822_v47  ;;  %v4589_v47 = vld [vmem:[%s4192_s10 + $0x298] sm:$0xff] }
  0x65   : > { %441 = vmatprep.mubr.f32.mxu0 %v4470_v45  ;;  %3537 = vmatmul.mubr.f32.gmra.mxu1 %v4479_v48  ;;  %6376 = vst [vmem:[#allocation7_spill] sm:$0xff] %v4589_v47 }
  0x66   : > { %876 = vmatprep.subr.mxu1 %v6323_v1  ;;  %3539 = vmatprep.mubr.f32.mxu1 %v4484_v49 }
  0x67   : > { %877 = vmatpush2.msra.mxu1 %v821_v52  ;;  %3569 = vmatprep.subr.mxu0 %v833_v18  ;;  %v4593_v52 = vld [vmem:[%s4192_s10 + $0x2b0] sm:$0xff] }
  0x68   : > { %442 = vmatmul.mubr.f32.gmra.mxu0 %v4488_v51  ;;  %878 = vmatprep.subr.mxu1 %v6323_v1  ;;  %6377 = vst [vmem:[#allocation8_spill] sm:$0xff] %v4593_v52 }
  0x69   : > { %446 = vmatprep.mubr.f32.mxu0 %v4494_v54  ;;  %879 = vmatpush2.msra.mxu1 %v820_v55  ;;  %v813_v55 = vld [vmem:[%s6310_s2 + $0xa8] sm:$0xff] }
  0x6a   : > { %3540 = vmatmul.mubr.f32.gmra.mxu1 %v4507_v58  ;;  %880 = vmatprep.subr.mxu1 %v6323_v1 }
  0x6b   : > { %881 = vmatpush2.msra.mxu1 %v819_v61  ;;  %3542 = vmatprep.mubr.f32.mxu1 %v4523_v63  ;;  %v4604_v61 = vld [vmem:[%s4192_s10 + $0x120] sm:$0xff] }
  0x6c   : > { %447 = vmatmul.mubr.f32.gmra.mxu0 %v4511_v59  ;;  %882 = vmatprep.subr.mxu1 %v6323_v1  ;;  %6378 = vst [vmem:[#allocation9_spill] sm:$0xff] %v4604_v61 }
  0x6d   : > { %451 = vmatprep.mubr.f32.mxu0 %v4518_v62  ;;  %883 = vmatpush2.msra.mxu1 %v818_v2  ;;  %v4609_v2 = vld [vmem:[%s4192_s10 + $0x140] sm:$0xff] }
  0x6e   : > { %3543 = vmatmul.mubr.f32.gmra.mxu1 %v4530_v3  ;;  %884 = vmatprep.subr.mxu1 %v6323_v1  ;;  %6379 = vst [vmem:[#allocation10_spill] sm:$0xff] %v4609_v2 }
  0x6f   : > { %885 = vmatpush2.msra.mxu1 %v817_v9  ;;  %3545 = vmatprep.mubr.f32.mxu1 %v4546_v12  ;;  %v812_v9 = vld [vmem:[%s6310_s2 + $0xa0] sm:$0xff] }
  0x70   : > { %452 = vmatmul.mubr.f32.gmra.mxu0 %v4534_v6  ;;  %886 = vmatprep.subr.mxu1 %v6323_v1 }
  0x71   : > { %456 = vmatprep.mubr.f32.mxu0 %v4538_v8  ;;  %887 = vmatpush2.msra.mxu1 %v816_v14  ;;  %v4616_v14 = vld [vmem:[%s4192_s10 + $0x2c8] sm:$0xff] }
  0x72   : > { %3546 = vmatmul.mubr.f32.gmra.mxu1 %v4561_v21  ;;  %888 = vmatprep.subr.mxu1 %v6323_v1  ;;  %6380 = vst [vmem:[#allocation11_spill] sm:$0xff] %v4616_v14 }
  0x73   : > { %889 = vmatpush2.msra.mxu1 %v815_v28  ;;  %3548 = vmatprep.mubr.f32.mxu1 %v4572_v32  ;;  %v4624_v28 = vld [vmem:[%s4192_s10 + $0x2e0] sm:$0xff]  ;;  %v4729_v32 = vld [vmem:[%s4192_s10 + $0x1c8] sm:$0xff] }
  0x74   : > { %457 = vmatmul.mubr.f32.gmra.mxu0 %v4558_v20  ;;  %890 = vmatprep.subr.mxu1 %v6323_v1  ;;  %6381 = vst [vmem:[#allocation12_spill] sm:$0xff] %v4624_v28 }
  0x75   : > { %461 = vmatprep.mubr.f32.mxu0 %v4564_v25  ;;  %3570 = vmatpush3.msra.mxu0 %v833_v18  ;;  %v811_v18 = vld [vmem:[%s6310_s2 + $0x98] sm:$0xff] }
  0x76   : > { %891 = vmatpush2.msra.mxu1 %v814_v38  ;;  %3571 = vmatprep.subr.mxu0 %v832_v56  ;;  %v4628_v38 = vld [vmem:[%s4192_s10 + $0x138] sm:$0xff] }
  0x77   : > { %3549 = vmatmul.mubr.f32.gmra.mxu1 %v4589_v47  ;;  %892 = vmatprep.subr.mxu1 %v6323_v1  ;;  %6382 = vst [vmem:[#allocation13_spill] sm:$0xff] %v4628_v38  ;;  %v4640_v47 = vld [vmem:[%s4192_s10 + $0x2f8] sm:$0xff] }
  0x78   : > { %462 = vmatmul.mubr.f32.gmra.mxu0 %v4578_v33  ;;  %3551 = vmatprep.mubr.f32.mxu1 %v4593_v52  ;;  %v810_v52 = vld [vmem:[%s6310_s2 + $0x90] sm:$0xff]  ;;  %6384 = vst [vmem:[#allocation15_spill] sm:$0xff] %v4640_v47 }
  0x79   : > { %466 = vmatprep.mubr.f32.mxu0 %v4585_v41  ;;  %893 = vmatpush2.msra.mxu1 %v813_v55  ;;  %v4633_v55 = vld [vmem:[%s4192_s10 + $0x158] sm:$0xff] }
  0x7a   : > { %894 = vmatprep.subr.mxu1 %v6323_v1  ;;  %6383 = vst [vmem:[#allocation14_spill] sm:$0xff] %v4633_v55  ;;  %3572 = vmatpush3.msra.mxu0 %v832_v56  ;;  %v4666_v56 = vld [vmem:[%s4192_s10 + $0x168] sm:$0xff] }
  0x7b   : > { %895 = vmatpush2.msra.mxu1 %v812_v9  ;;  %v4646_v9 = vld [vmem:[%s4192_s10 + $0x150] sm:$0xff] }
  0x7c   : > { %467 = vmatmul.mubr.f32.gmra.mxu0 %v4604_v61  ;;  %3552 = vmatmul.mubr.f32.gmra.mxu1 %v4616_v14  ;;  %v809_v14 = vld [vmem:[%s6310_s2 + $0x88] sm:$0xff] }
  0x7d   : > { %471 = vmatprep.mubr.f32.mxu0 %v4609_v2  ;;  %896 = vmatprep.subr.mxu1 %v6323_v1 }
  0x7e   : > { %897 = vmatpush2.msra.mxu1 %v811_v18  ;;  %3554 = vmatprep.mubr.f32.mxu1 %v4624_v28  ;;  %v4653_v18 = vld [vmem:[%s4192_s10 + $0x170] sm:$0xff]  ;;  %v808_v28 = vld [vmem:[%s6310_s2 + $0x80] sm:$0xff] }
  0x7f   : > { %898 = vmatprep.subr.mxu1 %v6323_v1  ;;  %6385 = vst [vmem:[#allocation16_spill] sm:$0xff] %v4653_v18 }
  0x80   : > { %472 = vmatmul.mubr.f32.gmra.mxu0 %v4628_v38  ;;  %899 = vmatpush2.msra.mxu1 %v810_v52  ;;  %v831_v52 = vld [vmem:[%s6310_s2 + $0x138] sm:$0xff] }
  0x81   : > { %476 = vmatprep.mubr.f32.mxu0 %v4633_v55  ;;  %3555 = vmatmul.mubr.f32.gmra.mxu1 %v4640_v47  ;;  %v4670_v47 = vld [vmem:[%s4192_s10 + $0x188] sm:$0xff] }
  0x82   : > { %900 = vmatprep.subr.mxu1 %v6323_v1  ;;  %904 = vmatprep.mubr.f32.mxu1 %v4217_v39  ;;  %6386 = vst [vmem:[#allocation17_spill] sm:$0xff] %v4670_v47  ;;  %v830_v39 = vld [vmem:[%s6310_s2 + $0x130] sm:$0xff] }
  0x83   : > { %901 = vmatpush2.msra.mxu1 %v809_v14  ;;  %3573 = vmatprep.subr.mxu0 %v831_v52  ;;  %v829_v14 = vld [vmem:[%s6310_s2 + $0x128] sm:$0xff] }
  0x84   : > { %477 = vmatmul.mubr.f32.gmra.mxu0 %v4646_v9  ;;  %902 = vmatprep.subr.mxu1 %v6323_v1  ;;  %v4686_v1 = vld [vmem:[%s4192_s10 + $0x1a0] sm:$0xff] }
  0x85   : > { %481 = vmatprep.mubr.f32.mxu0 %v4653_v18  ;;  %903 = vmatpush2.msra.mxu1 %v808_v28  ;;  %v4683_v28 = vld [vmem:[%s4192_s10 + $0x180] sm:$0xff] }
  0x86   : > { %905 = vmatmul.mubr.f32.vlgmr.msra.gmra.mxu1 %v4332_v5  ;;  %3574 = vmatpush3.msra.mxu0 %v831_v52  ;;  %v6387_v5 = vmov 0.0   ;;  %v4697_v52 = vld [vmem:[%s4192_s10 + $0x198] sm:$0xff] }
  0x87   : > { %909 = vmatprep.mubr.f32.mxu1 %v4340_v7  ;;  %3575 = vmatprep.subr.mxu0 %v830_v39  ;;  %v828_v7 = vld [vmem:[%s6310_s2 + $0x120] sm:$0xff] }
  0x88   : > { %482 = vmatmul.mubr.f32.gmra.mxu0 %v4666_v56  ;;  %1338 = vmatprep.subr.mxu1 %v6387_v5 }
  0x89   : > { %486 = vmatprep.mubr.f32.mxu0 %v4670_v47  ;;  %3576 = vmatpush3.msra.mxu0 %v830_v39  ;;  %v4700_v39 = vld [vmem:[%s4192_s10 + $0x1b8] sm:$0xff] }
  0x8a   : > { %910 = vmatmul.mubr.f32.gmra.mxu1 %v4352_v10  ;;  %3577 = vmatprep.subr.mxu0 %v829_v14  ;;  %v827_v10 = vld [vmem:[%s6310_s2 + $0x118] sm:$0xff] }
  0x8b   : > { %914 = vmatprep.mubr.f32.mxu1 %v4355_v11  ;;  %3578 = vmatpush3.msra.mxu0 %v829_v14  ;;  %v826_v11 = vld [vmem:[%s6310_s2 + $0x110] sm:$0xff] }
  0x8c   : > { %487 = vmatmul.mubr.f32.gmra.mxu0 %v4683_v28  ;;  %3579 = vmatprep.subr.mxu0 %v828_v7  ;;  %v4713_v14 = vld [vmem:[%s4192_s10 + $0x1b0] sm:$0xff] }
  0x8d   : > { %491 = vmatprep.mubr.f32.mxu0 %v4686_v1  ;;  %3580 = vmatpush3.msra.mxu0 %v828_v7  ;;  %v4719_v7 = vld [vmem:[%s4192_s10 + $0x1d0] sm:$0xff] }
  0x8e   : > { %915 = vmatmul.mubr.f32.gmra.mxu1 %v4374_v16  ;;  %3581 = vmatprep.subr.mxu0 %v827_v10  ;;  %v1305_v16 = vld [vmem:[%s6311_s3 + $0x78] sm:$0xff] }
  0x8f   : > { %919 = vmatprep.mubr.f32.mxu1 %v4377_v17  ;;  %3582 = vmatpush3.msra.mxu0 %v827_v10  ;;  %v825_v17 = vld [vmem:[%s6310_s2 + $0x108] sm:$0xff] }
  0x90   : > { %492 = vmatmul.mubr.f32.gmra.mxu0 %v4697_v52  ;;  %1339 = vmatpush1.msra.mxu1 %v1305_v16  ;;  %v4732_v10 = vld [vmem:[%s4192_s10 + $0x1e8] sm:$0xff]  ;;  %v4751_v16 = vld [vmem:[%s4192_s10 + $0x1e0] sm:$0xff] }
  0x91   : > { %496 = vmatprep.mubr.f32.mxu0 %v4700_v39  ;;  %3583 = vmatprep.subr.mxu0 %v826_v11 }
  0x92   : > { %920 = vmatmul.mubr.f32.gmra.mxu1 %v4397_v22  ;;  %3584 = vmatpush3.msra.mxu0 %v826_v11  ;;  %v824_v22 = vld [vmem:[%s6310_s2 + $0x100] sm:$0xff]  ;;  %v4747_v11 = vld [vmem:[%s6311_s3 + $0x178] sm:$0xff] }
  0x93   : > { %924 = vmatprep.mubr.f32.mxu1 %v4403_v24  ;;  %3585 = vmatprep.subr.mxu0 %v825_v17  ;;  %v1304_v24 = vld [vmem:[%s6311_s3 + $0x70] sm:$0xff] }
  0x94   : > { %497 = vmatmul.mubr.f32.gmra.mxu0 %v4713_v14  ;;  %1340 = vmatprep.subr.mxu1 %v6387_v5 }
  0x95   : > { %501 = vmatprep.mubr.f32.mxu0 %v4719_v7  ;;  %3586 = vmatpush3.msra.mxu0 %v825_v17  ;;  %v4765_v17 = vld [vmem:[%s4192_s10 + $0x1f8] sm:$0xff] }
  0x96   : > { %925 = vmatmul.mubr.f32.gmra.mxu1 %v4417_v27  ;;  %3587 = vmatprep.subr.mxu0 %v824_v22  ;;  %v4754_v27 = vld [vmem:[%s4192_s10 + $0x200] sm:$0xff] }
  0x97   : > { %929 = vmatprep.mubr.f32.mxu1 %v4424_v29  ;;  %3588 = vmatpush3.msra.mxu0 %v824_v22  ;;  %v1303_v29 = vld [vmem:[%s6311_s3 + $0x68] sm:$0xff]  ;;  %v4769_v22 = vld [vmem:[%s4192_s10 + $0x218] sm:$0xff] }
  0x98   : > { %502 = vmatmul.mubr.f32.gmra.mxu0 %v4729_v32  ;;  %1341 = vmatpush1.msra.mxu1 %v1304_v24  ;;  %v4783_v24 = vld [vmem:[%s4192_s10 + $0x230] sm:$0xff] }
  0x99   : > { %506 = vmatprep.mubr.f32.mxu0 %v4732_v10  ;;  %3637 = vmatprep.subr.mxu0 %v4747_v11 }
  0x9a   : > { %930 = vmatmul.mubr.f32.gmra.mxu1 %v4443_v34  ;;  %1342 = vmatprep.subr.mxu1 %v6387_v5  ;;  %v1302_v34 = vld [vmem:[%s6311_s3 + $0x60] sm:$0xff] }
  0x9b   : > { %934 = vmatprep.mubr.f32.mxu1 %v4447_v35  ;;  %1343 = vmatpush1.msra.mxu1 %v1303_v29  ;;  %v4780_v35 = vld [vmem:[%s4192_s10 + $0x210] sm:$0xff]  ;;  %v4797_v29 = vld [vmem:[%s4192_s10 + $0x248] sm:$0xff] }
  0x9c   : > { %507 = vmatmul.mubr.f32.gmra.mxu0 %v4751_v16  ;;  %1344 = vmatprep.subr.mxu1 %v6387_v5 }
  0x9d   : > { %511 = vmatprep.mubr.f32.mxu0 %v4754_v27  ;;  %1345 = vmatpush1.msra.mxu1 %v1302_v34  ;;  %v1300_v34 = vld [vmem:[%s6311_s3 + $0x50] sm:$0xff] }
  0x9e   : > { %935 = vmatmul.mubr.f32.gmra.mxu1 %v4467_v44  ;;  %1346 = vmatprep.subr.mxu1 %v6387_v5  ;;  %v1301_v44 = vld [vmem:[%s6311_s3 + $0x58] sm:$0xff] }
  0x9f   : > { %939 = vmatprep.mubr.f32.mxu1 %v4470_v45  ;;  %v4794_v45 = vld [vmem:[%s4192_s10 + $0x228] sm:$0xff]  ;;  %1347 = vmatpush1.msra.mxu1 %v1301_v44 }
  0xa0   : > { %512 = vmatmul.mubr.f32.gmra.mxu0 %v4765_v17  ;;  %1348 = vmatprep.subr.mxu1 %v6387_v5  ;;  %v1299_v44 = vld [vmem:[%s6311_s3 + $0x48] sm:$0xff] }
  0xa1   : > { %516 = vmatprep.mubr.f32.mxu0 %v4769_v22  ;;  %1349 = vmatpush1.msra.mxu1 %v1300_v34  ;;  %v1298_v34 = vld [vmem:[%s6311_s3 + $0x40] sm:$0xff] }
  0xa2   : > { %940 = vmatmul.mubr.f32.gmra.mxu1 %v4488_v51  ;;  %v4808_v51 = vld [vmem:[%s4192_s10 + $0x240] sm:$0xff]  ;;  %1350 = vmatprep.subr.mxu1 %v6387_v5 }
  0xa3   : > { %944 = vmatprep.mubr.f32.mxu1 %v4494_v54  ;;  %v4811_v54 = vld [vmem:[%s4192_s10 + $0x260] sm:$0xff]  ;;  %1351 = vmatpush1.msra.mxu1 %v1299_v44  ;;  %v1297_v44 = vld [vmem:[%s6311_s3 + $0x38] sm:$0xff] }
  0xa4   : > { %517 = vmatmul.mubr.f32.gmra.mxu0 %v4780_v35  ;;  %1352 = vmatprep.subr.mxu1 %v6387_v5 }
  0xa5   : > { %521 = vmatprep.mubr.f32.mxu0 %v4783_v24  ;;  %1353 = vmatpush1.msra.mxu1 %v1298_v34  ;;  %v4853_v34 = vld [vmem:[%s4192_s10 + $0x2a8] sm:$0xff] }
  0xa6   : > { %945 = vmatmul.mubr.f32.gmra.mxu1 %v4511_v59  ;;  %v4822_v59 = vld [vmem:[%s4192_s10 + $0x258] sm:$0xff]  ;;  %1354 = vmatprep.subr.mxu1 %v6387_v5 }
  0xa7   : > { %949 = vmatprep.mubr.f32.mxu1 %v4518_v62  ;;  %v4825_v62 = vld [vmem:[%s4192_s10 + $0x278] sm:$0xff]  ;;  %1355 = vmatpush1.msra.mxu1 %v1297_v44  ;;  %v4867_v44 = vld [vmem:[%s4192_s10 + $0x2c0] sm:$0xff] }
  0xa8   : > { %522 = vmatmul.mubr.f32.gmra.mxu0 %v4794_v45  ;;  %1356 = vmatprep.subr.mxu1 %v6387_v5 }
  0xa9   : > { %526 = vmatprep.mubr.f32.mxu0 %v4797_v29 }
  0xaa   : > { %950 = vmatmul.mubr.f32.gmra.mxu1 %v4534_v6  ;;  %v4836_v6 = vld [vmem:[%s4192_s10 + $0x270] sm:$0xff] }
  0xab   : > { %954 = vmatprep.mubr.f32.mxu1 %v4538_v8  ;;  %v4839_v8 = vld [vmem:[%s4192_s10 + $0x290] sm:$0xff] }
  0xac   : > { %527 = vmatmul.mubr.f32.gmra.mxu0 %v4808_v51 }
  0xad   : > { %531 = vmatprep.mubr.f32.mxu0 %v4811_v54 }
  0xae   : > { %955 = vmatmul.mubr.f32.gmra.mxu1 %v4558_v20  ;;  %v1296_v20 = vld [vmem:[%s6311_s3 + $0x30] sm:$0xff] }
  0xaf   : > { %959 = vmatprep.mubr.f32.mxu1 %v4564_v25  ;;  %v4850_v25 = vld [vmem:[%s4192_s10 + $0x288] sm:$0xff]  ;;  %1357 = vmatpush1.msra.mxu1 %v1296_v20  ;;  %v4881_v20 = vld [vmem:[%s4192_s10 + $0x2d8] sm:$0xff] }
  0xb0   : > { %532 = vmatmul.mubr.f32.gmra.mxu0 %v4822_v59  ;;  %1358 = vmatprep.subr.mxu1 %v6387_v5  ;;  %6388 = vst [vmem:[#allocation18_spill] sm:$0xff] %v4881_v20 }
  0xb1   : > { %536 = vmatprep.mubr.f32.mxu0 %v4825_v62 }
  0xb2   : > { %960 = vmatmul.mubr.f32.gmra.mxu1 %v4578_v33  ;;  %v1295_v33 = vld [vmem:[%s6311_s3 + $0x28] sm:$0xff] }
  0xb3   : > { %964 = vmatprep.mubr.f32.mxu1 %v4585_v41  ;;  %v4864_v41 = vld [vmem:[%s4192_s10 + $0x2a0] sm:$0xff]  ;;  %1359 = vmatpush1.msra.mxu1 %v1295_v33  ;;  %v4895_v33 = vld [vmem:[%s4192_s10 + $0x2f0] sm:$0xff] }
  0xb4   : > { %537 = vmatmul.mubr.f32.gmra.mxu0 %v4836_v6  ;;  %1360 = vmatprep.subr.mxu1 %v6387_v5  ;;  %6390 = vst [vmem:[#allocation20_spill] sm:$0xff] %v4895_v33 }
  0xb5   : > { %541 = vmatprep.mubr.f32.mxu0 %v4839_v8 }
  0xb6   : > { %965 = vmatmul.mubr.f32.gmra.mxu1 %v4604_v61  ;;  %v1294_v61 = vld [vmem:[%s6311_s3 + $0x20] sm:$0xff] }
  0xb7   : > { %969 = vmatprep.mubr.f32.mxu1 %v4609_v2  ;;  %v4878_v2 = vld [vmem:[%s4192_s10 + $0x2b8] sm:$0xff]  ;;  %1361 = vmatpush1.msra.mxu1 %v1294_v61  ;;  %v1292_v61 = vld [vmem:[%s6311_s3 + $0x10] sm:$0xff] }
  0xb8   : > { %542 = vmatmul.mubr.f32.gmra.mxu0 %v4850_v25  ;;  %1362 = vmatprep.subr.mxu1 %v6387_v5 }
  0xb9   : > { %546 = vmatprep.mubr.f32.mxu0 %v4853_v34 }
  0xba   : > { %970 = vmatmul.mubr.f32.gmra.mxu1 %v4628_v38  ;;  %v1293_v38 = vld [vmem:[%s6311_s3 + $0x18] sm:$0xff] }
  0xbb   : > { %974 = vmatprep.mubr.f32.mxu1 %v4633_v55  ;;  %v4892_v55 = vld [vmem:[%s4192_s10 + $0x2d0] sm:$0xff]  ;;  %1363 = vmatpush1.msra.mxu1 %v1293_v38 }
  0xbc   : > { %547 = vmatmul.mubr.f32.gmra.mxu0 %v4864_v41  ;;  %6389 = vst [vmem:[#allocation19_spill] sm:$0xff] %v4892_v55  ;;  %1364 = vmatprep.subr.mxu1 %v6387_v5  ;;  %v1336_v38 = vld [vmem:[%s6311_s3 + $0x170] sm:$0xff] }
  0xbd   : > { %551 = vmatprep.mubr.f32.mxu0 %v4867_v44  ;;  %1365 = vmatpush1.msra.mxu1 %v1292_v61  ;;  %v1315_v61 = vld [vmem:[%s6311_s3 + $0xc8] sm:$0xff] }
  0xbe   : > { %975 = vmatmul.mubr.f32.gmra.mxu1 %v4646_v9  ;;  %1366 = vmatprep.subr.mxu1 %v6387_v5 }
  0xbf   : > { %979 = vmatprep.mubr.f32.mxu1 %v4653_v18  ;;  %v4906_v18 = vld [vmem:[%s4192_s10 + $0x2e8] sm:$0xff] }
  0xc0   : > { %552 = vmatmul.mubr.f32.gmra.mxu0 %v4878_v2  ;;  %6391 = vst [vmem:[#allocation21_spill] sm:$0xff] %v4906_v18 }
  0xc1   : > { %556 = vmatprep.mubr.f32.mxu0 %v4881_v20 }
  0xc2   : > { %980 = vmatmul.mubr.f32.gmra.mxu1 %v4666_v56 }
  0xc3   : > { %984 = vmatprep.mubr.f32.mxu1 %v4670_v47  ;;  %v1291_v47 = vld [vmem:[%s6311_s3 + $0x8] sm:$0xff] }
  0xc4   : > { %557 = vmatmul.mubr.f32.gmra.mxu0 %v4892_v55  ;;  %1367 = vmatpush1.msra.mxu1 %v1291_v47  ;;  %v1317_v47 = vld [vmem:[%s6311_s3 + $0xd8] sm:$0xff] }
  0xc5   : > { %561 = vmatprep.mubr.f32.mxu0 %v4895_v33  ;;  %1368 = vmatprep.subr.mxu1 %v6387_v5 }
  0xc6   : > { %985 = vmatmul.mubr.f32.gmra.mxu1 %v4683_v28 }
  0xc7   : > { %989 = vmatprep.mubr.f32.mxu1 %v4686_v1 }
  0xc8   : > { %562 = vmatmul.mubr.f32.gmra.mxu0 %v4906_v18 }
  0xc9   : > { %3589 = vmatprep.mubr.f32.mxu0 %v4206_v36  ;;  %v1335_v36 = vld [vmem:[%s6311_s3 + $0x168] sm:$0xff] }
  0xca   : > { %990 = vmatmul.mubr.f32.gmra.mxu1 %v4697_v52 }
  0xcb   : > { %994 = vmatprep.mubr.f32.mxu1 %v4700_v39 }
  0xcc   : > { %3590 = vmatmul.mubr.f32.vlgmr.msra.gmra.mxu0 %v4209_v37  ;;  %v1334_v37 = vld [vmem:[%s6311_s3 + $0x160] sm:$0xff] }
  0xcd   : > { %3592 = vmatprep.mubr.f32.mxu0 %v4234_v43  ;;  %3638 = vmatpush3.msra.mxu0 %v4747_v11  ;;  %v1333_v43 = vld [vmem:[%s6311_s3 + $0x158] sm:$0xff] }
  0xce   : > { %3639 = vmatprep.subr.mxu0 %v1336_v38  ;;  %995 = vmatmul.mubr.f32.gmra.mxu1 %v4713_v14 }
  0xcf   : > { %3640 = vmatpush3.msra.mxu0 %v1336_v38  ;;  %999 = vmatprep.mubr.f32.mxu1 %v4719_v7 }
  0xd0   : > { %3593 = vmatmul.mubr.f32.gmra.mxu0 %v4245_v46  ;;  %3641 = vmatprep.subr.mxu0 %v1335_v36  ;;  %v1290_v46 = vld [vmem:[%s6311_s3] sm:$0xff] }
  0xd1   : > { %3595 = vmatprep.mubr.f32.mxu0 %v4262_v50  ;;  %3642 = vmatpush3.msra.mxu0 %v1335_v36  ;;  %v1332_v50 = vld [vmem:[%s6311_s3 + $0x150] sm:$0xff]  ;;  %v6393_v36 = vld [vmem:[#allocation7_spill] sm:$0xff] }
  0xd2   : > { %1000 = vmatmul.mubr.f32.gmra.mxu1 %v4729_v32  ;;  %3643 = vmatprep.subr.mxu0 %v1334_v37 }
  0xd3   : > { %1004 = vmatprep.mubr.f32.mxu1 %v4732_v10  ;;  %3644 = vmatpush3.msra.mxu0 %v1334_v37  ;;  %v6394_v37 = vld [vmem:[#allocation8_spill] sm:$0xff] }
  0xd4   : > { %3596 = vmatmul.mubr.f32.gmra.mxu0 %v4273_v53  ;;  %3645 = vmatprep.subr.mxu0 %v1333_v43  ;;  %v1331_v53 = vld [vmem:[%s6311_s3 + $0x148] sm:$0xff] }
  0xd5   : > { %3598 = vmatprep.mubr.f32.mxu0 %v4290_v57  ;;  %1369 = vmatpush1.msra.mxu1 %v1290_v46  ;;  %v1330_v57 = vld [vmem:[%s6311_s3 + $0x140] sm:$0xff] }
  0xd6   : > { %1005 = vmatmul.mubr.f32.gmra.mxu1 %v4751_v16  ;;  %3646 = vmatpush3.msra.mxu0 %v1333_v43  ;;  %v1314_v46 = vld [vmem:[%s6311_s3 + $0xc0] sm:$0xff] }
  0xd7   : > { %1009 = vmatprep.mubr.f32.mxu1 %v4754_v27  ;;  %3647 = vmatprep.subr.mxu0 %v1332_v50 }
  0xd8   : > { %3599 = vmatmul.mubr.f32.gmra.mxu0 %v4301_v60  ;;  %1370 = vmatprep.subr.mxu1 %v6387_v5  ;;  %v1321_v60 = vld [vmem:[%s6311_s3 + $0xf8] sm:$0xff] }
  0xd9   : > { %3601 = vmatprep.mubr.f32.mxu0 %v4318_v0  ;;  %3648 = vmatpush3.msra.mxu0 %v1332_v50  ;;  %v1329_v0 = vld [vmem:[%s6311_s3 + $0x138] sm:$0xff] }
  0xda   : > { %1010 = vmatmul.mubr.f32.gmra.mxu1 %v4765_v17  ;;  %3649 = vmatprep.subr.mxu0 %v1331_v53  ;;  %v1313_v50 = vld [vmem:[%s6311_s3 + $0xb8] sm:$0xff] }
  0xdb   : > { %1014 = vmatprep.mubr.f32.mxu1 %v4769_v22  ;;  %3650 = vmatpush3.msra.mxu0 %v1331_v53  ;;  %v6395_v53 = vld [vmem:[#allocation11_spill] sm:$0xff] }
  0xdc   : > { %3602 = vmatmul.mubr.f32.gmra.mxu0 %v4329_v4  ;;  %3651 = vmatprep.subr.mxu0 %v1330_v57  ;;  %v1328_v4 = vld [vmem:[%s6311_s3 + $0x130] sm:$0xff] }
  0xdd   : > { %3604 = vmatprep.mubr.f32.mxu0 %v4362_v13  ;;  %1371 = vmatpush2.msra.mxu1 %v1321_v60  ;;  %v1327_v13 = vld [vmem:[%s6311_s3 + $0x128] sm:$0xff] }
  0xde   : > { %1015 = vmatmul.mubr.f32.gmra.mxu1 %v4780_v35  ;;  %3652 = vmatpush3.msra.mxu0 %v1330_v57  ;;  %v6396_v57 = vld [vmem:[#allocation12_spill] sm:$0xff] }
  0xdf   : > { %1019 = vmatprep.mubr.f32.mxu1 %v4783_v24  ;;  %3653 = vmatprep.subr.mxu0 %v1329_v0 }
  0xe0   : > { %3605 = vmatmul.mubr.f32.gmra.mxu0 %v4370_v15  ;;  %1372 = vmatprep.subr.mxu1 %v6387_v5  ;;  %v1320_v15 = vld [vmem:[%s6311_s3 + $0xf0] sm:$0xff] }
  0xe1   : > { %3607 = vmatprep.mubr.f32.mxu0 %v4385_v19  ;;  %3654 = vmatpush3.msra.mxu0 %v1329_v0  ;;  %v1326_v19 = vld [vmem:[%s6311_s3 + $0x120] sm:$0xff]  ;;  %v1312_v0 = vld [vmem:[%s6311_s3 + $0xb0] sm:$0xff] }
  0xe2   : > { %1020 = vmatmul.mubr.f32.gmra.mxu1 %v4794_v45  ;;  %3655 = vmatprep.subr.mxu0 %v1328_v4 }
  0xe3   : > { %1024 = vmatprep.mubr.f32.mxu1 %v4797_v29  ;;  %3656 = vmatpush3.msra.mxu0 %v1328_v4  ;;  %v3983_v4 = vld [vmem:[%s4192_s10 + $0x8] sm:$0xff] }
  0xe4   : > { %3608 = vmatmul.mubr.f32.gmra.mxu0 %v4400_v23  ;;  %3657 = vmatprep.subr.mxu0 %v1327_v13  ;;  %v1325_v23 = vld [vmem:[%s6311_s3 + $0x118] sm:$0xff] }
  0xe5   : > { %3610 = vmatprep.mubr.f32.mxu0 %v4411_v26  ;;  %1373 = vmatpush2.msra.mxu1 %v1320_v15  ;;  %v1324_v26 = vld [vmem:[%s6311_s3 + $0x110] sm:$0xff]  ;;  %v1311_v15 = vld [vmem:[%s6311_s3 + $0xa8] sm:$0xff] }
  0xe6   : > { %1025 = vmatmul.mubr.f32.gmra.mxu1 %v4808_v51  ;;  %3658 = vmatpush3.msra.mxu0 %v1327_v13 }
  0xe7   : > { %1029 = vmatprep.mubr.f32.mxu1 %v4811_v54  ;;  %3659 = vmatprep.subr.mxu0 %v1326_v19 }
  0xe8   : > { %3611 = vmatmul.mubr.f32.gmra.mxu0 %v4428_v30  ;;  %1374 = vmatprep.subr.mxu1 %v6387_v5  ;;  %v1319_v30 = vld [vmem:[%s6311_s3 + $0xe8] sm:$0xff] }
  0xe9   : > { %3613 = vmatprep.mubr.f32.mxu0 %v4432_v31  ;;  %3660 = vmatpush3.msra.mxu0 %v1326_v19  ;;  %v1323_v31 = vld [vmem:[%s6311_s3 + $0x108] sm:$0xff] }
  0xea   : > { %1030 = vmatmul.mubr.f32.gmra.mxu1 %v4822_v59  ;;  %3661 = vmatprep.subr.mxu0 %v1325_v23  ;;  %v6397_v19 = vld [vmem:[#allocation15_spill] sm:$0xff] }
  0xeb   : > { %1034 = vmatprep.mubr.f32.mxu1 %v4825_v62  ;;  %3662 = vmatpush3.msra.mxu0 %v1325_v23  ;;  %v3984_v23 = vld [vmem:[%s4192_s10 + $0x10] sm:$0xff] }
  0xec   : > { %3614 = vmatmul.mubr.f32.gmra.mxu0 %v4455_v40  ;;  %3663 = vmatprep.subr.mxu0 %v1324_v26  ;;  %v1322_v40 = vld [vmem:[%s6311_s3 + $0x100] sm:$0xff] }
  0xed   : > { %3616 = vmatprep.mubr.f32.mxu0 %v4463_v42  ;;  %1375 = vmatpush2.msra.mxu1 %v1319_v30 }
  0xee   : > { %1035 = vmatmul.mubr.f32.gmra.mxu1 %v4836_v6  ;;  %3664 = vmatpush3.msra.mxu0 %v1324_v26  ;;  %v5022_v42 = vpop.f32.mrf.mxu1  ;;  %v1310_v26 = vld [vmem:[%s6311_s3 + $0xa0] sm:$0xff] }
  0xef   : > { %1039 = vmatprep.mubr.f32.mxu1 %v4839_v8  ;;  %3665 = vmatprep.subr.mxu0 %v1323_v31 }
  0xf0   : > { %3617 = vmatmul.mubr.f32.gmra.mxu0 %v4479_v48  ;;  %1376 = vmatprep.subr.mxu1 %v6387_v5  ;;  %v1318_v48 = vld [vmem:[%s6311_s3 + $0xe0] sm:$0xff] }
  0xf1   : > { %3619 = vmatprep.mubr.f32.mxu0 %v4484_v49  ;;  %3666 = vmatpush3.msra.mxu0 %v1323_v31  ;;  %v5032_v49 = vpop.f32.mrf.mxu1  ;;  %v1309_v31 = vld [vmem:[%s6311_s3 + $0x98] sm:$0xff] }
  0xf2   : > { %1040 = vmatmul.mubr.f32.gmra.mxu1 %v4850_v25  ;;  %3667 = vmatprep.subr.mxu0 %v1322_v40 }
  0xf3   : > { %1044 = vmatprep.mubr.f32.mxu1 %v4853_v34  ;;  %3668 = vmatpush3.msra.mxu0 %v1322_v40 }
  0xf4   : > { %3620 = vmatmul.mubr.f32.gmra.mxu0 %v4507_v58  ;;  %1377 = vmatpush2.msra.mxu1 %v1318_v48  ;;  %v3985_v48 = vld [vmem:[%s4192_s10 + $0x28] sm:$0xff] }
  0xf5   : > { %3622 = vmatprep.mubr.f32.mxu0 %v4523_v63  ;;  %1378 = vmatprep.subr.mxu1 %v6387_v5  ;;  %v5042_v58 = vpop.f32.mrf.mxu1  ;;  %v1316_v63 = vld [vmem:[%s6311_s3 + $0xd0] sm:$0xff] }
  0xf6   : > { %1045 = vmatmul.mubr.f32.gmra.mxu1 %v4864_v41 }
  0xf7   : > { %1049 = vmatprep.mubr.f32.mxu1 %v4867_v44  ;;  %1379 = vmatpush2.msra.mxu1 %v1317_v47  ;;  %v5049_v11 = vpop.f32.mrf.mxu1  ;;  %v3986_v47 = vld [vmem:[%s4192_s10 + $0x40] sm:$0xff] }
  0xf8   : > { %3623 = vmatmul.mubr.f32.gmra.mxu0 %v4530_v3  ;;  %1380 = vmatprep.subr.mxu1 %v6387_v5  ;;  %v6392_v3 = vld [vmem:[#allocation4_spill] sm:$0xff] }
  0xf9   : > { %3625 = vmatprep.mubr.f32.mxu0 %v4546_v12  ;;  %1381 = vmatpush2.msra.mxu1 %v1316_v63  ;;  %v1308_v63 = vld [vmem:[%s6311_s3 + $0x90] sm:$0xff] }
  0xfa   : > { %1050 = vmatmul.mubr.f32.gmra.mxu1 %v4878_v2  ;;  %1382 = vmatprep.subr.mxu1 %v6387_v5 }
  0xfb   : > { %1054 = vmatprep.mubr.f32.mxu1 %v4881_v20  ;;  %v5059_v38 = vpop.f32.mrf.mxu1  ;;  %1383 = vmatpush2.msra.mxu1 %v1315_v61 }
  0xfc   : > { %3626 = vmatmul.mubr.f32.gmra.mxu0 %v4561_v21  ;;  %1384 = vmatprep.subr.mxu1 %v6387_v5 }
  0xfd   : > { %3628 = vmatprep.mubr.f32.mxu0 %v6392_v3  ;;  %v5064_v43 = vpop.f32.mrf.mxu1  ;;  %1385 = vmatpush2.msra.mxu1 %v1314_v46 }
  0xfe   : > { %1055 = vmatmul.mubr.f32.gmra.mxu1 %v4892_v55  ;;  %1386 = vmatprep.subr.mxu1 %v6387_v5  ;;  %v4017_v55 = vld [vmem:[%s4192_s10 + $0x1d8] sm:$0xff] }
  0xff   : > { %1059 = vmatprep.mubr.f32.mxu1 %v4895_v33  ;;  %1387 = vmatpush2.msra.mxu1 %v1313_v50  ;;  %v1307_v50 = vld [vmem:[%s6311_s3 + $0x88] sm:$0xff] }
 0x100   : > { %3629 = vmatmul.mubr.f32.gmra.mxu0 %v6393_v36  ;;  %1388 = vmatprep.subr.mxu1 %v6387_v5  ;;  %v4013_v33 = vld [vmem:[%s4192_s10 + $0x1a8] sm:$0xff] }
 0x101   : > { %3631 = vmatprep.mubr.f32.mxu0 %v6394_v37  ;;  %v5076_v60 = vpop.f32.mrf.mxu1  ;;  %1389 = vmatpush2.msra.mxu1 %v1312_v0 }
 0x102   : > { %1060 = vmatmul.mubr.f32.gmra.mxu1 %v4906_v18  ;;  %1390 = vmatprep.subr.mxu1 %v6387_v5 }
 0x103   : > { %1402 = vmatprep.mubr.f32.mxu1 %v3983_v4  ;;  %v5083_v13 = vpop.f32.mrf.mxu1  ;;  %1391 = vmatpush2.msra.mxu1 %v1311_v15  ;;  %v3987_v4 = vld [vmem:[%s4192_s10 + $0x58] sm:$0xff] }
 0x104   : > { %3632 = vmatmul.mubr.f32.gmra.mxu0 %v6395_v53  ;;  %1392 = vmatprep.subr.mxu1 %v6387_v5 }
 0x105   : > { %3634 = vmatprep.mubr.f32.mxu0 %v6396_v57  ;;  %1393 = vmatpush2.msra.mxu1 %v1310_v26  ;;  %v1306_v26 = vld [vmem:[%s6311_s3 + $0x80] sm:$0xff] }
 0x106   : > { %1394 = vmatprep.subr.mxu1 %v6387_v5 }
 0x107   : > { %v5095_v30 = vpop.f32.mrf.mxu1  ;;  %1395 = vmatpush2.msra.mxu1 %v1309_v31 }
 0x108   : > { %3635 = vmatmul.mubr.f32.gmra.mxu0 %v6397_v19  ;;  %1396 = vmatprep.subr.mxu1 %v6387_v5 }
 0x109   : > { %3669 = vmatprep.mubr.f32.mxu0 %v3984_v23  ;;  %v5109_v46 = vpop.f32.mrf.mxu1  ;;  %1397 = vmatpush2.msra.mxu1 %v1308_v63  ;;  %v3988_v23 = vld [vmem:[%s4192_s10 + $0x70] sm:$0xff] }
 0x10a   : > { %1398 = vmatprep.subr.mxu1 %v6387_v5 }
 0x10b   : > { %1399 = vmatpush2.msra.mxu1 %v1307_v50 }
 0x10c   : > { %v5101_v40 = vpop.f32.mrf.mxu0  ;;  %3670 = vmatmul.mubr.f32.vlgmr.msra.gmra.mxu0 %v3985_v48  ;;  %1400 = vmatprep.subr.mxu1 %v6387_v5 }
 0x10d   : > { %3672 = vmatprep.mubr.f32.mxu0 %v3986_v47  ;;  %1401 = vmatpush2.msra.mxu1 %v1306_v26  ;;  %v3993_v26 = vld [vmem:[%s4192_s10 + $0xb8] sm:$0xff] }
 0x10e   : > { %v410_v61 = vpop.f32.mrf.mxu0  ;;  %3717 = vmatprep.subr.mxu1 %v6387_v5  ;;  %v4001_v5 = vld [vmem:[%s4192_s10 + $0x118] sm:$0xff] }
 0x10f   : > { %v5124_v48 = vpop.f32.mrf.mxu1  ;;  %v3990_v61 = vld [vmem:[%s4192_s10 + $0xa0] sm:$0xff] }
 0x110   : > { %v413_v0 = vpop.f32.mrf.mxu0  ;;  %3673 = vmatmul.mubr.f32.gmra.mxu0 %v3987_v4  ;;  %v3991_v4 = vld [vmem:[%s4192_s10] sm:$0xff] }
 0x111   : > { %v5117_v15 = vadd.f32 %v5022_v42, %v413_v0  ;;  %3675 = vmatprep.mubr.f32.mxu0 %v3988_v23  ;;  %v3989_v42 = vld [vmem:[%s4192_s10 + $0x88] sm:$0xff]  ;;  %v5132_v0 = vpop.f32.mrf.mxu1  ;;  %1403 = vmatmul.mubr.f32.vlgmr.msra.gmra.mxu1 %v3991_v4  ;;  %v3992_v23 = vld [vmem:[%s4192_s10 + $0x20] sm:$0xff] }
 0x112   : > { %v415_v31 = vpop.f32.mrf.mxu0  ;;  %1407 = vmatprep.mubr.f32.mxu1 %v3992_v23  ;;  %v3996_v23 = vld [vmem:[%s4192_s10 + $0x38] sm:$0xff] }
 0x113   : > { %6398 = vst [vmem:[#allocation4_spill] sm:$0xff] %v5117_v15  ;;  %v3997_v15 = vld [vmem:[%s4192_s10 + $0xe8] sm:$0xff] }
 0x114   : > { %v418_v47 = vpop.f32.mrf.mxu0  ;;  %3676 = vmatmul.mubr.f32.gmra.mxu0 %v3989_v42  ;;  %v3994_v42 = vld [vmem:[%s4192_s10 + $0xd0] sm:$0xff] }
 0x115   : > { %v5129_v63 = vadd.f32 %v5049_v11, %v418_v47  ;;  %3678 = vmatprep.mubr.f32.mxu0 %v3990_v61  ;;  %v3995_v61 = vld [vmem:[%s4192_s10 + $0x18] sm:$0xff] }
 0x116   : > { %v420_v50 = vpop.f32.mrf.mxu0  ;;  %v5138_v11 = vpop.f32.mrf.mxu1  ;;  %1408 = vmatmul.mubr.f32.gmra.mxu1 %v3995_v61 }
 0x117   : > { %6399 = vst [vmem:[#allocation7_spill] sm:$0xff] %v5129_v63  ;;  %1412 = vmatprep.mubr.f32.mxu1 %v3996_v23 }
 0x118   : > { %v423_v31 = vpop.f32.mrf.mxu0  ;;  %3679 = vmatmul.mubr.f32.gmra.mxu0 %v3993_v26  ;;  %v5145_v50 = vpop.f32.mrf.mxu1 }
 0x119   : > { %v5141_v47 = vadd.f32 %v5042_v58, %v423_v31  ;;  %3681 = vmatprep.mubr.f32.mxu0 %v3994_v42  ;;  %v3998_v58 = vld [vmem:[%s4192_s10 + $0x100] sm:$0xff]  ;;  %v3999_v42 = vld [vmem:[%s4192_s10 + $0x30] sm:$0xff] }
 0x11a   : > { %v425_v4 = vpop.f32.mrf.mxu0  ;;  %1413 = vmatmul.mubr.f32.gmra.mxu1 %v3999_v42 }
 0x11b   : > { %6400 = vst [vmem:[#allocation8_spill] sm:$0xff] %v5141_v47  ;;  %v5153_v31 = vpop.f32.mrf.mxu1  ;;  %v4000_v4 = vld [vmem:[%s4192_s10 + $0x50] sm:$0xff] }
 0x11c   : > { %v428_v63 = vpop.f32.mrf.mxu0  ;;  %3682 = vmatmul.mubr.f32.gmra.mxu0 %v3997_v15  ;;  %1417 = vmatprep.mubr.f32.mxu1 %v4000_v4  ;;  %v4002_v15 = vld [vmem:[%s4192_s10 + $0x130] sm:$0xff] }
 0x11d   : > { %v5150_v26 = vadd.f32 %v5064_v43, %v428_v63  ;;  %3684 = vmatprep.mubr.f32.mxu0 %v3998_v58  ;;  %v5157_v23 = vpop.f32.mrf.mxu1  ;;  %v4003_v63 = vld [vmem:[%s4192_s10 + $0x48] sm:$0xff] }
 0x11e   : > { %v430_v61 = vpop.f32.mrf.mxu0  ;;  %1418 = vmatmul.mubr.f32.gmra.mxu1 %v4003_v63 }
 0x11f   : > { %6401 = vst [vmem:[#allocation11_spill] sm:$0xff] %v5150_v26  ;;  %v4004_v61 = vld [vmem:[%s4192_s10 + $0x68] sm:$0xff] }
 0x120   : > { %v433_v47 = vpop.f32.mrf.mxu0  ;;  %3685 = vmatmul.mubr.f32.gmra.mxu0 %v4001_v5  ;;  %v5165_v42 = vpop.f32.mrf.mxu1  ;;  %1422 = vmatprep.mubr.f32.mxu1 %v4004_v61  ;;  %v4005_v26 = vld [vmem:[%s4192_s10 + $0x148] sm:$0xff] }
 0x121   : > { %v5161_v43 = vadd.f32 %v5059_v38, %v433_v47  ;;  %3687 = vmatprep.mubr.f32.mxu0 %v4002_v15  ;;  %v4006_v47 = vld [vmem:[%s4192_s10 + $0x160] sm:$0xff] }
 0x122   : > { %v435_v58 = vpop.f32.mrf.mxu0  ;;  %v5169_v5 = vpop.f32.mrf.mxu1  ;;  %v4007_v15 = vld [vmem:[%s4192_s10 + $0x60] sm:$0xff] }
 0x123   : > { %6402 = vst [vmem:[#allocation12_spill] sm:$0xff] %v5161_v43  ;;  %1423 = vmatmul.mubr.f32.gmra.mxu1 %v4007_v15  ;;  %v4008_v43 = vld [vmem:[%s4192_s10 + $0x80] sm:$0xff] }
 0x124   : > { %v438_v4 = vpop.f32.mrf.mxu0  ;;  %3688 = vmatmul.mubr.f32.gmra.mxu0 %v4005_v26  ;;  %1427 = vmatprep.mubr.f32.mxu1 %v4008_v43  ;;  %v4009_v26 = vld [vmem:[%s4192_s10 + $0x178] sm:$0xff] }
 0x125   : > { %v5172_v38 = vadd.f32 %v5083_v13, %v438_v4  ;;  %3690 = vmatprep.mubr.f32.mxu0 %v4006_v47  ;;  %v5176_v58 = vpop.f32.mrf.mxu1  ;;  %v4010_v4 = vld [vmem:[%s4192_s10 + $0x190] sm:$0xff]  ;;  %v4011_v47 = vld [vmem:[%s4192_s10 + $0x78] sm:$0xff] }
 0x126   : > { %v440_v63 = vpop.f32.mrf.mxu0 }
 0x127   : > { %6403 = vst [vmem:[#allocation15_spill] sm:$0xff] %v5172_v38  ;;  %v5180_v18 = vpop.f32.mrf.mxu1  ;;  %1428 = vmatmul.mubr.f32.gmra.mxu1 %v4011_v47  ;;  %v4012_v63 = vld [vmem:[%s4192_s10 + $0x98] sm:$0xff] }
 0x128   : > { %v443_v61 = vpop.f32.mrf.mxu0  ;;  %3691 = vmatmul.mubr.f32.gmra.mxu0 %v4009_v26  ;;  %1432 = vmatprep.mubr.f32.mxu1 %v4012_v63 }
 0x129   : > { %v5183_v13 = vadd.f32 %v5076_v60, %v443_v61  ;;  %3693 = vmatprep.mubr.f32.mxu0 %v4010_v4  ;;  %v4014_v60 = vld [vmem:[%s4192_s10 + $0x1c0] sm:$0xff]  ;;  %v4015_v4 = vld [vmem:[%s4192_s10 + $0x90] sm:$0xff] }
 0x12a   : > { %v445_v15 = vpop.f32.mrf.mxu0  ;;  %v5188_v43 = vpop.f32.mrf.mxu1 }
 0x12b   : > { %6404 = vst [vmem:[#allocation22_spill] sm:$0xff] %v5183_v13  ;;  %1433 = vmatmul.mubr.f32.gmra.mxu1 %v4015_v4  ;;  %v4016_v15 = vld [vmem:[%s4192_s10 + $0xb0] sm:$0xff] }
 0x12c   : > { %v448_v38 = vpop.f32.mrf.mxu0  ;;  %3694 = vmatmul.mubr.f32.gmra.mxu0 %v4013_v33  ;;  %v5195_v61 = vpop.f32.mrf.mxu1  ;;  %1437 = vmatprep.mubr.f32.mxu1 %v4016_v15 }
 0x12d   : > { %v5192_v26 = vadd.f32 %v5109_v46, %v448_v38  ;;  %3696 = vmatprep.mubr.f32.mxu0 %v4014_v60  ;;  %v4018_v46 = vld [vmem:[%s4192_s10 + $0x1f0] sm:$0xff]  ;;  %v4019_v60 = vld [vmem:[%s4192_s10 + $0xa8] sm:$0xff] }
 0x12e   : > { %v450_v47 = vpop.f32.mrf.mxu0  ;;  %v5199_v63 = vpop.f32.mrf.mxu1 }
 0x12f   : > { %6405 = vst [vmem:[#allocation23_spill] sm:$0xff] %v5192_v26  ;;  %1438 = vmatmul.mubr.f32.gmra.mxu1 %v4019_v60  ;;  %v4020_v47 = vld [vmem:[%s4192_s10 + $0xc8] sm:$0xff] }
 0x130   : > { %v453_v13 = vpop.f32.mrf.mxu0  ;;  %3697 = vmatmul.mubr.f32.gmra.mxu0 %v4017_v55  ;;  %v5206_v38 = vpop.f32.mrf.mxu1  ;;  %1442 = vmatprep.mubr.f32.mxu1 %v4020_v47  ;;  %v4021_v26 = vld [vmem:[%s4192_s10 + $0x208] sm:$0xff] }
 0x131   : > { %v5203_v33 = vadd.f32 %v5095_v30, %v453_v13  ;;  %3699 = vmatprep.mubr.f32.mxu0 %v4018_v46  ;;  %v4022_v30 = vld [vmem:[%s4192_s10 + $0x220] sm:$0xff] }
 0x132   : > { %v455_v4 = vpop.f32.mrf.mxu0  ;;  %v5211_v20 = vpop.f32.mrf.mxu1  ;;  %v4023_v13 = vld [vmem:[%s4192_s10 + $0xc0] sm:$0xff] }
 0x133   : > { %6406 = vst [vmem:[#allocation24_spill] sm:$0xff] %v5203_v33  ;;  %1443 = vmatmul.mubr.f32.gmra.mxu1 %v4023_v13  ;;  %v4024_v4 = vld [vmem:[%s4192_s10 + $0xe0] sm:$0xff]  ;;  %v4025_v33 = vld [vmem:[%s4192_s10 + $0x238] sm:$0xff] }
 0x134   : > { %v458_v15 = vpop.f32.mrf.mxu0  ;;  %3700 = vmatmul.mubr.f32.gmra.mxu0 %v4021_v26  ;;  %v5218_v60 = vpop.f32.mrf.mxu1  ;;  %1447 = vmatprep.mubr.f32.mxu1 %v4024_v4 }
 0x135   : > { %v5214_v55 = vadd.f32 %v5132_v0, %v458_v15  ;;  %3702 = vmatprep.mubr.f32.mxu0 %v4022_v30  ;;  %v4026_v15 = vld [vmem:[%s4192_s10 + $0xd8] sm:$0xff] }
 0x136   : > { %v460_v46 = vpop.f32.mrf.mxu0 }
 0x137   : > { %6407 = vst [vmem:[#allocation25_spill] sm:$0xff] %v5214_v55  ;;  %v5226_v0 = vpop.f32.mrf.mxu1  ;;  %1448 = vmatmul.mubr.f32.gmra.mxu1 %v4026_v15  ;;  %v4027_v55 = vld [vmem:[%s4192_s10 + $0xf8] sm:$0xff]  ;;  %s3236_s10 = sshll.u32 %s6480_s16, 8 }
 0x138   : > { %v463_v47 = vpop.f32.mrf.mxu0  ;;  %3703 = vmatmul.mubr.f32.gmra.mxu0 %v4025_v33  ;;  %1452 = vmatprep.mubr.f32.mxu1 %v4027_v55  ;;  %s6197_s6 = scalar_lea.vmem %s6312_s4, %s3236_s10 }
 0x139   : > { %v5223_v26 = vadd.f32 %v5124_v48, %v463_v47  ;;  %3705 = vmatprep.mubr.f32.mxu0 %v4546_v12  ;;  %v5230_v13 = vpop.f32.mrf.mxu1  ;;  %v6410_v48 = vld [vmem:[#allocation2_spill] sm:$0xff]  ;;  %v6412_v47 = vld [vmem:[#allocation3_spill] sm:$0xff] }
 0x13a   : > { %v465_v30 = vpop.f32.mrf.mxu0 }
 0x13b   : > { %6408 = vst [vmem:[#allocation26_spill] sm:$0xff] %v5223_v26  ;;  %1453 = vmatmul.mubr.f32.gmra.mxu1 %v6410_v48 }
 0x13c   : > { %v468_v46 = vpop.f32.mrf.mxu0  ;;  %3706 = vmatmul.mubr.f32.gmra.mxu0 %v4561_v21  ;;  %v5238_v33 = vpop.f32.mrf.mxu1  ;;  %1457 = vmatprep.mubr.f32.mxu1 %v6412_v47  ;;  %v6414_v21 = vld [vmem:[#allocation5_spill] sm:$0xff]  ;;  %v6419_v47 = vld [vmem:[#allocation10_spill] sm:$0xff] }
 0x13d   : > { %v5234_v4 = vadd.f32 %v5145_v50, %v468_v46  ;;  %3708 = vmatprep.mubr.f32.mxu0 %v6392_v3  ;;  %6411 = vst [vmem:[#allocation2_spill] sm:$0xff] %v5238_v33  ;;  %v6416_v46 = vld [vmem:[#allocation6_spill] sm:$0xff] }
 0x13e   : > { %v470_v12 = vpop.f32.mrf.mxu0  ;;  %v5242_v55 = vpop.f32.mrf.mxu1 }
 0x13f   : > { %6409 = vst [vmem:[#allocation27_spill] sm:$0xff] %v5234_v4  ;;  %1458 = vmatmul.mubr.f32.gmra.mxu1 %v6414_v21 }
 0x140   : > { %v473_v15 = vpop.f32.mrf.mxu0  ;;  %3709 = vmatmul.mubr.f32.gmra.mxu0 %v6393_v36  ;;  %1462 = vmatprep.mubr.f32.mxu1 %v6416_v46 }
 0x141   : > { %v5245_v30 = vadd.f32 %v5138_v11, %v473_v15  ;;  %3711 = vmatprep.mubr.f32.mxu0 %v6394_v37  ;;  %v5249_v50 = vpop.f32.mrf.mxu1  ;;  %v6418_v11 = vld [vmem:[#allocation9_spill] sm:$0xff]  ;;  %v5263_v15 = vadd.f32 %v5032_v49, %v5101_v40 }
 0x142   : > { %v475_v3 = vpop.f32.mrf.mxu0  ;;  %6415 = vst [vmem:[#allocation5_spill] sm:$0xff] %v5249_v50 }
 0x143   : > { %6413 = vst [vmem:[#allocation3_spill] sm:$0xff] %v5245_v30  ;;  %v5253_v12 = vpop.f32.mrf.mxu1  ;;  %1463 = vmatmul.mubr.f32.gmra.mxu1 %v6418_v11  ;;  %v6421_v3 = vld [vmem:[#allocation13_spill] sm:$0xff] }
 0x144   : > { %v478_v48 = vpop.f32.mrf.mxu0  ;;  %3712 = vmatmul.mubr.f32.gmra.mxu0 %v6395_v53  ;;  %1467 = vmatprep.mubr.f32.mxu1 %v6419_v47 }
 0x145   : > { %v5256_v36 = vadd.f32 %v5157_v23, %v478_v48  ;;  %3714 = vmatprep.mubr.f32.mxu0 %v6396_v57  ;;  %v6422_v48 = vld [vmem:[#allocation14_spill] sm:$0xff] }
 0x146   : > { %v480_v37 = vpop.f32.mrf.mxu0  ;;  %v5265_v21 = vpop.f32.mrf.mxu1 }
 0x147   : > { %6417 = vst [vmem:[#allocation6_spill] sm:$0xff] %v5256_v36  ;;  %1468 = vmatmul.mubr.f32.gmra.mxu1 %v6421_v3 }
 0x148   : > { %v483_v53 = vpop.f32.mrf.mxu0  ;;  %3715 = vmatmul.mubr.f32.gmra.mxu0 %v6397_v19  ;;  %v908_v57 = vpop.f32.mrf.mxu1  ;;  %1472 = vmatprep.mubr.f32.mxu1 %v6422_v48  ;;  %v6426_v48 = vld [vmem:[#allocation17_spill] sm:$0xff] }
 0x149   : > { %v5269_v23 = vadd.f32 %v5153_v31, %v483_v53  ;;  %3413 = vmatprep.mubr.msk.f32.mxu0 %vm1788_vm0, %v5263_v15  ;;  %v6424_v31 = vld [vmem:[#allocation16_spill] sm:$0xff] }
 0x14a   : > { %v485_v46 = vpop.f32.mrf.mxu0  ;;  %v5275_v11 = vpop.f32.mrf.mxu1 }
 0x14b   : > { %6420 = vst [vmem:[#allocation9_spill] sm:$0xff] %v5269_v23  ;;  %1473 = vmatmul.mubr.f32.gmra.mxu1 %v4646_v9 }
 0x14c   : > { %v488_v49 = vpop.f32.mrf.mxu0  ;;  %v913_v37 = vpop.f32.mrf.mxu1  ;;  %1477 = vmatprep.mubr.f32.mxu1 %v6424_v31 }
 0x14d   : > { %v5278_v40 = vadd.f32 %v5169_v5, %v488_v49 }
 0x14e   : > { %v490_v19 = vpop.f32.mrf.mxu0  ;;  %v5282_v47 = vpop.f32.mrf.mxu1 }
 0x14f   : > { %6423 = vst [vmem:[#allocation10_spill] sm:$0xff] %v5278_v40  ;;  %1478 = vmatmul.mubr.f32.gmra.mxu1 %v4666_v56 }
 0x150   : > { %v493_v53 = vpop.f32.mrf.mxu0  ;;  %v918_v3 = vpop.f32.mrf.mxu1  ;;  %1482 = vmatprep.mubr.f32.mxu1 %v6426_v48 }
 0x151   : > { %v5285_v57 = vadd.f32 %v5165_v42, %v493_v53 }
 0x152   : > { %v495_v46 = vpop.f32.mrf.mxu0  ;;  %v5289_v5 = vpop.f32.mrf.mxu1 }
 0x153   : > { %6425 = vst [vmem:[#allocation13_spill] sm:$0xff] %v5285_v57  ;;  %1483 = vmatmul.mubr.f32.gmra.mxu1 %v4683_v28 }
 0x154   : > { %v498_v49 = vpop.f32.mrf.mxu0  ;;  %v923_v37 = vpop.f32.mrf.mxu1  ;;  %1487 = vmatprep.mubr.f32.mxu1 %v4686_v1 }
 0x155   : > { %v5292_v9 = vadd.f32 %v5180_v18, %v498_v49 }
 0x156   : > { %v500_v19 = vpop.f32.mrf.mxu0  ;;  %v5296_v42 = vpop.f32.mrf.mxu1 }
 0x157   : > { %6427 = vst [vmem:[#allocation14_spill] sm:$0xff] %v5292_v9  ;;  %1488 = vmatmul.mubr.f32.gmra.mxu1 %v4697_v52 }
 0x158   : > { %v503_v31 = vpop.f32.mrf.mxu0  ;;  %v928_v53 = vpop.f32.mrf.mxu1  ;;  %1492 = vmatprep.mubr.f32.mxu1 %v4700_v39 }
 0x159   : > { %v5299_v56 = vadd.f32 %v5176_v58, %v503_v31 }
 0x15a   : > { %v505_v3 = vpop.f32.mrf.mxu0  ;;  %v5303_v18 = vpop.f32.mrf.mxu1 }
 0x15b   : > { %6428 = vst [vmem:[#allocation16_spill] sm:$0xff] %v5299_v56  ;;  %1493 = vmatmul.mubr.f32.gmra.mxu1 %v4713_v14 }
 0x15c   : > { %v508_v46 = vpop.f32.mrf.mxu0  ;;  %v933_v48 = vpop.f32.mrf.mxu1  ;;  %1497 = vmatprep.mubr.f32.mxu1 %v4719_v7 }
 0x15d   : > { %v5306_v28 = vadd.f32 %v5195_v61, %v508_v46 }
 0x15e   : > { %v510_v1 = vpop.f32.mrf.mxu0  ;;  %v5310_v58 = vpop.f32.mrf.mxu1 }
 0x15f   : > { %6429 = vst [vmem:[#allocation17_spill] sm:$0xff] %v5306_v28  ;;  %1498 = vmatmul.mubr.f32.gmra.mxu1 %v4729_v32 }
 0x160   : > { %v513_v49 = vpop.f32.mrf.mxu0  ;;  %v938_v37 = vpop.f32.mrf.mxu1  ;;  %1502 = vmatprep.mubr.f32.mxu1 %v4732_v10 }
 0x161   : > { %v5313_v52 = vadd.f32 %v5188_v43, %v513_v49 }
 0x162   : > { %v515_v39 = vpop.f32.mrf.mxu0  ;;  %v5317_v61 = vpop.f32.mrf.mxu1 }
 0x163   : > { %6430 = vst [vmem:[#allocation28_spill] sm:$0xff] %v5313_v52  ;;  %1503 = vmatmul.mubr.f32.gmra.mxu1 %v4751_v16 }
 0x164   : > { %v518_v19 = vpop.f32.mrf.mxu0  ;;  %v943_v31 = vpop.f32.mrf.mxu1  ;;  %1507 = vmatprep.mubr.f32.mxu1 %v4754_v27 }
 0x165   : > { %v5320_v14 = vadd.f32 %v5206_v38, %v518_v19 }
 0x166   : > { %v520_v7 = vpop.f32.mrf.mxu0  ;;  %v5324_v43 = vpop.f32.mrf.mxu1 }
 0x167   : > { %6431 = vst [vmem:[#allocation29_spill] sm:$0xff] %v5320_v14  ;;  %1508 = vmatmul.mubr.f32.gmra.mxu1 %v4765_v17 }
 0x168   : > { %v523_v53 = vpop.f32.mrf.mxu0  ;;  %v948_v3 = vpop.f32.mrf.mxu1  ;;  %1512 = vmatprep.mubr.f32.mxu1 %v4769_v22 }
 0x169   : > { %v5327_v32 = vadd.f32 %v5199_v63, %v523_v53 }
 0x16a   : > { %v525_v10 = vpop.f32.mrf.mxu0  ;;  %v5331_v38 = vpop.f32.mrf.mxu1 }
 0x16b   : > { %6432 = vst [vmem:[#allocation30_spill] sm:$0xff] %v5327_v32  ;;  %1513 = vmatmul.mubr.f32.gmra.mxu1 %v4780_v35 }
 0x16c   : > { %v528_v46 = vpop.f32.mrf.mxu0  ;;  %v953_v48 = vpop.f32.mrf.mxu1  ;;  %1517 = vmatprep.mubr.f32.mxu1 %v4783_v24 }
 0x16d   : > { %v5334_v16 = vadd.f32 %v5218_v60, %v528_v46 }
 0x16e   : > { %v530_v27 = vpop.f32.mrf.mxu0  ;;  %v5338_v63 = vpop.f32.mrf.mxu1 }
 0x16f   : > { %6433 = vst [vmem:[#allocation31_spill] sm:$0xff] %v5334_v16  ;;  %1518 = vmatmul.mubr.f32.gmra.mxu1 %v4794_v45 }
 0x170   : > { %v533_v1 = vpop.f32.mrf.mxu0  ;;  %v958_v49 = vpop.f32.mrf.mxu1  ;;  %1522 = vmatprep.mubr.f32.mxu1 %v4797_v29 }
 0x171   : > { %v5341_v17 = vadd.f32 %v5211_v20, %v533_v1  ;;  %v6441_v1 = vld [vmem:[#allocation18_spill] sm:$0xff] }
 0x172   : > { %v535_v22 = vpop.f32.mrf.mxu0  ;;  %v5345_v60 = vpop.f32.mrf.mxu1 }
 0x173   : > { %6434 = vst [vmem:[#allocation32_spill] sm:$0xff] %v5341_v17  ;;  %1523 = vmatmul.mubr.f32.gmra.mxu1 %v4808_v51 }
 0x174   : > { %v538_v37 = vpop.f32.mrf.mxu0  ;;  %v963_v39 = vpop.f32.mrf.mxu1  ;;  %1527 = vmatprep.mubr.f32.mxu1 %v4811_v54 }
 0x175   : > { %v5348_v35 = vadd.f32 %v5230_v13, %v538_v37 }
 0x176   : > { %v540_v24 = vpop.f32.mrf.mxu0  ;;  %v5352_v20 = vpop.f32.mrf.mxu1 }
 0x177   : > { %6435 = vst [vmem:[#allocation33_spill] sm:$0xff] %v5348_v35  ;;  %1528 = vmatmul.mubr.f32.gmra.mxu1 %v4822_v59 }
 0x178   : > { %v543_v19 = vpop.f32.mrf.mxu0  ;;  %v968_v31 = vpop.f32.mrf.mxu1  ;;  %1532 = vmatprep.mubr.f32.mxu1 %v4825_v62 }
 0x179   : > { %v5355_v45 = vadd.f32 %v5226_v0, %v543_v19 }
 0x17a   : > { %v545_v29 = vpop.f32.mrf.mxu0  ;;  %v5359_v13 = vpop.f32.mrf.mxu1 }
 0x17b   : > { %6436 = vst [vmem:[#allocation34_spill] sm:$0xff] %v5355_v45  ;;  %1533 = vmatmul.mubr.f32.gmra.mxu1 %v4836_v6  ;;  %v6444_v29 = vld [vmem:[#allocation21_spill] sm:$0xff] }
 0x17c   : > { %v548_v7 = vpop.f32.mrf.mxu0  ;;  %v973_v53 = vpop.f32.mrf.mxu1  ;;  %1537 = vmatprep.mubr.f32.mxu1 %v4839_v8 }
 0x17d   : > { %v5362_v51 = vadd.f32 %v5242_v55, %v548_v7 }
 0x17e   : > { %v550_v54 = vpop.f32.mrf.mxu0  ;;  %v5366_v0 = vpop.f32.mrf.mxu1 }
 0x17f   : > { %6437 = vst [vmem:[#allocation35_spill] sm:$0xff] %v5362_v51  ;;  %1538 = vmatmul.mubr.f32.gmra.mxu1 %v4850_v25 }
 0x180   : > { %v5368_v3 = vpop.f32.mrf.mxu0  ;;  %v978_v59 = vpop.f32.mrf.mxu1  ;;  %1542 = vmatprep.mubr.f32.mxu1 %v4853_v34 }
 0x181   : > { %6438 = vst [vmem:[#allocation36_spill] sm:$0xff] %v5368_v3 }
 0x182   : > { %v555_v62 = vpop.f32.mrf.mxu0  ;;  %v5372_v10 = vpop.f32.mrf.mxu1 }
 0x183   : > { %1543 = vmatmul.mubr.f32.gmra.mxu1 %v4864_v41  ;;  %v6442_v41 = vld [vmem:[#allocation19_spill] sm:$0xff] }
 0x184   : > { %v558_v55 = vpop.f32.mrf.mxu0  ;;  %v983_v6 = vpop.f32.mrf.mxu1  ;;  %1547 = vmatprep.mubr.f32.mxu1 %v4867_v44  ;;  %v6443_v44 = vld [vmem:[#allocation20_spill] sm:$0xff] }
 0x185   : > { %v5375_v46 = vadd.f32 %v5253_v12, %v558_v55 }
 0x186   : > { %v560_v8 = vpop.f32.mrf.mxu0  ;;  %v5379_v48 = vpop.f32.mrf.mxu1 }
 0x187   : > { %6439 = vst [vmem:[#allocation37_spill] sm:$0xff] %v5375_v46  ;;  %1548 = vmatmul.mubr.f32.gmra.mxu1 %v4878_v2 }
 0x188   : > { %v5381_v27 = vpop.f32.mrf.mxu0  ;;  %v988_v25 = vpop.f32.mrf.mxu1  ;;  %1552 = vmatprep.mubr.f32.mxu1 %v6441_v1 }
 0x189   : > { %6440 = vst [vmem:[#allocation38_spill] sm:$0xff] %v5381_v27 }
 0x18a   : > { %v565_v34 = vpop.f32.mrf.mxu0  ;;  %v991_v49 = vpop.f32.mrf.mxu1 }
 0x18b   : > { %1553 = vmatmul.mubr.f32.gmra.mxu1 %v6442_v41 }
 0x18c   : > { %v3591_v22 = vpop.f32.mrf.mxu0  ;;  %v993_v37 = vpop.f32.mrf.mxu1  ;;  %1557 = vmatprep.mubr.f32.mxu1 %v6443_v44 }
 0x18d   : > { %v5386_v12 = vadd.f32 %v3591_v22, %v5275_v11 }
 0x18e   : > { %v5389_v39 = vpop.f32.mrf.mxu0  ;;  %v5392_v24 = vpop.f32.mrf.mxu1 }
 0x18f   : > { %1558 = vmatmul.mubr.f32.gmra.mxu1 %v6444_v29 }
 0x190   : > { %v3594_v19 = vpop.f32.mrf.mxu0  ;;  %v998_v31 = vpop.f32.mrf.mxu1 }
 0x191   : > { %v5395_v2 = vadd.f32 %v3594_v19, %v5289_v5 }
 0x192   : > { %v5398_v7 = vpop.f32.mrf.mxu0  ;;  %v1001_v11 = vpop.f32.mrf.mxu1 }
 0x194   : > { %v3597_v53 = vpop.f32.mrf.mxu0  ;;  %v1003_v59 = vpop.f32.mrf.mxu1 }
 0x195   : > { %v5401_v54 = vadd.f32 %v3597_v53, %v5303_v18 }
 0x196   : > { %v5403_v62 = vpop.f32.mrf.mxu0  ;;  %v5405_v55 = vpop.f32.mrf.mxu1 }
 0x198   : > { %v3600_v6 = vpop.f32.mrf.mxu0  ;;  %v1008_v5 = vpop.f32.mrf.mxu1 }
 0x199   : > { %v5408_v8 = vadd.f32 %v3600_v6, %v5317_v61 }
 0x19a   : > { %v5410_v25 = vpop.f32.mrf.mxu0  ;;  %v5412_v34 = vpop.f32.mrf.mxu1 }
 0x19c   : > { %v3603_v1 = vpop.f32.mrf.mxu0  ;;  %v1013_v18 = vpop.f32.mrf.mxu1 }
 0x19d   : > { %v5415_v22 = vadd.f32 %v3603_v1, %v5331_v38 }
 0x19e   : > { %v5417_v37 = vpop.f32.mrf.mxu0  ;;  %v5419_v41 = vpop.f32.mrf.mxu1 }
 0x1a0   : > { %v5421_v44 = vpop.f32.mrf.mxu0  ;;  %v1018_v19 = vpop.f32.mrf.mxu1 }
 0x1a2   : > { %v5423_v31 = vpop.f32.mrf.mxu0  ;;  %v5425_v61 = vpop.f32.mrf.mxu1 }
 0x1a4   : > { %v3609_v29 = vpop.f32.mrf.mxu0  ;;  %v1023_v53 = vpop.f32.mrf.mxu1 }
 0x1a6   : > { %v1191_v59 = vpop.f32.mrf.mxu0  ;;  %v5427_v6 = vpop.f32.mrf.mxu1 }
 0x1a8   : > { %v3612_v5 = vpop.f32.mrf.mxu0  ;;  %v1028_v38 = vpop.f32.mrf.mxu1 }
 0x1a9   : > { %v1207_v4 = vadd.f32 %v3612_v5, %v5372_v10 }
 0x1aa   : > { %v1201_v1 = vpop.f32.mrf.mxu0  ;;  %v5429_v18 = vpop.f32.mrf.mxu1 }
 0x1ac   : > { %v3615_v50 = vpop.f32.mrf.mxu0  ;;  %v1033_v46 = vpop.f32.mrf.mxu1 }
 0x1ad   : > { %v5431_v27 = vadd.f32 %v3615_v50, %v991_v49 }
 0x1ae   : > { %v5433_v33 = vpop.f32.mrf.mxu0  ;;  %v1036_v19 = vpop.f32.mrf.mxu1 }
 0x1b0   : > { %v3618_v3 = vpop.f32.mrf.mxu0  ;;  %v1038_v45 = vpop.f32.mrf.mxu1 }
 0x1b1   : > { %v5435_v51 = vadd.f32 %v3618_v3, %v1001_v11 }
 0x1b2   : > { %v5437_v53 = vpop.f32.mrf.mxu0  ;;  %v1041_v35 = vpop.f32.mrf.mxu1 }
 0x1b4   : > { %v5439_v17 = vpop.f32.mrf.mxu0  ;;  %v1043_v38 = vpop.f32.mrf.mxu1 }
 0x1b6   : > { %v5441_v16 = vpop.f32.mrf.mxu0  ;;  %v1046_v32 = vpop.f32.mrf.mxu1 }
 0x1b8   : > { %v5443_v14 = vpop.f32.mrf.mxu0  ;;  %v1048_v50 = vpop.f32.mrf.mxu1 }
 0x1ba   : > { %v5445_v46 = vpop.f32.mrf.mxu0  ;;  %v1051_v49 = vpop.f32.mrf.mxu1 }
 0x1bc   : > { %v3627_v52 = vpop.f32.mrf.mxu0  ;;  %v1053_v28 = vpop.f32.mrf.mxu1 }
 0x1bd   : > { %v1202_v28 = vadd.f32 %v1201_v1, %v5366_v0 }
 0x1be   : > { %v1251_v3 = vpop.f32.mrf.mxu0  ;;  %v1056_v11 = vpop.f32.mrf.mxu1 }
 0x1c0   : > { %v3630_v45 = vpop.f32.mrf.mxu0  ;;  %v1058_v56 = vpop.f32.mrf.mxu1 }
 0x1c1   : > { %v1267_v0 = vadd.f32 %v3630_v45, %v1041_v35 }
 0x1c2   : > { %v1261_v9 = vpop.f32.mrf.mxu0  ;;  %v1061_v57 = vpop.f32.mrf.mxu1 }
 0x1c4   : > { %v3633_v40 = vpop.f32.mrf.mxu0  ;;  %v1063_v23 = vpop.f32.mrf.mxu1 }
 0x1c5   : > { %v1277_v56 = vadd.f32 %v3633_v40, %v1051_v49 }
 0x1c6   : > { %v1271_v38 = vpop.f32.mrf.mxu0 }
 0x1c8   : > { %v3636_v36 = vpop.f32.mrf.mxu0 }
 0x1c9   : > { %v1287_v30 = vadd.f32 %v3636_v36, %v1061_v57  ;;  %v1197_v36 = vadd.f32 %v3609_v29, %v5359_v13  ;;  %v1272_v57 = vadd.f32 %v1271_v38, %v1046_v32  ;;  %v1187_v32 = vadd.f32 %v5421_v44, %v5345_v60 }
 0x1ca   : > { %v1281_v26 = vpop.f32.mrf.mxu0  ;;  %v1262_v29 = vadd.f32 %v1261_v9, %v1036_v19  ;;  %v1252_v44 = vadd.f32 %v1251_v3, %v5427_v6  ;;  %v1242_v3 = vadd.f32 %v5445_v46, %v5419_v41  ;;  %v1232_v46 = vadd.f32 %v5441_v16, %v5405_v55 }
 0x1cb   : > { %v1282_v50 = vadd.f32 %v1281_v26, %v1056_v11  ;;  %3381 = vmatprep.subr.msk.mxu0 %vm1788_vm0, %v1287_v30  ;;  %v1257_v11 = vadd.f32 %v3627_v52, %v5429_v18  ;;  %v1247_v18 = vadd.f32 %v5443_v14, %v5425_v61  ;;  %v1237_v61 = vadd.f32 %v5439_v17, %v5412_v34 }
 0x1cc   : > { %3382 = vmatpush3.xpose.msk.msra.mxu0 %vm1788_vm0, %v1207_v4  ;;  %v3671_v23 = vpop.f32.mrf.mxu0  ;;  %v1192_v4 = vadd.f32 %v1191_v59, %v5352_v20  ;;  %v1182_v59 = vadd.f32 %v5423_v31, %v5338_v63  ;;  %v1172_v31 = vadd.f32 %v5417_v37, %v5324_v43  ;;  %v1162_v37 = vadd.f32 %v5410_v25, %v5310_v58 }
 0x1cd   : > { %3383 = vmatprep.subr.msk.mxu0 %vm1788_vm0, %v1282_v50  ;;  %v1152_v25 = vadd.f32 %v5403_v62, %v5296_v42  ;;  %v1142_v62 = vadd.f32 %v5398_v7, %v5282_v47  ;;  %v1132_v47 = vadd.f32 %v5389_v39, %v5265_v21  ;;  %v6447_v39 = vld [vmem:[#allocation7_spill] sm:$0xff] }
 0x1ce   : > { %v1629_v30 = vpop.f32.mrf.mxu0 }
 0x1d0   : > { %3384 = vmatpush3.xpose.msk.msra.mxu0 %vm1788_vm0, %v1202_v28  ;;  %v5462_v1 = vpop.f32.mrf.mxu0 }
 0x1d1   : > { %3385 = vmatprep.subr.msk.mxu0 %vm1788_vm0, %v1277_v56  ;;  %v1404_v26 = vpop.f32.mrf.mxu1 }
 0x1d2   : > { %v5458_v10 = vadd.f32 %v1629_v30, %v1404_v26  ;;  %v5472_v20 = vpop.f32.mrf.mxu0 }
 0x1d3   : > { %v1406_v40 = vpop.f32.mrf.mxu1 }
 0x1d4   : > { %3386 = vmatpush3.xpose.msk.msra.mxu0 %vm1788_vm0, %v1197_v36  ;;  %v5481_v60 = vpop.f32.mrf.mxu0 }
 0x1d5   : > { %3387 = vmatprep.subr.msk.mxu0 %vm1788_vm0, %v1272_v57 }
 0x1d6   : > { %v1409_v5 = vpop.f32.mrf.mxu1  ;;  %v5489_v52 = vpop.f32.mrf.mxu0 }
 0x1d7   : > { %v5466_v13 = vadd.f32 %v3671_v23, %v1409_v5 }
 0x1d8   : > { %3388 = vmatpush3.xpose.msk.msra.mxu0 %vm1788_vm0, %v1192_v4  ;;  %v1411_v49 = vpop.f32.mrf.mxu1 }
 0x1d9   : > { %3389 = vmatprep.subr.msk.mxu0 %vm1788_vm0, %v1267_v0  ;;  %v6445_v0 = vmov 0.0  }
 0x1da   : > { %v5470_v35 = vpop.f32.mrf.mxu1 }
 0x1dc   : > { %3390 = vmatpush3.xpose.msk.msra.mxu0 %vm1788_vm0, %v1187_v32  ;;  %v1416_v45 = vpop.f32.mrf.mxu1 }
 0x1dd   : > { %3391 = vmatprep.subr.msk.mxu0 %vm1788_vm0, %v1262_v29 }
 0x1de   : > { %v5479_v9 = vpop.f32.mrf.mxu1 }
 0x1e0   : > { %3392 = vmatpush3.xpose.msk.msra.mxu0 %vm1788_vm0, %v1182_v59  ;;  %v1421_v19 = vpop.f32.mrf.mxu1  ;;  %v6448_v59 = vld [vmem:[#allocation8_spill] sm:$0xff] }
 0x1e1   : > { %3393 = vmatprep.subr.msk.mxu0 %vm1788_vm0, %v1257_v11 }
 0x1e3   : > { %v5487_v63 = vpop.f32.mrf.mxu1 }
 0x1e4   : > { %3394 = vmatpush3.xpose.msk.msra.mxu0 %vm1788_vm0, %v5415_v22  ;;  %v5499_v22 = vpop.f32.mrf.mxu0 }
 0x1e5   : > { %3395 = vmatprep.subr.msk.mxu0 %vm1788_vm0, %v1252_v44  ;;  %v1426_v38 = vpop.f32.mrf.mxu1 }
 0x1e6   : > { %v5508_v14 = vpop.f32.mrf.mxu0 }
 0x1e7   : > { %v5497_v6 = vpop.f32.mrf.mxu1 }
 0x1e8   : > { %3396 = vmatpush3.xpose.msk.msra.mxu0 %vm1788_vm0, %v1172_v31 }
 0x1e9   : > { %3397 = vmatprep.subr.msk.mxu0 %vm1788_vm0, %v1247_v18  ;;  %v1431_v50 = vpop.f32.mrf.mxu1  ;;  %v6449_v18 = vld [vmem:[#allocation11_spill] sm:$0xff] }
 0x1eb   : > { %v5506_v43 = vpop.f32.mrf.mxu1 }
 0x1ec   : > { %3398 = vmatpush3.xpose.msk.msra.mxu0 %vm1788_vm0, %v5408_v8  ;;  %v5518_v8 = vpop.f32.mrf.mxu0 }
 0x1ed   : > { %3399 = vmatprep.subr.msk.mxu0 %vm1788_vm0, %v1242_v3  ;;  %v1436_v28 = vpop.f32.mrf.mxu1 }
 0x1ee   : > { %v5527_v17 = vpop.f32.mrf.mxu0 }
 0x1ef   : > { %v5516_v41 = vpop.f32.mrf.mxu1 }
 0x1f0   : > { %3400 = vmatpush3.xpose.msk.msra.mxu0 %vm1788_vm0, %v1162_v37  ;;  %v3686_v55 = vpop.f32.mrf.mxu0 }
 0x1f1   : > { %3401 = vmatprep.subr.msk.mxu0 %vm1788_vm0, %v1237_v61  ;;  %v1441_v56 = vpop.f32.mrf.mxu1 }
 0x1f2   : > { %v5543_v42 = vpop.f32.mrf.mxu0 }
 0x1f3   : > { %v5525_v58 = vpop.f32.mrf.mxu1 }
 0x1f4   : > { %3402 = vmatpush3.xpose.msk.msra.mxu0 %vm1788_vm0, %v5401_v54  ;;  %v1222_v54 = vadd.f32 %v5437_v53, %v5392_v24  ;;  %v3689_v53 = vpop.f32.mrf.mxu0 }
 0x1f5   : > { %3403 = vmatprep.subr.msk.mxu0 %vm1788_vm0, %v1232_v46  ;;  %v1446_v34 = vpop.f32.mrf.mxu1  ;;  %v6450_v46 = vld [vmem:[#allocation12_spill] sm:$0xff] }
 0x1f6   : > { %v1689_v30 = vpop.f32.mrf.mxu0 }
 0x1f7   : > { %v5534_v16 = vpop.f32.mrf.mxu1 }
 0x1f8   : > { %3404 = vmatpush3.xpose.msk.msra.mxu0 %vm1788_vm0, %v1152_v25  ;;  %v3692_v4 = vpop.f32.mrf.mxu0 }
 0x1f9   : > { %3405 = vmatprep.subr.msk.mxu0 %vm1788_vm0, %v5435_v51  ;;  %v1451_v23 = vpop.f32.mrf.mxu1 }
 0x1fa   : > { %v1699_v40 = vpop.f32.mrf.mxu0  ;;  %v1675_v23 = vadd.f32 %v5518_v8, %v5534_v16  ;;  %v6452_v8 = vld [vmem:[#allocation22_spill] sm:$0xff]  ;;  %v1665_v16 = vadd.f32 %v5499_v22, %v5516_v41  ;;  %v1660_v22 = vadd.f32 %v5508_v14, %v5506_v43  ;;  %v6454_v43 = vld [vmem:[#allocation24_spill] sm:$0xff]  ;;  %v1650_v14 = vadd.f32 %v5489_v52, %v5487_v63 }
 0x1fb   : > { %v5541_v36 = vpop.f32.mrf.mxu1  ;;  %v1645_v63 = vadd.f32 %v5462_v1, %v5479_v9  ;;  %v6456_v1 = vld [vmem:[#allocation26_spill] sm:$0xff] }
 0x1fc   : > { %3406 = vmatpush3.xpose.msk.msra.mxu0 %vm1788_vm0, %v5395_v2  ;;  %v1212_v2 = vadd.f32 %v5433_v33, %v5379_v48  ;;  %v6446_v48 = vld [vmem:[#allocation4_spill] sm:$0xff]  ;;  %v3695_v32 = vpop.f32.mrf.mxu0  ;;  %v1680_v25 = vadd.f32 %v5543_v42, %v5541_v36  ;;  %v1670_v42 = vadd.f32 %v5527_v17, %v5525_v58 }
 0x1fd   : > { %3407 = vmatprep.subr.msk.mxu0 %vm1788_vm0, %v1222_v54  ;;  %v1456_v51 = vpop.f32.mrf.mxu1  ;;  %v6451_v54 = vld [vmem:[#allocation15_spill] sm:$0xff] }
 0x1fe   : > { %v1709_v44 = vpop.f32.mrf.mxu0 }
 0x1ff   : > { %v1459_v24 = vpop.f32.mrf.mxu1 }
 0x200   : > { %3408 = vmatpush3.xpose.msk.msra.mxu0 %vm1788_vm0, %v1142_v62  ;;  %v1685_v50 = vadd.f32 %v3686_v55, %v1459_v24  ;;  %v5586_v28 = vpop.f32.mrf.mxu0 }
 0x201   : > { %3409 = vmatprep.subr.msk.mxu0 %vm1788_vm0, %v5431_v27  ;;  %v1461_v57 = vpop.f32.mrf.mxu1 }
 0x202   : > { %v5599_v55 = vpop.f32.mrf.mxu0 }
 0x203   : > { %v1464_v26 = vpop.f32.mrf.mxu1 }
 0x204   : > { %3410 = vmatpush3.xpose.msk.msra.mxu0 %vm1788_vm0, %v5386_v12  ;;  %v1690_v38 = vadd.f32 %v1689_v30, %v1464_v26  ;;  %v5614_v51 = vpop.f32.mrf.mxu0 }
 0x205   : > { %3411 = vmatprep.subr.msk.mxu0 %vm1788_vm0, %v1212_v2  ;;  %v1466_v7 = vpop.f32.mrf.mxu1  ;;  %v1655_v2 = vadd.f32 %v5481_v60, %v5497_v6 }
 0x206   : > { %v5627_v17 = vpop.f32.mrf.mxu0  ;;  %v1640_v7 = vadd.f32 %v5472_v20, %v5470_v35 }
 0x207   : > { %v1469_v27 = vpop.f32.mrf.mxu1 }
 0x208   : > { %3412 = vmatpush3.xpose.msk.msra.mxu0 %vm1788_vm0, %v1132_v47  ;;  %v1695_v45 = vadd.f32 %v3689_v53, %v1469_v27  ;;  %v6453_v53 = vld [vmem:[#allocation23_spill] sm:$0xff]  ;;  %v5642_v26 = vpop.f32.mrf.mxu0  ;;  %v6455_v47 = vld [vmem:[#allocation25_spill] sm:$0xff] }
 0x209   : > { %2786 = vmatprep.subr.mxu0 %v6445_v0  ;;  %v1471_v33 = vpop.f32.mrf.mxu1 }
 0x20a   : > { %v5655_v6 = vpop.f32.mrf.mxu0  ;;  %v6457_v33 = vld [vmem:[#allocation27_spill] sm:$0xff] }
 0x20b   : > { %3414 = vmatmul.mubr.msk.f32.vlgmr.msra.gmra.mxu0 %vm1788_vm0, %v5263_v15  ;;  %v1474_v12 = vpop.f32.mrf.mxu1 }
 0x20c   : > { %3415 = vmatprep.mubr.msk.f32.mxu0 %vm1788_vm0, %v6446_v48  ;;  %v1700_v49 = vadd.f32 %v1699_v40, %v1474_v12 }
 0x20d   : > { %v1476_v21 = vpop.f32.mrf.mxu1 }
 0x20e   : > { %v6458_v21 = vld [vmem:[#allocation3_spill] sm:$0xff] }
 0x20f   : > { %3416 = vmatmul.mubr.msk.f32.gmra.mxu0 %vm1788_vm0, %v6446_v48  ;;  %v1479_v5 = vpop.f32.mrf.mxu1 }
 0x210   : > { %3417 = vmatprep.mubr.msk.f32.mxu0 %vm1788_vm0, %v6447_v39  ;;  %v1705_v29 = vadd.f32 %v3692_v4, %v1479_v5  ;;  %v5670_v4 = vpop.f32.mrf.mxu0 }
 0x211   : > { %v1481_v15 = vpop.f32.mrf.mxu1 }
 0x212   : > { %2787 = vmatpush1.msra.mxu0 %v1705_v29  ;;  %3749 = vmatpush1.msra.mxu1 %v1705_v29  ;;  %v5681_v20 = vpop.f32.mrf.mxu0 }
 0x213   : > { %3418 = vmatmul.mubr.msk.f32.gmra.mxu0 %vm1788_vm0, %v6447_v39  ;;  %v1484_v11 = vpop.f32.mrf.mxu1  ;;  %2788 = vmatprep.subr.mxu0 %v6445_v0 }
 0x214   : > { %3419 = vmatprep.mubr.msk.f32.mxu0 %vm1788_vm0, %v6448_v59  ;;  %3718 = vmatprep.subr.mxu1 %v6445_v0  ;;  %v5573_v19 = vadd.f32 %v1709_v44, %v1484_v11  ;;  %v3710_v40 = vpop.f32.mrf.mxu0  ;;  %v6461_v44 = vld [vmem:[#allocation10_spill] sm:$0xff] }
 0x215   : > { %2789 = vmatpush1.msra.mxu0 %v1700_v49  ;;  %v1486_v31 = vpop.f32.mrf.mxu1  ;;  %3750 = vmatpush1.msra.mxu1 %v1700_v49 }
 0x216   : > { %2790 = vmatprep.subr.mxu0 %v6445_v0  ;;  %3719 = vmatprep.subr.mxu1 %v6445_v0  ;;  %v1759_v5 = vpop.f32.mrf.mxu0 }
 0x217   : > { %3420 = vmatmul.mubr.msk.f32.gmra.mxu0 %vm1788_vm0, %v6448_v59  ;;  %v1489_v3 = vpop.f32.mrf.mxu1  ;;  %3751 = vmatpush1.msra.mxu1 %v1695_v45  ;;  %v6460_v59 = vld [vmem:[#allocation9_spill] sm:$0xff] }
 0x218   : > { %3421 = vmatprep.mubr.msk.f32.mxu0 %vm1788_vm0, %v6449_v18  ;;  %2791 = vmatpush1.msra.mxu0 %v1695_v45  ;;  %v5581_v37 = vadd.f32 %v3695_v32, %v1489_v3  ;;  %v6459_v32 = vld [vmem:[#allocation6_spill] sm:$0xff]  ;;  %v3713_v15 = vpop.f32.mrf.mxu0  ;;  %v6462_v3 = vld [vmem:[#allocation13_spill] sm:$0xff] }
 0x219   : > { %2792 = vmatprep.subr.mxu0 %v6445_v0  ;;  %v1491_v61 = vpop.f32.mrf.mxu1  ;;  %3720 = vmatprep.subr.mxu1 %v6445_v0 }
 0x21a   : > { %2793 = vmatpush1.msra.mxu0 %v1690_v38  ;;  %3752 = vmatpush1.msra.mxu1 %v1690_v38  ;;  %v1769_v45 = vpop.f32.mrf.mxu0 }
 0x21b   : > { %3422 = vmatmul.mubr.msk.f32.gmra.mxu0 %vm1788_vm0, %v6449_v18  ;;  %v5591_v56 = vpop.f32.mrf.mxu1  ;;  %2794 = vmatprep.subr.mxu0 %v6445_v0 }
 0x21c   : > { %3423 = vmatprep.mubr.msk.f32.mxu0 %vm1788_vm0, %v6450_v46  ;;  %3721 = vmatprep.subr.mxu1 %v6445_v0  ;;  %v3716_v38 = vpop.f32.mrf.mxu0 }
 0x21d   : > { %2795 = vmatpush1.msra.mxu0 %v1685_v50  ;;  %v1496_v34 = vpop.f32.mrf.mxu1  ;;  %3753 = vmatpush1.msra.mxu1 %v1685_v50 }
 0x21e   : > { %2796 = vmatprep.subr.mxu0 %v6445_v0  ;;  %3722 = vmatprep.subr.mxu1 %v6445_v0 }
 0x21f   : > { %3424 = vmatmul.mubr.msk.f32.gmra.mxu0 %vm1788_vm0, %v6450_v46  ;;  %v5606_v36 = vpop.f32.mrf.mxu1  ;;  %3754 = vmatpush1.msra.mxu1 %v1680_v25  ;;  %v1779_v46 = vpop.f32.mrf.mxu0 }
 0x220   : > { %3425 = vmatprep.mubr.msk.f32.mxu0 %vm1788_vm0, %v6451_v54  ;;  %2797 = vmatpush1.msra.mxu0 %v1680_v25  ;;  %v6463_v25 = vld [vmem:[#allocation14_spill] sm:$0xff] }
 0x221   : > { %2798 = vmatprep.subr.mxu0 %v6445_v0  ;;  %v1501_v62 = vpop.f32.mrf.mxu1  ;;  %3723 = vmatprep.subr.mxu1 %v6445_v0 }
 0x222   : > { %2799 = vmatpush1.msra.mxu0 %v1675_v23  ;;  %3755 = vmatpush1.msra.mxu1 %v1675_v23  ;;  %v6464_v62 = vld [vmem:[#allocation16_spill] sm:$0xff] }
 0x223   : > { %3426 = vmatmul.mubr.msk.f32.gmra.mxu0 %vm1788_vm0, %v6451_v54  ;;  %v5621_v24 = vpop.f32.mrf.mxu1  ;;  %2800 = vmatprep.subr.mxu0 %v6445_v0 }
 0x224   : > { %3427 = vmatprep.mubr.msk.f32.mxu0 %vm1788_vm0, %v6452_v8  ;;  %3724 = vmatprep.subr.mxu1 %v6445_v0 }
 0x225   : > { %2801 = vmatpush1.msra.mxu0 %v1670_v42  ;;  %v1506_v58 = vpop.f32.mrf.mxu1  ;;  %3756 = vmatpush1.msra.mxu1 %v1670_v42 }
 0x226   : > { %2802 = vmatprep.subr.mxu0 %v6445_v0  ;;  %3725 = vmatprep.subr.mxu1 %v6445_v0 }
 0x227   : > { %3428 = vmatmul.mubr.msk.f32.gmra.mxu0 %vm1788_vm0, %v6452_v8  ;;  %v5634_v41 = vpop.f32.mrf.mxu1  ;;  %3757 = vmatpush1.msra.mxu1 %v1665_v16 }
 0x228   : > { %3429 = vmatprep.mubr.msk.f32.mxu0 %vm1788_vm0, %v6453_v53  ;;  %2803 = vmatpush1.msra.mxu0 %v1665_v16  ;;  %v6465_v16 = vld [vmem:[#allocation17_spill] sm:$0xff] }
 0x229   : > { %2804 = vmatprep.subr.mxu0 %v6445_v0  ;;  %v1511_v57 = vpop.f32.mrf.mxu1  ;;  %3726 = vmatprep.subr.mxu1 %v6445_v0 }
 0x22a   : > { %2805 = vmatpush1.msra.mxu0 %v1660_v22  ;;  %3758 = vmatpush1.msra.mxu1 %v1660_v22  ;;  %v6466_v22 = vld [vmem:[#allocation28_spill] sm:$0xff]  ;;  %v6467_v57 = vld [vmem:[#allocation29_spill] sm:$0xff] }
 0x22b   : > { %3430 = vmatmul.mubr.msk.f32.gmra.mxu0 %vm1788_vm0, %v6453_v53  ;;  %v5649_v30 = vpop.f32.mrf.mxu1  ;;  %2806 = vmatprep.subr.mxu0 %v6445_v0 }
 0x22c   : > { %3431 = vmatprep.mubr.msk.f32.mxu0 %vm1788_vm0, %v6454_v43  ;;  %3727 = vmatprep.subr.mxu1 %v6445_v0 }
 0x22d   : > { %2807 = vmatpush1.msra.mxu0 %v1655_v2  ;;  %v1516_v60 = vpop.f32.mrf.mxu1  ;;  %3759 = vmatpush1.msra.mxu1 %v1655_v2 }
 0x22e   : > { %2808 = vmatprep.subr.mxu0 %v6445_v0  ;;  %3728 = vmatprep.subr.mxu1 %v6445_v0  ;;  %v6468_v60 = vld [vmem:[#allocation30_spill] sm:$0xff] }
 0x22f   : > { %3432 = vmatmul.mubr.msk.f32.gmra.mxu0 %vm1788_vm0, %v6454_v43  ;;  %v5662_v52 = vpop.f32.mrf.mxu1  ;;  %3760 = vmatpush1.msra.mxu1 %v1650_v14 }
 0x230   : > { %3433 = vmatprep.mubr.msk.f32.mxu0 %vm1788_vm0, %v6455_v47  ;;  %2809 = vmatpush1.msra.mxu0 %v1650_v14 }
 0x231   : > { %2810 = vmatprep.subr.mxu0 %v6445_v0  ;;  %v1521_v27 = vpop.f32.mrf.mxu1  ;;  %3729 = vmatprep.subr.mxu1 %v6445_v0 }
 0x232   : > { %2811 = vmatpush1.msra.mxu0 %v1645_v63  ;;  %3761 = vmatpush1.msra.mxu1 %v1645_v63  ;;  %v6469_v63 = vld [vmem:[#allocation31_spill] sm:$0xff]  ;;  %v6477_v27 = vld [vmem:[#allocation38_spill] sm:$0xff] }
 0x233   : > { %3434 = vmatmul.mubr.msk.f32.gmra.mxu0 %vm1788_vm0, %v6455_v47  ;;  %v5675_v9 = vpop.f32.mrf.mxu1  ;;  %2812 = vmatprep.subr.mxu0 %v6445_v0  ;;  %v1745_v47 = vadd.f32 %v5642_v26, %v5662_v52  ;;  %v1735_v26 = vadd.f32 %v5614_v51, %v5634_v41  ;;  %v6470_v52 = vld [vmem:[#allocation32_spill] sm:$0xff]  ;;  %v6471_v51 = vld [vmem:[#allocation33_spill] sm:$0xff]  ;;  %v1725_v41 = vadd.f32 %v5586_v28, %v5606_v36  ;;  %v6473_v28 = vld [vmem:[#allocation35_spill] sm:$0xff] }
 0x234   : > { %3435 = vmatprep.mubr.msk.f32.mxu0 %vm1788_vm0, %v6456_v1  ;;  %3730 = vmatprep.subr.mxu1 %v6445_v0  ;;  %v1750_v14 = vadd.f32 %v5681_v20, %v5675_v9 }
 0x235   : > { %2813 = vmatpush1.msra.mxu0 %v1640_v7  ;;  %v1526_v35 = vpop.f32.mrf.mxu1  ;;  %3762 = vmatpush1.msra.mxu1 %v1640_v7  ;;  %v1740_v7 = vadd.f32 %v5655_v6, %v5649_v30  ;;  %v1730_v30 = vadd.f32 %v5627_v17, %v5621_v24  ;;  %v1720_v24 = vadd.f32 %v5599_v55, %v5591_v56  ;;  %v6472_v17 = vld [vmem:[#allocation34_spill] sm:$0xff]  ;;  %v6474_v56 = vld [vmem:[#allocation36_spill] sm:$0xff]  ;;  %v6476_v6 = vld [vmem:[#allocation37_spill] sm:$0xff] }
 0x236   : > { %2814 = vmatprep.subr.mxu0 %v6445_v0  ;;  %3731 = vmatprep.subr.mxu1 %v6445_v0  ;;  %v6475_v55 = vld [vmem:[#allocation2_spill] sm:$0xff] }
 0x237   : > { %3436 = vmatmul.mubr.msk.f32.gmra.mxu0 %vm1788_vm0, %v6456_v1  ;;  %v5686_v48 = vpop.f32.mrf.mxu1  ;;  %3763 = vmatpush1.msra.mxu1 %v5466_v13  ;;  %v779_v36 = vadd.f32 %v6475_v55, %v6474_v56 }
 0x238   : > { %3437 = vmatprep.mubr.msk.f32.mxu0 %vm1788_vm0, %v6457_v33  ;;  %2815 = vmatpush1.msra.mxu0 %v5466_v13  ;;  %v1755_v43 = vadd.f32 %v5670_v4, %v5686_v48 }
 0x239   : > { %2816 = vmatprep.subr.mxu0 %v6445_v0  ;;  %v1531_v12 = vpop.f32.mrf.mxu1  ;;  %3732 = vmatprep.subr.mxu1 %v6445_v0 }
 0x23a   : > { %2817 = vmatpush1.msra.mxu0 %v5458_v10  ;;  %3764 = vmatpush1.msra.mxu1 %v5458_v10 }
 0x23b   : > { %3438 = vmatmul.mubr.msk.f32.gmra.mxu0 %vm1788_vm0, %v6457_v33  ;;  %v1534_v39 = vpop.f32.mrf.mxu1  ;;  %2818 = vmatprep.subr.mxu0 %v6445_v0 }
 0x23c   : > { %3439 = vmatprep.mubr.msk.f32.mxu0 %vm1788_vm0, %v6458_v21  ;;  %3733 = vmatprep.subr.mxu1 %v6445_v0  ;;  %v1760_v2 = vadd.f32 %v1759_v5, %v1534_v39 }
 0x23d   : > { %v1536_v13 = vpop.f32.mrf.mxu1 }
 0x23f   : > { %3440 = vmatmul.mubr.msk.f32.gmra.mxu0 %vm1788_vm0, %v6458_v21  ;;  %v1539_v29 = vpop.f32.mrf.mxu1 }
 0x240   : > { %3441 = vmatprep.mubr.msk.f32.mxu0 %vm1788_vm0, %v6459_v32  ;;  %v1765_v53 = vadd.f32 %v3710_v40, %v1539_v29 }
 0x241   : > { %v1541_v49 = vpop.f32.mrf.mxu1 }
 0x243   : > { %3442 = vmatmul.mubr.msk.f32.gmra.mxu0 %vm1788_vm0, %v6459_v32  ;;  %v1544_v10 = vpop.f32.mrf.mxu1 }
 0x244   : > { %3443 = vmatprep.mubr.msk.f32.mxu0 %vm1788_vm0, %v6460_v59  ;;  %v1770_v58 = vadd.f32 %v1769_v45, %v1544_v10 }
 0x245   : > { %v1546_v11 = vpop.f32.mrf.mxu1 }
 0x247   : > { %3444 = vmatmul.mubr.msk.f32.gmra.mxu0 %vm1788_vm0, %v6460_v59  ;;  %v1549_v31 = vpop.f32.mrf.mxu1 }
 0x248   : > { %3445 = vmatprep.mubr.msk.f32.mxu0 %vm1788_vm0, %v6461_v44  ;;  %v1775_v8 = vadd.f32 %v3713_v15, %v1549_v31 }
 0x249   : > { %v1551_v18 = vpop.f32.mrf.mxu1 }
 0x24b   : > { %3446 = vmatmul.mubr.msk.f32.gmra.mxu0 %vm1788_vm0, %v6461_v44  ;;  %v1554_v50 = vpop.f32.mrf.mxu1 }
 0x24c   : > { %3447 = vmatprep.mubr.msk.f32.mxu0 %vm1788_vm0, %v6462_v3  ;;  %v1780_v23 = vadd.f32 %v1779_v46, %v1554_v50 }
 0x24d   : > { %v1556_v61 = vpop.f32.mrf.mxu1 }
 0x24f   : > { %3448 = vmatmul.mubr.msk.f32.gmra.mxu0 %vm1788_vm0, %v6462_v3  ;;  %v1559_v34 = vpop.f32.mrf.mxu1 }
 0x250   : > { %3449 = vmatprep.mubr.msk.f32.mxu0 %vm1788_vm0, %v6463_v25  ;;  %v1785_v54 = vadd.f32 %v3716_v38, %v1559_v34 }
 0x251   : > { %v1561_v42 = vpop.f32.mrf.mxu1 }
 0x252   : > { %2819 = vmatpush2.msra.mxu0 %v1785_v54  ;;  %3765 = vmatpush2.msra.mxu1 %v1785_v54 }
 0x253   : > { %3450 = vmatmul.mubr.msk.f32.gmra.mxu0 %vm1788_vm0, %v6463_v25  ;;  %2820 = vmatprep.subr.mxu0 %v6445_v0 }
 0x254   : > { %3451 = vmatprep.mubr.msk.f32.mxu0 %vm1788_vm0, %v6464_v62  ;;  %3734 = vmatprep.subr.mxu1 %v6445_v0 }
 0x255   : > { %2821 = vmatpush2.msra.mxu0 %v1780_v23  ;;  %3766 = vmatpush2.msra.mxu1 %v1780_v23 }
 0x256   : > { %2822 = vmatprep.subr.mxu0 %v6445_v0  ;;  %3735 = vmatprep.subr.mxu1 %v6445_v0 }
 0x257   : > { %3452 = vmatmul.mubr.msk.f32.gmra.mxu0 %vm1788_vm0, %v6464_v62  ;;  %3767 = vmatpush2.msra.mxu1 %v1775_v8 }
 0x258   : > { %3453 = vmatprep.mubr.msk.f32.mxu0 %vm1788_vm0, %v6465_v16  ;;  %2823 = vmatpush2.msra.mxu0 %v1775_v8 }
 0x259   : > { %2824 = vmatprep.subr.mxu0 %v6445_v0  ;;  %3736 = vmatprep.subr.mxu1 %v6445_v0 }
 0x25a   : > { %2825 = vmatpush2.msra.mxu0 %v1770_v58  ;;  %3768 = vmatpush2.msra.mxu1 %v1770_v58 }
 0x25b   : > { %3454 = vmatmul.mubr.msk.f32.gmra.mxu0 %vm1788_vm0, %v6465_v16  ;;  %2826 = vmatprep.subr.mxu0 %v6445_v0 }
 0x25c   : > { %3455 = vmatprep.mubr.msk.f32.mxu0 %vm1788_vm0, %v6466_v22  ;;  %3737 = vmatprep.subr.mxu1 %v6445_v0 }
 0x25d   : > { %2827 = vmatpush2.msra.mxu0 %v1765_v53  ;;  %3769 = vmatpush2.msra.mxu1 %v1765_v53 }
 0x25e   : > { %2828 = vmatprep.subr.mxu0 %v6445_v0  ;;  %3738 = vmatprep.subr.mxu1 %v6445_v0 }
 0x25f   : > { %3456 = vmatmul.mubr.msk.f32.gmra.mxu0 %vm1788_vm0, %v6466_v22  ;;  %3770 = vmatpush2.msra.mxu1 %v1760_v2 }
 0x260   : > { %3457 = vmatprep.mubr.msk.f32.mxu0 %vm1788_vm0, %v6467_v57  ;;  %2829 = vmatpush2.msra.mxu0 %v1760_v2 }
 0x261   : > { %2830 = vmatprep.subr.mxu0 %v6445_v0  ;;  %3739 = vmatprep.subr.mxu1 %v6445_v0 }
 0x262   : > { %2831 = vmatpush2.msra.mxu0 %v1755_v43  ;;  %3771 = vmatpush2.msra.mxu1 %v1755_v43 }
 0x263   : > { %3458 = vmatmul.mubr.msk.f32.gmra.mxu0 %vm1788_vm0, %v6467_v57  ;;  %2832 = vmatprep.subr.mxu0 %v6445_v0 }
 0x264   : > { %3459 = vmatprep.mubr.msk.f32.mxu0 %vm1788_vm0, %v6468_v60  ;;  %3740 = vmatprep.subr.mxu1 %v6445_v0 }
 0x265   : > { %2833 = vmatpush2.msra.mxu0 %v1750_v14  ;;  %3772 = vmatpush2.msra.mxu1 %v1750_v14 }
 0x266   : > { %2834 = vmatprep.subr.mxu0 %v6445_v0  ;;  %3741 = vmatprep.subr.mxu1 %v6445_v0 }
 0x267   : > { %3460 = vmatmul.mubr.msk.f32.gmra.mxu0 %vm1788_vm0, %v6468_v60  ;;  %3773 = vmatpush2.msra.mxu1 %v1745_v47 }
 0x268   : > { %3461 = vmatprep.mubr.msk.f32.mxu0 %vm1788_vm0, %v6469_v63  ;;  %2835 = vmatpush2.msra.mxu0 %v1745_v47 }
 0x269   : > { %2836 = vmatprep.subr.mxu0 %v6445_v0  ;;  %3742 = vmatprep.subr.mxu1 %v6445_v0 }
 0x26a   : > { %2837 = vmatpush2.msra.mxu0 %v1740_v7  ;;  %3774 = vmatpush2.msra.mxu1 %v1740_v7 }
 0x26b   : > { %3462 = vmatmul.mubr.msk.f32.gmra.mxu0 %vm1788_vm0, %v6469_v63  ;;  %2838 = vmatprep.subr.mxu0 %v6445_v0 }
 0x26c   : > { %3463 = vmatprep.mubr.msk.f32.mxu0 %vm1788_vm0, %v6470_v52  ;;  %3743 = vmatprep.subr.mxu1 %v6445_v0 }
 0x26d   : > { %2839 = vmatpush2.msra.mxu0 %v1735_v26  ;;  %3775 = vmatpush2.msra.mxu1 %v1735_v26 }
 0x26e   : > { %2840 = vmatprep.subr.mxu0 %v6445_v0  ;;  %3744 = vmatprep.subr.mxu1 %v6445_v0 }
 0x26f   : > { %3464 = vmatmul.mubr.msk.f32.gmra.mxu0 %vm1788_vm0, %v6470_v52  ;;  %3776 = vmatpush2.msra.mxu1 %v1730_v30 }
 0x270   : > { %3465 = vmatprep.mubr.msk.f32.mxu0 %vm1788_vm0, %v6471_v51  ;;  %2841 = vmatpush2.msra.mxu0 %v1730_v30 }
 0x271   : > { %2842 = vmatprep.subr.mxu0 %v6445_v0  ;;  %3745 = vmatprep.subr.mxu1 %v6445_v0 }
 0x272   : > { %2843 = vmatpush2.msra.mxu0 %v1725_v41  ;;  %3777 = vmatpush2.msra.mxu1 %v1725_v41 }
 0x273   : > { %3466 = vmatmul.mubr.msk.f32.gmra.mxu0 %vm1788_vm0, %v6471_v51  ;;  %2844 = vmatprep.subr.mxu0 %v6445_v0 }
 0x274   : > { %3467 = vmatprep.mubr.msk.f32.mxu0 %vm1788_vm0, %v6472_v17  ;;  %3746 = vmatprep.subr.mxu1 %v6445_v0 }
 0x275   : > { %2845 = vmatpush2.msra.mxu0 %v1720_v24  ;;  %3778 = vmatpush2.msra.mxu1 %v1720_v24 }
 0x276   : > { %2846 = vmatprep.subr.mxu0 %v6445_v0  ;;  %3747 = vmatprep.subr.mxu1 %v6445_v0 }
 0x277   : > { %3468 = vmatmul.mubr.msk.f32.gmra.mxu0 %vm1788_vm0, %v6472_v17  ;;  %3779 = vmatpush2.msra.mxu1 %v5581_v37 }
 0x278   : > { %3469 = vmatprep.mubr.msk.f32.mxu0 %vm1788_vm0, %v6473_v28  ;;  %2847 = vmatpush2.msra.mxu0 %v5581_v37  ;;  %v6478_v37 = vld [vmem:[#allocation5_spill] sm:$0xff] }
 0x279   : > { %2848 = vmatprep.subr.mxu0 %v6445_v0  ;;  %3748 = vmatprep.subr.mxu1 %v6445_v0  ;;  %v789_v4 = vadd.f32 %v6478_v37, %v6477_v27  ;;  %v2238_v0 = vlaneseq }
 0x27a   : > { %2849 = vmatpush2.msra.mxu0 %v5573_v19  ;;  %3780 = vmatpush2.msra.mxu1 %v5573_v19 }
 0x27b   : > { %3470 = vmatmul.mubr.msk.f32.gmra.mxu0 %vm1788_vm0, %v6473_v28  ;;  %v5825_v1 = vshrl.u32 %v2238_v0, 7  ;;  %v5827_v9 = vand.u32 127, %v2238_v0 }
 0x27c   : > { %3471 = vmatprep.mubr.msk.f32.mxu0 %vm1788_vm0, %v779_v36 }
 0x27d   : > { %vm2274_vm1 = vcmp.le.s32.totalorder %v5827_v9, %v5825_v1  ;;  %v2240_v19 = vadd.s32 8, %v5825_v1  ;;  %v2241_v48 = vadd.s32 16, %v5825_v1  ;;  %v2242_v39 = vadd.s32 24, %v5825_v1 }
 0x27e   : > { %v2243_v29 = vadd.s32 32, %v5825_v1  ;;  %v2244_v10 = vadd.s32 40, %v5825_v1  ;;  %v2245_v18 = vadd.s32 48, %v5825_v1  ;;  %v2246_v46 = vadd.s32 56, %v5825_v1 }
 0x27f   : > { %3472 = vmatmul.mubr.msk.f32.gmra.mxu0 %vm1788_vm0, %v779_v36  ;;  %vm2276_vm2 = vcmp.le.s32.totalorder %v5827_v9, %v2240_v19  ;;  %vm2278_vm3 = vcmp.le.s32.totalorder %v5827_v9, %v2241_v48  ;;  %vm2280_vm4 = vcmp.le.s32.totalorder %v5827_v9, %v2242_v39  ;;  %v2247_v42 = vadd.s32 64, %v5825_v1 }
 0x280   : > { %3473 = vmatprep.mubr.msk.f32.mxu0 %vm1788_vm0, %v6476_v6  ;;  %vm2282_vm5 = vcmp.le.s32.totalorder %v5827_v9, %v2243_v29  ;;  %vm2284_vm6 = vcmp.le.s32.totalorder %v5827_v9, %v2244_v10  ;;  %vm2286_vm7 = vcmp.le.s32.totalorder %v5827_v9, %v2245_v18  ;;  %vm2288_vm8 = vcmp.le.s32.totalorder %v5827_v9, %v2246_v46 }
 0x281   : > { %vm2290_vm9 = vcmp.le.s32.totalorder %v5827_v9, %v2247_v42  ;;  %v2248_v53 = vadd.s32 72, %v5825_v1  ;;  %v2249_v14 = vadd.s32 80, %v5825_v1  ;;  %v2250_v26 = vadd.s32 88, %v5825_v1 }
 0x282   : > { %v2251_v24 = vadd.s32 96, %v5825_v1  ;;  %v2252_v36 = vadd.s32 104, %v5825_v1  ;;  %v2253_v0 = vadd.s32 112, %v5825_v1  ;;  %v2256_v18 = vadd.s32 136, %v5825_v1 }
 0x283   : > { %3474 = vmatmul.mubr.msk.f32.gmra.mxu0 %vm1788_vm0, %v6476_v6  ;;  %vm2292_vm10 = vcmp.le.s32.totalorder %v5827_v9, %v2248_v53  ;;  %vm2294_vm11 = vcmp.le.s32.totalorder %v5827_v9, %v2249_v14  ;;  %vm2296_vm12 = vcmp.le.s32.totalorder %v5827_v9, %v2250_v26  ;;  %v2257_v46 = vadd.s32 144, %v5825_v1 }
 0x284   : > { %3475 = vmatprep.mubr.msk.f32.mxu0 %vm1788_vm0, %v789_v4  ;;  %vm2298_vm13 = vcmp.le.s32.totalorder %v5827_v9, %v2251_v24  ;;  %vm2300_vm14 = vcmp.le.s32.totalorder %v5827_v9, %v2252_v36  ;;  %vm2302_vm15 = vcmp.le.s32.totalorder %v5827_v9, %v2253_v0  ;;  %v2261_v24 = vadd.s32 176, %v5825_v1 }
 0x287   : > { %3476 = vmatmul.mubr.msk.f32.gmra.mxu0 %vm1788_vm0, %v789_v4 }
 0x2cb   : > { %v2047_v35 = vpop.f32.mrf.mxu0 }
 0x2cc   : > { %v5832_v20 = vsel %vm2274_vm1, %v2047_v35, -1e+30 }
 0x2cd   : > { %v2049_v33 = vpop.f32.mrf.mxu0 }
 0x2cf   : > { %v2053_v12 = vpop.f32.mrf.mxu0 }
 0x2d0   : > { %v5836_v40 = vsel %vm2276_vm2, %v2053_v12, -1e+30  ;;  %v2254_v12 = vadd.s32 120, %v5825_v1 }
 0x2d1   : > { %v2055_v21 = vpop.f32.mrf.mxu0 }
 0x2d2   : > { %vm2304_vm1 = vcmp.le.s32.totalorder %v5827_v9, %v2254_v12 }
 0x2d3   : > { %v2059_v13 = vpop.f32.mrf.mxu0 }
 0x2d4   : > { %v5840_v5 = vsel %vm2278_vm3, %v2059_v13, -1e+30 }
 0x2d5   : > { %v2061_v32 = vpop.f32.mrf.mxu0 }
 0x2d7   : > { %v2065_v49 = vpop.f32.mrf.mxu0 }
 0x2d8   : > { %v5844_v15 = vsel %vm2280_vm4, %v2065_v49, -1e+30  ;;  %v2255_v49 = vadd.s32 128, %v5825_v1 }
 0x2d9   : > { %v2067_v59 = vpop.f32.mrf.mxu0 }
 0x2da   : > { %v5904_v59 = vadd.s32 128, %v5827_v9 }
 0x2db   : > { %v2071_v11 = vpop.f32.mrf.mxu0 }
 0x2dc   : > { %v5848_v45 = vsel %vm2282_vm5, %v2071_v11, -1e+30  ;;  %vm2307_vm2 = vcmp.le.s32.totalorder %v5904_v59, %v2255_v49  ;;  %vm2309_vm3 = vcmp.le.s32.totalorder %v5904_v59, %v2256_v18  ;;  %vm2311_vm4 = vcmp.le.s32.totalorder %v5904_v59, %v2257_v46 }
 0x2dd   : > { %v2073_v44 = vpop.f32.mrf.mxu0  ;;  %v2414_v31 = vmax.f32 %v5848_v45, -1e+30  ;;  %v2265_v18 = vadd.s32 208, %v5825_v1 }
 0x2df   : > { %2415 = vmax.xlane.f32.xlu0 %v2414_v31  ;;  %v2077_v38 = vpop.f32.mrf.mxu0 }
 0x2e0   : > { %v5853_v3 = vsel %vm2284_vm6, %v2077_v38, -1e+30 }
 0x2e1   : > { %v2079_v50 = vpop.f32.mrf.mxu0  ;;  %v2417_v61 = vmax.f32 %v5853_v3, -1e+30 }
 0x2e3   : > { %2418 = vmax.xlane.f32.xlu0 %v2417_v61  ;;  %v2083_v25 = vpop.f32.mrf.mxu0 }
 0x2e4   : > { %v5858_v34 = vsel %vm2286_vm7, %v2083_v25, -1e+30 }
 0x2e5   : > { %v2085_v54 = vpop.f32.mrf.mxu0  ;;  %v2420_v23 = vmax.f32 %v5858_v34, -1e+30 }
 0x2e7   : > { %2421 = vmax.xlane.f32.xlu1 %v2420_v23  ;;  %v2089_v62 = vpop.f32.mrf.mxu0 }
 0x2e8   : > { %v5863_v8 = vsel %vm2288_vm8, %v2089_v62, -1e+30  ;;  %v2258_v62 = vadd.s32 152, %v5825_v1  ;;  %vm2319_vm8 = vcmp.le.s32.totalorder %v5904_v59, %v2261_v24 }
 0x2e9   : > { %v2091_v16 = vpop.f32.mrf.mxu0  ;;  %v2423_v58 = vmax.f32 %v5863_v8, -1e+30 }
 0x2ea   : > { %vm2313_vm5 = vcmp.le.s32.totalorder %v5904_v59, %v2258_v62 }
 0x2eb   : > { %2424 = vmax.xlane.f32.xlu1 %v2423_v58  ;;  %v2095_v22 = vpop.f32.mrf.mxu0 }
 0x2ec   : > { %v5868_v2 = vsel %vm2290_vm9, %v2095_v22, -1e+30 }
 0x2ed   : > { %v2097_v57 = vpop.f32.mrf.mxu0  ;;  %v2426_v43 = vmax.f32 %v5868_v2, -1e+30 }
 0x2ee   : > { %v2259_v57 = vadd.s32 160, %v5825_v1 }
 0x2ef   : > { %2427 = vmax.xlane.f32.xlu0 %v2426_v43  ;;  %v2101_v60 = vpop.f32.mrf.mxu0 }
 0x2f0   : > { %v5873_v47 = vsel %vm2292_vm10, %v2101_v60, -1e+30  ;;  %vm2315_vm6 = vcmp.le.s32.totalorder %v5904_v59, %v2259_v57 }
 0x2f1   : > { %v2103_v63 = vpop.f32.mrf.mxu0  ;;  %v2429_v7 = vmax.f32 %v5873_v47, -1e+30 }
 0x2f3   : > { %2430 = vmax.xlane.f32.xlu1 %v2429_v7  ;;  %v2107_v52 = vpop.f32.mrf.mxu0  ;;  %v2260_v7 = vadd.s32 168, %v5825_v1 }
 0x2f4   : > { %v5878_v30 = vsel %vm2294_vm11, %v2107_v52, -1e+30 }
 0x2f5   : > { %v2109_v51 = vpop.f32.mrf.mxu0  ;;  %v2432_v41 = vmax.f32 %v5878_v30, -1e+30  ;;  %vm2317_vm7 = vcmp.le.s32.totalorder %v5904_v59, %v2260_v7 }
 0x2f7   : > { %2433 = vmax.xlane.f32.xlu0 %v2432_v41  ;;  %v2113_v17 = vpop.f32.mrf.mxu0 }
 0x2f8   : > { %v5883_v28 = vsel %vm2296_vm12, %v2113_v17, -1e+30  ;;  %vm2327_vm12 = vcmp.le.s32.totalorder %v5904_v59, %v2265_v18 }
 0x2f9   : > { %v2115_v56 = vpop.f32.mrf.mxu0  ;;  %v2435_v55 = vmax.f32 %v5883_v28, -1e+30 }
 0x2fb   : > { %2436 = vmax.xlane.f32.xlu1 %v2435_v55  ;;  %v2119_v6 = vpop.f32.mrf.mxu0 }
 0x2fc   : > { %v5888_v27 = vsel %vm2298_vm13, %v2119_v6, -1e+30  ;;  %v2262_v6 = vadd.s32 184, %v5825_v1 }
 0x2fd   : > { %v2121_v37 = vpop.f32.mrf.mxu0  ;;  %v2438_v4 = vmax.f32 %v5888_v27, -1e+30 }
 0x2fe   : > { %vm2321_vm9 = vcmp.le.s32.totalorder %v5904_v59, %v2262_v6 }
 0x2ff   : > { %2439 = vmax.xlane.f32.xlu0 %v2438_v4  ;;  %v2125_v19 = vpop.f32.mrf.mxu0 }
 0x300   : > { %v5893_v35 = vsel %vm2300_vm14, %v2125_v19, -1e+30 }
 0x301   : > { %v2127_v33 = vpop.f32.mrf.mxu0  ;;  %v2441_v48 = vmax.f32 %v5893_v35, -1e+30 }
 0x302   : > { %v2263_v33 = vadd.s32 192, %v5825_v1 }
 0x303   : > { %2442 = vmax.xlane.f32.xlu1 %v2441_v48  ;;  %v2131_v21 = vpop.f32.mrf.mxu0 }
 0x304   : > { %v5898_v39 = vsel %vm2302_vm15, %v2131_v21, -1e+30  ;;  %vm2323_vm10 = vcmp.le.s32.totalorder %v5904_v59, %v2263_v33 }
 0x305   : > { %v2133_v13 = vpop.f32.mrf.mxu0  ;;  %v2444_v32 = vmax.f32 %v5898_v39, -1e+30 }
 0x307   : > { %2445 = vmax.xlane.f32.xlu0 %v2444_v32  ;;  %v2137_v29 = vpop.f32.mrf.mxu0  ;;  %v2264_v32 = vadd.s32 200, %v5825_v1 }
 0x308   : > { %v5906_v10 = vsel %vm2304_vm1, %v2137_v29, -1e+30 }
 0x309   : > { %v2139_v11 = vpop.f32.mrf.mxu0  ;;  %v2447_v44 = vmax.f32 %v5906_v10, -1e+30  ;;  %vm2325_vm11 = vcmp.le.s32.totalorder %v5904_v59, %v2264_v32 }
 0x30b   : > { %2448 = vmax.xlane.f32.xlu1 %v2447_v44  ;;  %v5909_v31 = vpop.f32.mrf.mxu0 }
 0x30d   : > { %v2145_v38 = vpop.f32.mrf.mxu0 }
 0x30e   : > { %v5913_v50 = vsel %vm2307_vm2, %v2145_v38, -1e+30 }
 0x30f   : > { %v5915_v61 = vpop.f32.mrf.mxu0  ;;  %v2450_v9 = vmax.f32 %v5909_v31, %v5913_v50 }
 0x311   : > { %2451 = vmax.xlane.f32.xlu0 %v2450_v9  ;;  %v2151_v25 = vpop.f32.mrf.mxu0 }
 0x312   : > { %v5921_v54 = vsel %vm2309_vm3, %v2151_v25, -1e+30 }
 0x313   : > { %v5923_v23 = vpop.f32.mrf.mxu0  ;;  %v2453_v42 = vmax.f32 %v5915_v61, %v5921_v54 }
 0x315   : > { %2454 = vmax.xlane.f32.xlu1 %v2453_v42  ;;  %v2157_v16 = vpop.f32.mrf.mxu0  ;;  %v2266_v42 = vadd.s32 216, %v5825_v1 }
 0x316   : > { %v5929_v58 = vsel %vm2311_vm4, %v2157_v16, -1e+30 }
 0x317   : > { %v5931_v53 = vpop.f32.mrf.mxu0  ;;  %v2456_v22 = vmax.f32 %v5923_v23, %v5929_v58  ;;  %vm2329_vm13 = vcmp.le.s32.totalorder %v5904_v59, %v2266_v42 }
 0x319   : > { %2457 = vmax.xlane.f32.xlu0 %v2456_v22  ;;  %v2163_v43 = vpop.f32.mrf.mxu0 }
 0x31a   : > { %v5937_v14 = vsel %vm2313_vm5, %v2163_v43, -1e+30  ;;  %v2267_v43 = vadd.s32 224, %v5825_v1 }
 0x31b   : > { %v5939_v60 = vpop.f32.mrf.mxu0  ;;  %v2459_v63 = vmax.f32 %v5931_v53, %v5937_v14 }
 0x31c   : > { %vm2331_vm14 = vcmp.le.s32.totalorder %v5904_v59, %v2267_v43 }
 0x31d   : > { %2460 = vmax.xlane.f32.xlu1 %v2459_v63  ;;  %v2169_v26 = vpop.f32.mrf.mxu0 }
 0x31e   : > { %v5945_v52 = vsel %vm2315_vm6, %v2169_v26, -1e+30 }
 0x31f   : > { %v5947_v51 = vpop.f32.mrf.mxu0  ;;  %v2462_v41 = vmax.f32 %v5939_v60, %v5945_v52 }
 0x321   : > { %2463 = vmax.xlane.f32.xlu0 %v2462_v41  ;;  %v2175_v17 = vpop.f32.mrf.mxu0  ;;  %v2402_v41 = vmax.f32 %v5832_v20, -1e+30 }
 0x322   : > { %v5953_v56 = vsel %vm2317_vm7, %v2175_v17, -1e+30  ;;  %v2268_v17 = vadd.s32 232, %v5825_v1 }
 0x323   : > { %v5955_v55 = vpop.f32.mrf.mxu0  ;;  %v2465_v36 = vmax.f32 %v5947_v51, %v5953_v56 }
 0x324   : > { %vm2333_vm15 = vcmp.le.s32.totalorder %v5904_v59, %v2268_v17 }
 0x325   : > { %2466 = vmax.xlane.f32.xlu1 %v2465_v36  ;;  %v2181_v37 = vpop.f32.mrf.mxu0 }
 0x326   : > { %v5961_v4 = vsel %vm2319_vm8, %v2181_v37, -1e+30 }
 0x327   : > { %v5963_v0 = vpop.f32.mrf.mxu0  ;;  %v2468_v19 = vmax.f32 %v5955_v55, %v5961_v4 }
 0x329   : > { %2469 = vmax.xlane.f32.xlu0 %v2468_v19  ;;  %v2187_v48 = vpop.f32.mrf.mxu0  ;;  %v2405_v19 = vmax.f32 %v5836_v40, -1e+30 }
 0x32a   : > { %v5969_v12 = vsel %vm2321_vm9, %v2187_v48, -1e+30  ;;  %v2269_v48 = vadd.s32 240, %v5825_v1 }
 0x32b   : > { %v5971_v21 = vpop.f32.mrf.mxu0  ;;  %v2471_v13 = vmax.f32 %v5963_v0, %v5969_v12 }
 0x32c   : > { %vm2335_vm1 = vcmp.le.s32.totalorder %v5904_v59, %v2269_v48 }
 0x32d   : > { %2472 = vmax.xlane.f32.xlu1 %v2471_v13  ;;  %v2193_v29 = vpop.f32.mrf.mxu0 }
 0x32e   : > { %v5977_v49 = vsel %vm2323_vm10, %v2193_v29, -1e+30 }
 0x32f   : > { %v5979_v11 = vpop.f32.mrf.mxu0  ;;  %v2474_v44 = vmax.f32 %v5971_v21, %v5977_v49 }
 0x331   : > { %2475 = vmax.xlane.f32.xlu0 %v2474_v44  ;;  %v2199_v38 = vpop.f32.mrf.mxu0  ;;  %v2408_v44 = vmax.f32 %v5840_v5, -1e+30 }
 0x332   : > { %v5985_v9 = vsel %vm2325_vm11, %v2199_v38, -1e+30  ;;  %v2270_v38 = vadd.s32 248, %v5825_v1 }
 0x333   : > { %v5987_v46 = vpop.f32.mrf.mxu0  ;;  %v2477_v25 = vmax.f32 %v5979_v11, %v5985_v9 }
 0x334   : > { %vm2337_vm2 = vcmp.le.s32.totalorder %v5904_v59, %v2270_v38 }
 0x335   : > { %2478 = vmax.xlane.f32.xlu1 %v2477_v25  ;;  %v2205_v62 = vpop.f32.mrf.mxu0 }
 0x336   : > { %v5993_v16 = vsel %vm2327_vm12, %v2205_v62, -1e+30 }
 0x337   : > { %v5995_v22 = vpop.f32.mrf.mxu0  ;;  %v2480_v57 = vmax.f32 %v5987_v46, %v5993_v16 }
 0x339   : > { %2481 = vmax.xlane.f32.xlu0 %v2480_v57  ;;  %v2211_v63 = vpop.f32.mrf.mxu0  ;;  %v2411_v57 = vmax.f32 %v5844_v15, -1e+30 }
 0x33a   : > { %v6001_v7 = vsel %vm2329_vm13, %v2211_v63, -1e+30 }
 0x33b   : > { %v6003_v26 = vpop.f32.mrf.mxu0  ;;  %v2483_v24 = vmax.f32 %v5995_v22, %v6001_v7 }
 0x33d   : > { %2403 = vmax.xlane.f32.xlu0 %v2402_v41  ;;  %2484 = vmax.xlane.f32.xlu1 %v2483_v24  ;;  %v2217_v36 = vpop.f32.mrf.mxu0 }
 0x33e   : > { %v6010_v6 = vsel %vm2331_vm14, %v2217_v36, -1e+30 }
 0x33f   : > { %v6012_v37 = vpop.f32.mrf.mxu0  ;;  %v2486_v33 = vmax.f32 %v6003_v26, %v6010_v6 }
 0x341   : > { %2406 = vmax.xlane.f32.xlu0 %v2405_v19  ;;  %2487 = vmax.xlane.f32.xlu1 %v2486_v33  ;;  %v2223_v13 = vpop.f32.mrf.mxu0 }
 0x342   : > { %v6019_v32 = vsel %vm2333_vm15, %v2223_v13, -1e+30 }
 0x343   : > { %v6021_v29 = vpop.f32.mrf.mxu0  ;;  %v2489_v18 = vmax.f32 %v6012_v37, %v6019_v32 }
 0x345   : > { %2409 = vmax.xlane.f32.xlu0 %v2408_v44  ;;  %2490 = vmax.xlane.f32.xlu1 %v2489_v18  ;;  %v2229_v25 = vpop.f32.mrf.mxu0 }
 0x346   : > { %v6028_v42 = vsel %vm2335_vm1, %v2229_v25, -1e+30 }
 0x347   : > { %v6030_v62 = vpop.f32.mrf.mxu0  ;;  %v2492_v43 = vmax.f32 %v6021_v29, %v6028_v42 }
 0x349   : > { %2412 = vmax.xlane.f32.xlu0 %v2411_v57  ;;  %2493 = vmax.xlane.f32.xlu1 %v2492_v43  ;;  %v2235_v63 = vpop.f32.mrf.mxu0 }
 0x34a   : > { %v6036_v41 = vsel %vm2337_vm2, %v2235_v63, -1e+30 }
 0x34b   : > { %v2495_v1 = vmax.f32 %v6030_v62, %v6036_v41 }
 0x34d   : > { %2496 = vmax.xlane.f32.xlu1 %v2495_v1 }
 0x368   : > { %v2416_v24 = vpop.xlane.xlu0 %2415 }
 0x369   : > { %v2506_v17 = vsub.f32 %v5848_v45, %v2416_v24  ;;  %v2507_v36 = vsub.f32 -1e+30, %v2416_v24 }
 0x36b   : > { %v2578_v19 = vmul.f32 1.442695, %v2506_v17  ;;  %v2580_v33 = vmul.f32 1.442695, %v2507_v36 }
 0x36c   : > { %v2419_v48 = vpop.xlane.xlu0 %2418 }
 0x36d   : > { %3791 = vpow2.f32 %v2578_v19  ;;  %v2508_v13 = vsub.f32 %v5853_v3, %v2419_v48  ;;  %v2509_v59 = vsub.f32 -1e+30, %v2419_v48 }
 0x36e   : > { %3793 = vpow2.f32 %v2580_v33 }
 0x36f   : > { %v2582_v44 = vmul.f32 1.442695, %v2508_v13  ;;  %v2584_v18 = vmul.f32 1.442695, %v2509_v59 }
 0x370   : > { %v2422_v38 = vpop.xlane.xlu1 %2421 }
 0x371   : > { %3795 = vpow2.f32 %v2582_v44  ;;  %v2510_v25 = vsub.f32 %v5858_v34, %v2422_v38  ;;  %v2511_v57 = vsub.f32 -1e+30, %v2422_v38 }
 0x372   : > { %3797 = vpow2.f32 %v2584_v18 }
 0x373   : > { %v2586_v43 = vmul.f32 1.442695, %v2510_v25  ;;  %v2588_v63 = vmul.f32 1.442695, %v2511_v57 }
 0x374   : > { %v2425_v45 = vpop.xlane.xlu1 %2424 }
 0x375   : > { %3799 = vpow2.f32 %v2586_v43  ;;  %v2512_v1 = vsub.f32 %v5863_v8, %v2425_v45  ;;  %v2513_v24 = vsub.f32 -1e+30, %v2425_v45 }
 0x376   : > { %3801 = vpow2.f32 %v2588_v63 }
 0x377   : > { %v2590_v17 = vmul.f32 1.442695, %v2512_v1  ;;  %v2592_v3 = vmul.f32 1.442695, %v2513_v24 }
 0x378   : > { %v2428_v36 = vpop.xlane.xlu0 %2427 }
 0x379   : > { %3803 = vpow2.f32 %v2590_v17  ;;  %v2514_v19 = vsub.f32 %v5868_v2, %v2428_v36  ;;  %v2515_v33 = vsub.f32 -1e+30, %v2428_v36 }
 0x37a   : > { %v3792_v48 = vpop.eup %3791  ;;  %3805 = vpow2.f32 %v2592_v3 }
 0x37b   : > { %v3794_v34 = vpop.eup %3793  ;;  %v2594_v13 = vmul.f32 1.442695, %v2514_v19  ;;  %v2596_v59 = vmul.f32 1.442695, %v2515_v33 }
 0x37c   : > { %2870 = vmatprep.mubr.f32.mxu1 %v3794_v34  ;;  %v2431_v44 = vpop.xlane.xlu1 %2430  ;;  %v6045_v18 = vadd.f32 %v3794_v34, %v3792_v48 }
 0x37d   : > { %3807 = vpow2.f32 %v2594_v13  ;;  %2871 = vmatmul.mubr.f32.vlgmr.msra.gmra.mxu1 %v3792_v48  ;;  %v2516_v8 = vsub.f32 %v5873_v47, %v2431_v44  ;;  %v2517_v38 = vsub.f32 -1e+30, %v2431_v44 }
 0x37e   : > { %v3796_v25 = vpop.eup %3795  ;;  %3809 = vpow2.f32 %v2596_v59 }
 0x37f   : > { %v3798_v57 = vpop.eup %3797  ;;  %v2598_v43 = vmul.f32 1.442695, %v2516_v8  ;;  %v2600_v2 = vmul.f32 1.442695, %v2517_v38 }
 0x380   : > { %2875 = vmatprep.mubr.f32.mxu1 %v3798_v57  ;;  %v2434_v63 = vpop.xlane.xlu0 %2433  ;;  %v6048_v45 = vadd.f32 %v3798_v57, %v3796_v25 }
 0x381   : > { %3811 = vpow2.f32 %v2598_v43  ;;  %2876 = vmatmul.mubr.f32.gmra.mxu1 %v3796_v25  ;;  %v2518_v1 = vsub.f32 %v5878_v30, %v2434_v63  ;;  %v2519_v24 = vsub.f32 -1e+30, %v2434_v63 }
 0x382   : > { %v3800_v17 = vpop.eup %3799  ;;  %3813 = vpow2.f32 %v2600_v2 }
 0x383   : > { %v3802_v3 = vpop.eup %3801  ;;  %v2602_v36 = vmul.f32 1.442695, %v2518_v1  ;;  %v2604_v47 = vmul.f32 1.442695, %v2519_v24 }
 0x384   : > { %2880 = vmatprep.mubr.f32.mxu1 %v3802_v3  ;;  %v2437_v19 = vpop.xlane.xlu1 %2436  ;;  %v6051_v33 = vadd.f32 %v3802_v3, %v3800_v17 }
 0x385   : > { %3815 = vpow2.f32 %v2602_v36  ;;  %2881 = vmatmul.mubr.f32.gmra.mxu1 %v3800_v17  ;;  %v2520_v48 = vsub.f32 %v5883_v28, %v2437_v19  ;;  %v2521_v34 = vsub.f32 -1e+30, %v2437_v19 }
 0x386   : > { %v3804_v13 = vpop.eup %3803  ;;  %3817 = vpow2.f32 %v2604_v47 }
 0x387   : > { %v3806_v59 = vpop.eup %3805  ;;  %v2606_v44 = vmul.f32 1.442695, %v2520_v48  ;;  %v2608_v30 = vmul.f32 1.442695, %v2521_v34 }
 0x388   : > { %2885 = vmatprep.mubr.f32.mxu1 %v3806_v59  ;;  %v2440_v8 = vpop.xlane.xlu0 %2439  ;;  %v6054_v38 = vadd.f32 %v3806_v59, %v3804_v13 }
 0x389   : > { %3819 = vpow2.f32 %v2606_v44  ;;  %2886 = vmatmul.mubr.f32.gmra.mxu1 %v3804_v13  ;;  %v2522_v25 = vsub.f32 %v5888_v27, %v2440_v8  ;;  %v2523_v57 = vsub.f32 -1e+30, %v2440_v8 }
 0x38a   : > { %v3808_v43 = vpop.eup %3807  ;;  %3821 = vpow2.f32 %v2608_v30 }
 0x38b   : > { %v3810_v2 = vpop.eup %3809  ;;  %v2610_v63 = vmul.f32 1.442695, %v2522_v25  ;;  %v2612_v28 = vmul.f32 1.442695, %v2523_v57 }
 0x38c   : > { %2890 = vmatprep.mubr.f32.mxu1 %v3810_v2  ;;  %v2443_v1 = vpop.xlane.xlu1 %2442  ;;  %v6057_v24 = vadd.f32 %v3810_v2, %v3808_v43 }
 0x38d   : > { %3823 = vpow2.f32 %v2610_v63  ;;  %2891 = vmatmul.mubr.f32.gmra.mxu1 %v3808_v43  ;;  %v2524_v17 = vsub.f32 %v5893_v35, %v2443_v1  ;;  %v2525_v3 = vsub.f32 -1e+30, %v2443_v1 }
 0x38e   : > { %v3812_v36 = vpop.eup %3811  ;;  %3825 = vpow2.f32 %v2612_v28 }
 0x38f   : > { %v3814_v47 = vpop.eup %3813  ;;  %v2614_v19 = vmul.f32 1.442695, %v2524_v17  ;;  %v2616_v27 = vmul.f32 1.442695, %v2525_v3 }
 0x390   : > { %2895 = vmatprep.mubr.f32.mxu1 %v3814_v47  ;;  %v2446_v48 = vpop.xlane.xlu0 %2445  ;;  %v6060_v34 = vadd.f32 %v3814_v47, %v3812_v36 }
 0x391   : > { %3827 = vpow2.f32 %v2614_v19  ;;  %2896 = vmatmul.mubr.f32.gmra.mxu1 %v3812_v36  ;;  %v2526_v13 = vsub.f32 %v5898_v39, %v2446_v48  ;;  %v2527_v59 = vsub.f32 -1e+30, %v2446_v48 }
 0x392   : > { %v3816_v44 = vpop.eup %3815  ;;  %3829 = vpow2.f32 %v2616_v27 }
 0x393   : > { %v3818_v30 = vpop.eup %3817  ;;  %v2618_v8 = vmul.f32 1.442695, %v2526_v13  ;;  %v2620_v35 = vmul.f32 1.442695, %v2527_v59 }
 0x394   : > { %2900 = vmatprep.mubr.f32.mxu1 %v3818_v30  ;;  %v2449_v25 = vpop.xlane.xlu1 %2448  ;;  %v6063_v57 = vadd.f32 %v3818_v30, %v3816_v44 }
 0x395   : > { %3831 = vpow2.f32 %v2618_v8  ;;  %2901 = vmatmul.mubr.f32.gmra.mxu1 %v3816_v44  ;;  %v2528_v43 = vsub.f32 %v5906_v10, %v2449_v25  ;;  %v2529_v2 = vsub.f32 -1e+30, %v2449_v25 }
 0x396   : > { %v3820_v63 = vpop.eup %3819  ;;  %3833 = vpow2.f32 %v2620_v35 }
 0x397   : > { %v3822_v28 = vpop.eup %3821  ;;  %v2622_v1 = vmul.f32 1.442695, %v2528_v43  ;;  %v2624_v39 = vmul.f32 1.442695, %v2529_v2 }
 0x398   : > { %2905 = vmatprep.mubr.f32.mxu1 %v3822_v28  ;;  %v6066_v17 = vadd.f32 %v3822_v28, %v3820_v63 }
 0x399   : > { %3835 = vpow2.f32 %v2622_v1  ;;  %2906 = vmatmul.mubr.f32.gmra.mxu1 %v3820_v63 }
 0x39a   : > { %v3824_v3 = vpop.eup %3823  ;;  %3837 = vpow2.f32 %v2624_v39  ;;  %v2452_v36 = vpop.xlane.xlu0 %2451 }
 0x39b   : > { %v3826_v47 = vpop.eup %3825  ;;  %v2530_v19 = vsub.f32 %v5909_v31, %v2452_v36  ;;  %v2531_v27 = vsub.f32 %v5913_v50, %v2452_v36 }
 0x39c   : > { %2910 = vmatprep.mubr.f32.mxu1 %v3826_v47  ;;  %v6070_v10 = vadd.f32 %v3826_v47, %v3824_v3 }
 0x39d   : > { %v2626_v48 = vmul.f32 1.442695, %v2530_v19  ;;  %v2628_v13 = vmul.f32 1.442695, %v2531_v27  ;;  %2911 = vmatmul.mubr.f32.gmra.mxu1 %v3824_v3 }
 0x39e   : > { %v3828_v59 = vpop.eup %3827  ;;  %v2455_v44 = vpop.xlane.xlu1 %2454 }
 0x39f   : > { %v3830_v30 = vpop.eup %3829  ;;  %3839 = vpow2.f32 %v2626_v48  ;;  %v2532_v8 = vsub.f32 %v5915_v61, %v2455_v44  ;;  %v2533_v35 = vsub.f32 %v5921_v54, %v2455_v44 }
 0x3a0   : > { %3841 = vpow2.f32 %v2628_v13  ;;  %2915 = vmatprep.mubr.f32.mxu1 %v3830_v30  ;;  %v6074_v25 = vadd.f32 %v3830_v30, %v3828_v59 }
 0x3a1   : > { %v2630_v31 = vmul.f32 1.442695, %v2532_v8  ;;  %v2632_v50 = vmul.f32 1.442695, %v2533_v35  ;;  %2916 = vmatmul.mubr.f32.gmra.mxu1 %v3828_v59 }
 0x3a2   : > { %v3832_v43 = vpop.eup %3831  ;;  %v2458_v2 = vpop.xlane.xlu0 %2457 }
 0x3a3   : > { %v3834_v63 = vpop.eup %3833  ;;  %3843 = vpow2.f32 %v2630_v31  ;;  %v2534_v28 = vsub.f32 %v5923_v23, %v2458_v2  ;;  %v2535_v1 = vsub.f32 %v5929_v58, %v2458_v2 }
 0x3a4   : > { %3845 = vpow2.f32 %v2632_v50  ;;  %2920 = vmatprep.mubr.f32.mxu1 %v3834_v63  ;;  %v6078_v61 = vadd.f32 %v3834_v63, %v3832_v43 }
 0x3a5   : > { %v2634_v54 = vmul.f32 1.442695, %v2534_v28  ;;  %v2636_v39 = vmul.f32 1.442695, %v2535_v1  ;;  %2921 = vmatmul.mubr.f32.gmra.mxu1 %v3832_v43 }
 0x3a6   : > { %v3836_v3 = vpop.eup %3835  ;;  %v2461_v36 = vpop.xlane.xlu1 %2460 }
 0x3a7   : > { %v3838_v47 = vpop.eup %3837  ;;  %3847 = vpow2.f32 %v2634_v54  ;;  %v2536_v19 = vsub.f32 %v5931_v53, %v2461_v36  ;;  %v2537_v27 = vsub.f32 %v5937_v14, %v2461_v36 }
 0x3a8   : > { %3849 = vpow2.f32 %v2636_v39  ;;  %2925 = vmatprep.mubr.f32.mxu1 %v3838_v47  ;;  %v6082_v23 = vadd.f32 %v3838_v47, %v3836_v3 }
 0x3a9   : > { %v2638_v58 = vmul.f32 1.442695, %v2536_v19  ;;  %v2640_v48 = vmul.f32 1.442695, %v2537_v27  ;;  %2926 = vmatmul.mubr.f32.gmra.mxu1 %v3836_v3 }
 0x3aa   : > { %v2464_v13 = vpop.xlane.xlu0 %2463 }
 0x3ab   : > { %3851 = vpow2.f32 %v2638_v58  ;;  %v2538_v59 = vsub.f32 %v5939_v60, %v2464_v13  ;;  %v2539_v44 = vsub.f32 %v5945_v52, %v2464_v13 }
 0x3ac   : > { %v3840_v30 = vpop.eup %3839  ;;  %3853 = vpow2.f32 %v2640_v48 }
 0x3ad   : > { %v3842_v8 = vpop.eup %3841  ;;  %v2642_v35 = vmul.f32 1.442695, %v2538_v59  ;;  %v2644_v53 = vmul.f32 1.442695, %v2539_v44 }
 0x3ae   : > { %2930 = vmatprep.mubr.f32.mxu1 %v3842_v8  ;;  %v2467_v14 = vpop.xlane.xlu1 %2466  ;;  %v6086_v31 = vadd.f32 %v3842_v8, %v3840_v30 }
 0x3af   : > { %3855 = vpow2.f32 %v2642_v35  ;;  %2931 = vmatmul.mubr.f32.gmra.mxu1 %v3840_v30  ;;  %v2540_v50 = vsub.f32 %v5947_v51, %v2467_v14  ;;  %v2541_v43 = vsub.f32 %v5953_v56, %v2467_v14 }
 0x3b0   : > { %v3844_v2 = vpop.eup %3843  ;;  %3857 = vpow2.f32 %v2644_v53 }
 0x3b1   : > { %v3846_v60 = vpop.eup %3845  ;;  %v2646_v63 = vmul.f32 1.442695, %v2540_v50  ;;  %v2648_v52 = vmul.f32 1.442695, %v2541_v43 }
 0x3b2   : > { %2935 = vmatprep.mubr.f32.mxu1 %v3846_v60  ;;  %v2470_v28 = vpop.xlane.xlu0 %2469  ;;  %v6090_v1 = vadd.f32 %v3846_v60, %v3844_v2 }
 0x3b3   : > { %3859 = vpow2.f32 %v2646_v63  ;;  %2936 = vmatmul.mubr.f32.gmra.mxu1 %v3844_v2  ;;  %v2542_v54 = vsub.f32 %v5955_v55, %v2470_v28  ;;  %v2543_v39 = vsub.f32 %v5961_v4, %v2470_v28 }
 0x3b4   : > { %v3848_v3 = vpop.eup %3847  ;;  %3861 = vpow2.f32 %v2648_v52 }
 0x3b5   : > { %v3850_v51 = vpop.eup %3849  ;;  %v2650_v36 = vmul.f32 1.442695, %v2542_v54  ;;  %v2652_v56 = vmul.f32 1.442695, %v2543_v39 }
 0x3b6   : > { %2940 = vmatprep.mubr.f32.mxu1 %v3850_v51  ;;  %v2473_v47 = vpop.xlane.xlu1 %2472  ;;  %v6094_v19 = vadd.f32 %v3850_v51, %v3848_v3 }
 0x3b7   : > { %3863 = vpow2.f32 %v2650_v36  ;;  %2941 = vmatmul.mubr.f32.gmra.mxu1 %v3848_v3  ;;  %v2544_v27 = vsub.f32 %v5963_v0, %v2473_v47  ;;  %v2545_v58 = vsub.f32 %v5969_v12, %v2473_v47 }
 0x3b8   : > { %v3852_v48 = vpop.eup %3851  ;;  %3865 = vpow2.f32 %v2652_v56 }
 0x3b9   : > { %v3854_v55 = vpop.eup %3853  ;;  %v2654_v13 = vmul.f32 1.442695, %v2544_v27  ;;  %v2656_v4 = vmul.f32 1.442695, %v2545_v58 }
 0x3ba   : > { %2945 = vmatprep.mubr.f32.mxu1 %v3854_v55  ;;  %v2476_v59 = vpop.xlane.xlu0 %2475  ;;  %v6098_v44 = vadd.f32 %v3854_v55, %v3852_v48 }
 0x3bb   : > { %3867 = vpow2.f32 %v2654_v13  ;;  %2946 = vmatmul.mubr.f32.gmra.mxu1 %v3852_v48  ;;  %v2546_v30 = vsub.f32 %v5971_v21, %v2476_v59  ;;  %v2547_v8 = vsub.f32 %v5977_v49, %v2476_v59 }
 0x3bc   : > { %v3856_v35 = vpop.eup %3855  ;;  %3869 = vpow2.f32 %v2656_v4 }
 0x3bd   : > { %v3858_v0 = vpop.eup %3857  ;;  %v2658_v53 = vmul.f32 1.442695, %v2546_v30  ;;  %v2660_v12 = vmul.f32 1.442695, %v2547_v8 }
 0x3be   : > { %2950 = vmatprep.mubr.f32.mxu1 %v3858_v0  ;;  %v2479_v14 = vpop.xlane.xlu1 %2478  ;;  %v6102_v50 = vadd.f32 %v3858_v0, %v3856_v35 }
 0x3bf   : > { %3871 = vpow2.f32 %v2658_v53  ;;  %2951 = vmatmul.mubr.f32.gmra.mxu1 %v3856_v35  ;;  %v2548_v43 = vsub.f32 %v5979_v11, %v2479_v14  ;;  %v2549_v2 = vsub.f32 %v5985_v9, %v2479_v14 }
 0x3c0   : > { %v3860_v60 = vpop.eup %3859  ;;  %3873 = vpow2.f32 %v2660_v12 }
 0x3c1   : > { %v3862_v21 = vpop.eup %3861  ;;  %v2662_v63 = vmul.f32 1.442695, %v2548_v43  ;;  %v2664_v49 = vmul.f32 1.442695, %v2549_v2 }
 0x3c2   : > { %2955 = vmatprep.mubr.f32.mxu1 %v3862_v21  ;;  %v2482_v52 = vpop.xlane.xlu0 %2481  ;;  %v6106_v28 = vadd.f32 %v3862_v21, %v3860_v60 }
 0x3c3   : > { %3875 = vpow2.f32 %v2662_v63  ;;  %2956 = vmatmul.mubr.f32.gmra.mxu1 %v3860_v60  ;;  %v2550_v54 = vsub.f32 %v5987_v46, %v2482_v52  ;;  %v2551_v39 = vsub.f32 %v5993_v16, %v2482_v52 }
 0x3c4   : > { %v3864_v3 = vpop.eup %3863  ;;  %3877 = vpow2.f32 %v2664_v49 }
 0x3c5   : > { %v3866_v11 = vpop.eup %3865  ;;  %v2666_v51 = vmul.f32 1.442695, %v2550_v54  ;;  %v2668_v9 = vmul.f32 1.442695, %v2551_v39 }
 0x3c6   : > { %2960 = vmatprep.mubr.f32.mxu1 %v3866_v11  ;;  %v2404_v36 = vpop.xlane.xlu0 %2403  ;;  %v2485_v56 = vpop.xlane.xlu1 %2484  ;;  %v6110_v47 = vadd.f32 %v3866_v11, %v3864_v3 }
 0x3c7   : > { %3879 = vpow2.f32 %v2666_v51  ;;  %2961 = vmatmul.mubr.f32.gmra.mxu1 %v3864_v3  ;;  %v2498_v27 = vsub.f32 %v5832_v20, %v2404_v36  ;;  %v2499_v58 = vsub.f32 -1e+30, %v2404_v36  ;;  %v2552_v48 = vsub.f32 %v5995_v22, %v2485_v56 }
 0x3c8   : > { %v3868_v46 = vpop.eup %3867  ;;  %3881 = vpow2.f32 %v2668_v9  ;;  %v2553_v16 = vsub.f32 %v6001_v7, %v2485_v56 }
 0x3c9   : > { %v3870_v55 = vpop.eup %3869  ;;  %v2562_v13 = vmul.f32 1.442695, %v2498_v27  ;;  %v2564_v4 = vmul.f32 1.442695, %v2499_v58  ;;  %v2670_v59 = vmul.f32 1.442695, %v2552_v48 }
 0x3ca   : > { %v2672_v30 = vmul.f32 1.442695, %v2553_v16  ;;  %2965 = vmatprep.mubr.f32.mxu1 %v3870_v55  ;;  %v2407_v8 = vpop.xlane.xlu0 %2406  ;;  %v2488_v35 = vpop.xlane.xlu1 %2487  ;;  %v6115_v0 = vadd.f32 %v3870_v55, %v3868_v46 }
 0x3cb   : > { %3883 = vpow2.f32 %v2562_v13  ;;  %2966 = vmatmul.mubr.f32.gmra.mxu1 %v3868_v46  ;;  %v2500_v20 = vsub.f32 %v5836_v40, %v2407_v8  ;;  %v2501_v53 = vsub.f32 -1e+30, %v2407_v8  ;;  %v2554_v22 = vsub.f32 %v6003_v26, %v2488_v35 }
 0x3cc   : > { %v3872_v12 = vpop.eup %3871  ;;  %3885 = vpow2.f32 %v2564_v4  ;;  %v2555_v7 = vsub.f32 %v6010_v6, %v2488_v35 }
 0x3cd   : > { %v3874_v14 = vpop.eup %3873  ;;  %3887 = vpow2.f32 %v2670_v59  ;;  %v2566_v43 = vmul.f32 1.442695, %v2500_v20  ;;  %v2568_v2 = vmul.f32 1.442695, %v2501_v53  ;;  %v2674_v60 = vmul.f32 1.442695, %v2554_v22 }
 0x3ce   : > { %3889 = vpow2.f32 %v2672_v30  ;;  %v2676_v21 = vmul.f32 1.442695, %v2555_v7  ;;  %2970 = vmatprep.mubr.f32.mxu1 %v3874_v14  ;;  %v2410_v63 = vpop.xlane.xlu0 %2409  ;;  %v2491_v49 = vpop.xlane.xlu1 %2490  ;;  %v6120_v52 = vadd.f32 %v3874_v14, %v3872_v12 }
 0x3cf   : > { %3891 = vpow2.f32 %v2566_v43  ;;  %2971 = vmatmul.mubr.f32.gmra.mxu1 %v3872_v12  ;;  %v2502_v40 = vsub.f32 %v5840_v5, %v2410_v63  ;;  %v2503_v26 = vsub.f32 -1e+30, %v2410_v63  ;;  %v2556_v54 = vsub.f32 %v6012_v37, %v2491_v49 }
 0x3d0   : > { %v3876_v6 = vpop.eup %3875  ;;  %3893 = vpow2.f32 %v2568_v2  ;;  %v2557_v39 = vsub.f32 %v6019_v32, %v2491_v49 }
 0x3d1   : > { %v3878_v3 = vpop.eup %3877  ;;  %3895 = vpow2.f32 %v2674_v60  ;;  %v2570_v11 = vmul.f32 1.442695, %v2502_v40  ;;  %v2572_v51 = vmul.f32 1.442695, %v2503_v26  ;;  %v2678_v9 = vmul.f32 1.442695, %v2556_v54 }
 0x3d2   : > { %3897 = vpow2.f32 %v2676_v21  ;;  %v2680_v36 = vmul.f32 1.442695, %v2557_v39  ;;  %2975 = vmatprep.mubr.f32.mxu1 %v3878_v3  ;;  %v2413_v56 = vpop.xlane.xlu0 %2412  ;;  %v2494_v27 = vpop.xlane.xlu1 %2493  ;;  %v6125_v58 = vadd.f32 %v3878_v3, %v3876_v6 }
 0x3d3   : > { %3899 = vpow2.f32 %v2570_v11  ;;  %2976 = vmatmul.mubr.f32.gmra.mxu1 %v3876_v6  ;;  %v2504_v5 = vsub.f32 %v5844_v15, %v2413_v56  ;;  %v2505_v37 = vsub.f32 -1e+30, %v2413_v56  ;;  %v2558_v48 = vsub.f32 %v6021_v29, %v2494_v27 }
 0x3d4   : > { %v3880_v32 = vpop.eup %3879  ;;  %3901 = vpow2.f32 %v2572_v51  ;;  %v2559_v46 = vsub.f32 %v6028_v42, %v2494_v27 }
 0x3d5   : > { %v3882_v16 = vpop.eup %3881  ;;  %3903 = vpow2.f32 %v2678_v9  ;;  %v2574_v55 = vmul.f32 1.442695, %v2504_v5  ;;  %v2576_v13 = vmul.f32 1.442695, %v2505_v37  ;;  %v2682_v4 = vmul.f32 1.442695, %v2558_v48 }
 0x3d6   : > { %3905 = vpow2.f32 %v2680_v36  ;;  %v2684_v59 = vmul.f32 1.442695, %v2559_v46  ;;  %2980 = vmatprep.mubr.f32.mxu1 %v3882_v16  ;;  %v2497_v30 = vpop.xlane.xlu1 %2496  ;;  %v6130_v8 = vadd.f32 %v3882_v16, %v3880_v32 }
 0x3d7   : > { %3907 = vpow2.f32 %v2574_v55  ;;  %2981 = vmatmul.mubr.f32.gmra.mxu1 %v3880_v32  ;;  %v2560_v15 = vsub.f32 %v6030_v62, %v2497_v30  ;;  %v2561_v29 = vsub.f32 %v6036_v41, %v2497_v30 }
 0x3d8   : > { %v3884_v35 = vpop.eup %3883  ;;  %3909 = vpow2.f32 %v2576_v13 }
 0x3d9   : > { %v3886_v42 = vpop.eup %3885  ;;  %3911 = vpow2.f32 %v2682_v4  ;;  %v2686_v20 = vmul.f32 1.442695, %v2560_v15  ;;  %v2688_v53 = vmul.f32 1.442695, %v2561_v29 }
 0x3da   : > { %v3888_v22 = vpop.eup %3887  ;;  %3913 = vpow2.f32 %v2684_v59  ;;  %2850 = vmatprep.mubr.f32.mxu0 %v3886_v42  ;;  %v2690_v12 = vadd.f32 %v3886_v42, %v3884_v35 }
 0x3db   : > { %v3890_v7 = vpop.eup %3889  ;;  %2851 = vmatmul.mubr.f32.vlgmr.msra.gmra.mxu0 %v3884_v35  ;;  %3915 = vpow2.f32 %v2688_v53 }
 0x3dc   : > { %v3892_v14 = vpop.eup %3891  ;;  %2985 = vmatprep.mubr.f32.mxu1 %v3890_v7  ;;  %2691 = vadd.xlane.f32.xlu0 %v2690_v12  ;;  %v2771_v43 = vadd.f32 %v3890_v7, %v3888_v22  ;;  %3917 = vpow2.f32 %v2686_v20 }
 0x3dd   : > { %v3894_v62 = vpop.eup %3893  ;;  %2986 = vmatmul.mubr.f32.gmra.mxu1 %v3888_v22 }
 0x3de   : > { %v3896_v41 = vpop.eup %3895  ;;  %2855 = vmatprep.mubr.f32.mxu0 %v3894_v62  ;;  %v2693_v2 = vadd.f32 %v3894_v62, %v3892_v14 }
 0x3df   : > { %v3898_v60 = vpop.eup %3897  ;;  %2856 = vmatmul.mubr.f32.gmra.mxu0 %v3892_v14 }
 0x3e0   : > { %v3900_v21 = vpop.eup %3899  ;;  %2990 = vmatprep.mubr.f32.mxu1 %v3898_v60  ;;  %2694 = vadd.xlane.f32.xlu1 %v2693_v2  ;;  %v2774_v63 = vadd.f32 %v3898_v60, %v3896_v41 }
 0x3e1   : > { %v3902_v49 = vpop.eup %3901  ;;  %2991 = vmatmul.mubr.f32.gmra.mxu1 %v3896_v41 }
 0x3e2   : > { %v3904_v40 = vpop.eup %3903  ;;  %2860 = vmatprep.mubr.f32.mxu0 %v3902_v49  ;;  %v2696_v26 = vadd.f32 %v3902_v49, %v3900_v21 }
 0x3e3   : > { %v3906_v54 = vpop.eup %3905  ;;  %2861 = vmatmul.mubr.f32.gmra.mxu0 %v3900_v21 }
 0x3e4   : > { %v3908_v6 = vpop.eup %3907  ;;  %2995 = vmatprep.mubr.f32.mxu1 %v3906_v54  ;;  %2697 = vadd.xlane.f32.xlu0 %v2696_v26  ;;  %v2777_v39 = vadd.f32 %v3906_v54, %v3904_v40 }
 0x3e5   : > { %v3910_v3 = vpop.eup %3909  ;;  %2996 = vmatmul.mubr.f32.gmra.mxu1 %v3904_v40 }
 0x3e6   : > { %v3912_v11 = vpop.eup %3911  ;;  %2865 = vmatprep.mubr.f32.mxu0 %v3910_v3  ;;  %v2699_v51 = vadd.f32 %v3910_v3, %v3908_v6 }
 0x3e7   : > { %v3914_v9 = vpop.eup %3913  ;;  %2866 = vmatmul.mubr.f32.gmra.mxu0 %v3908_v6 }
 0x3e8   : > { %3000 = vmatprep.mubr.f32.mxu1 %v3914_v9  ;;  %2703 = vadd.xlane.f32.xlu0 %v6045_v18  ;;  %v3916_v36 = vpop.eup %3915  ;;  %v2780_v18 = vadd.f32 %v3914_v9, %v3912_v11 }
 0x3e9   : > { %3001 = vmatmul.mubr.f32.gmra.mxu1 %v3912_v11  ;;  %2700 = vadd.xlane.f32.xlu1 %v2699_v51  ;;  %v3918_v56 = vpop.eup %3917 }
 0x3ea   : > { %3005 = vmatprep.mubr.f32.mxu1 %v3916_v36 }
 0x3ec   : > { %2709 = vadd.xlane.f32.xlu0 %v6051_v33 }
 0x3ed   : > { %3006 = vmatmul.mubr.f32.gmra.mxu1 %v3918_v56  ;;  %2706 = vadd.xlane.f32.xlu1 %v6048_v45  ;;  %v2783_v45 = vadd.f32 %v3918_v56, %v3916_v36 }
 0x3f0   : > { %2715 = vadd.xlane.f32.xlu0 %v6057_v24 }
 0x3f1   : > { %2712 = vadd.xlane.f32.xlu1 %v6054_v38 }
 0x3f4   : > { %2721 = vadd.xlane.f32.xlu0 %v6063_v57 }
 0x3f5   : > { %2718 = vadd.xlane.f32.xlu1 %v6060_v34 }
 0x3f8   : > { %2727 = vadd.xlane.f32.xlu0 %v6070_v10 }
 0x3f9   : > { %2724 = vadd.xlane.f32.xlu1 %v6066_v17 }
 0x3fc   : > { %2733 = vadd.xlane.f32.xlu0 %v6078_v61 }
 0x3fd   : > { %2730 = vadd.xlane.f32.xlu1 %v6074_v25 }
 0x400   : > { %2739 = vadd.xlane.f32.xlu0 %v6086_v31 }
 0x401   : > { %2736 = vadd.xlane.f32.xlu1 %v6082_v23 }
 0x404   : > { %2745 = vadd.xlane.f32.xlu0 %v6094_v19 }
 0x405   : > { %2742 = vadd.xlane.f32.xlu1 %v6090_v1 }
 0x408   : > { %2751 = vadd.xlane.f32.xlu0 %v6102_v50 }
 0x409   : > { %2748 = vadd.xlane.f32.xlu1 %v6098_v44 }
 0x40c   : > { %2757 = vadd.xlane.f32.xlu0 %v6110_v47 }
 0x40d   : > { %2754 = vadd.xlane.f32.xlu1 %v6106_v28 }
 0x410   : > { %2763 = vadd.xlane.f32.xlu0 %v6120_v52 }
 0x411   : > { %2760 = vadd.xlane.f32.xlu1 %v6115_v0 }
 0x414   : > { %2769 = vadd.xlane.f32.xlu0 %v6130_v8 }
 0x415   : > { %2766 = vadd.xlane.f32.xlu1 %v6125_v58 }
 0x418   : > { %2775 = vadd.xlane.f32.xlu0 %v2774_v63 }
 0x419   : > { %2772 = vadd.xlane.f32.xlu1 %v2771_v43 }
 0x41c   : > { %2781 = vadd.xlane.f32.xlu0 %v2780_v18 }
 0x41d   : > { %2778 = vadd.xlane.f32.xlu1 %v2777_v39 }
 0x421   : > { %2784 = vadd.xlane.f32.xlu1 %v2783_v45 }
 0x43d   : > { %v2872_v33 = vpop.f32.mrf.mxu1 }
 0x43f   : > { %v2874_v38 = vpop.f32.mrf.mxu1 }
 0x441   : > { %v6157_v24 = vpop.f32.mrf.mxu1 }
 0x443   : > { %v2879_v34 = vpop.f32.mrf.mxu1 }
 0x445   : > { %v2882_v57 = vpop.f32.mrf.mxu1 }
 0x447   : > { %v2884_v17 = vpop.f32.mrf.mxu1 }
 0x449   : > { %v6159_v10 = vpop.f32.mrf.mxu1 }
 0x44b   : > { %v2889_v25 = vpop.f32.mrf.mxu1 }
 0x44d   : > { %v6161_v61 = vpop.f32.mrf.mxu1 }
 0x44f   : > { %v2894_v23 = vpop.f32.mrf.mxu1 }
 0x451   : > { %v6163_v31 = vpop.f32.mrf.mxu1 }
 0x453   : > { %v2899_v1 = vpop.f32.mrf.mxu1 }
 0x455   : > { %v6165_v19 = vpop.f32.mrf.mxu1 }
 0x457   : > { %v2904_v44 = vpop.f32.mrf.mxu1 }
 0x459   : > { %v6167_v50 = vpop.f32.mrf.mxu1 }
 0x45b   : > { %v2909_v28 = vpop.f32.mrf.mxu1 }
 0x45d   : > { %v6169_v47 = vpop.f32.mrf.mxu1 }
 0x45f   : > { %v2914_v0 = vpop.f32.mrf.mxu1 }
 0x461   : > { %v6171_v52 = vpop.f32.mrf.mxu1 }
 0x463   : > { %v2919_v27 = vpop.f32.mrf.mxu1 }
 0x465   : > { %v6173_v58 = vpop.f32.mrf.mxu1  ;;  %v6175_v37 = vpop.xlane.xlu0 %2691 }
 0x467   : > { %v2924_v5 = vpop.f32.mrf.mxu1 }
 0x469   : > { %v6177_v48 = vpop.f32.mrf.mxu1  ;;  %v6181_v16 = vpop.xlane.xlu1 %2694 }
 0x46b   : > { %v2929_v32 = vpop.f32.mrf.mxu1 }
 0x46d   : > { %v6179_v46 = vpop.xlane.xlu0 %2697 }
 0x46f   : > { %v6183_v55 = vpop.f32.mrf.mxu1 }
 0x471   : > { %v2934_v13 = vpop.f32.mrf.mxu1  ;;  %v2704_v4 = vpop.xlane.xlu0 %2703 }
 0x472   : > { %3919 = vrcp.f32 %v2704_v4  ;;  %v6185_v59 = vpop.xlane.xlu1 %2700 }
 0x473   : > { %v6187_v30 = vpop.f32.mrf.mxu1 }
 0x475   : > { %v2939_v8 = vpop.f32.mrf.mxu1  ;;  %v2710_v15 = vpop.xlane.xlu0 %2709 }
 0x476   : > { %3921 = vrcp.f32 %v2710_v15  ;;  %v2707_v29 = vpop.xlane.xlu1 %2706 }
 0x477   : > { %3923 = vrcp.f32 %v2707_v29  ;;  %v6189_v35 = vpop.f32.mrf.mxu1 }
 0x479   : > { %v2944_v42 = vpop.f32.mrf.mxu1  ;;  %v2716_v20 = vpop.xlane.xlu0 %2715 }
 0x47a   : > { %3925 = vrcp.f32 %v2716_v20  ;;  %v2713_v53 = vpop.xlane.xlu1 %2712 }
 0x47b   : > { %3927 = vrcp.f32 %v2713_v53  ;;  %v6191_v22 = vpop.f32.mrf.mxu1 }
 0x47d   : > { %v2949_v12 = vpop.f32.mrf.mxu1  ;;  %v2722_v7 = vpop.xlane.xlu0 %2721 }
 0x47e   : > { %3929 = vrcp.f32 %v2722_v7  ;;  %v2719_v14 = vpop.xlane.xlu1 %2718 }
 0x47f   : > { %v3920_v43 = vpop.eup %3919  ;;  %3931 = vrcp.f32 %v2719_v14  ;;  %v6199_v62 = vpop.f32.mrf.mxu1 }
 0x480   : > { %v3047_v41 = vmul.f32 %v3920_v43, %v2872_v33 }
 0x481   : > { %v2954_v2 = vpop.f32.mrf.mxu1  ;;  %v2728_v60 = vpop.xlane.xlu0 %2727 }
 0x482   : > { %3079 = vst.msk [vmem:[%s6197_s6 + $0x20] sm:$0xff] %vm1788_vm0, %v3047_v41  ;;  %3933 = vrcp.f32 %v2728_v60  ;;  %v2725_v21 = vpop.xlane.xlu1 %2724 }
 0x483   : > { %v3922_v63 = vpop.eup %3921  ;;  %3935 = vrcp.f32 %v2725_v21  ;;  %v6203_v49 = vpop.f32.mrf.mxu1 }
 0x484   : > { %v3924_v40 = vpop.eup %3923  ;;  %v3049_v26 = vmul.f32 %v3922_v63, %v2882_v57 }
 0x485   : > { %v3048_v54 = vmul.f32 %v3924_v40, %v6157_v24  ;;  %v2959_v6 = vpop.f32.mrf.mxu1  ;;  %v2734_v39 = vpop.xlane.xlu0 %2733 }
 0x486   : > { %3081 = vst.msk [vmem:[%s6197_s6 + $0x30] sm:$0xff] %vm1788_vm0, %v3049_v26  ;;  %3937 = vrcp.f32 %v2734_v39  ;;  %v2731_v3 = vpop.xlane.xlu1 %2730 }
 0x487   : > { %v3926_v11 = vpop.eup %3925  ;;  %3080 = vst.msk [vmem:[%s6197_s6 + $0x28] sm:$0xff] %vm1788_vm0, %v3048_v54  ;;  %3939 = vrcp.f32 %v2731_v3  ;;  %v6210_v51 = vpop.f32.mrf.mxu1 }
 0x488   : > { %v3928_v9 = vpop.eup %3927  ;;  %v3051_v36 = vmul.f32 %v3926_v11, %v6161_v61 }
 0x489   : > { %v3050_v56 = vmul.f32 %v3928_v9, %v6159_v10  ;;  %v2964_v18 = vpop.f32.mrf.mxu1  ;;  %v2740_v45 = vpop.xlane.xlu0 %2739 }
 0x48a   : > { %3083 = vst.msk [vmem:[%s6197_s6 + $0x40] sm:$0xff] %vm1788_vm0, %v3051_v36  ;;  %3941 = vrcp.f32 %v2740_v45  ;;  %v2737_v33 = vpop.xlane.xlu1 %2736 }
 0x48b   : > { %v3930_v38 = vpop.eup %3929  ;;  %3082 = vst.msk [vmem:[%s6197_s6 + $0x38] sm:$0xff] %vm1788_vm0, %v3050_v56  ;;  %3943 = vrcp.f32 %v2737_v33  ;;  %v6218_v24 = vpop.f32.mrf.mxu1 }
 0x48c   : > { %v3932_v34 = vpop.eup %3931  ;;  %v3053_v57 = vmul.f32 %v3930_v38, %v6165_v19  ;;  %3945 = vrcp.f32 %v6175_v37 }
 0x48d   : > { %v3052_v17 = vmul.f32 %v3932_v34, %v6163_v31  ;;  %v2969_v10 = vpop.f32.mrf.mxu1  ;;  %v2746_v25 = vpop.xlane.xlu0 %2745 }
 0x48e   : > { %3085 = vst.msk [vmem:[%s6197_s6 + $0x50] sm:$0xff] %vm1788_vm0, %v3053_v57  ;;  %3947 = vrcp.f32 %v2746_v25  ;;  %v2743_v61 = vpop.xlane.xlu1 %2742 }
 0x48f   : > { %v3934_v23 = vpop.eup %3933  ;;  %3084 = vst.msk [vmem:[%s6197_s6 + $0x48] sm:$0xff] %vm1788_vm0, %v3052_v17  ;;  %3949 = vrcp.f32 %v2743_v61  ;;  %v6227_v1 = vpop.f32.mrf.mxu1 }
 0x490   : > { %v3936_v44 = vpop.eup %3935  ;;  %v3055_v19 = vmul.f32 %v3934_v23, %v6169_v47  ;;  %3951 = vrcp.f32 %v6181_v16 }
 0x491   : > { %v3054_v31 = vmul.f32 %v3936_v44, %v6167_v50  ;;  %v2974_v28 = vpop.f32.mrf.mxu1  ;;  %v2752_v0 = vpop.xlane.xlu0 %2751 }
 0x492   : > { %3087 = vst.msk [vmem:[%s6197_s6 + $0x60] sm:$0xff] %vm1788_vm0, %v3055_v19  ;;  %3953 = vrcp.f32 %v2752_v0  ;;  %v2749_v27 = vpop.xlane.xlu1 %2748 }
 0x493   : > { %v3938_v5 = vpop.eup %3937  ;;  %3086 = vst.msk [vmem:[%s6197_s6 + $0x58] sm:$0xff] %vm1788_vm0, %v3054_v31  ;;  %3955 = vrcp.f32 %v2749_v27  ;;  %v6236_v37 = vpop.f32.mrf.mxu1 }
 0x494   : > { %v3940_v32 = vpop.eup %3939  ;;  %v3057_v47 = vmul.f32 %v3938_v5, %v6173_v58  ;;  %3957 = vrcp.f32 %v6179_v46 }
 0x495   : > { %v3056_v50 = vmul.f32 %v3940_v32, %v6171_v52  ;;  %v2979_v16 = vpop.f32.mrf.mxu1  ;;  %v2758_v13 = vpop.xlane.xlu0 %2757 }
 0x496   : > { %3089 = vst.msk [vmem:[%s6197_s6 + $0x70] sm:$0xff] %vm1788_vm0, %v3057_v47  ;;  %3959 = vrcp.f32 %v2758_v13  ;;  %v2755_v4 = vpop.xlane.xlu1 %2754 }
 0x497   : > { %v3942_v8 = vpop.eup %3941  ;;  %3088 = vst.msk [vmem:[%s6197_s6 + $0x68] sm:$0xff] %vm1788_vm0, %v3056_v50  ;;  %3961 = vrcp.f32 %v2755_v4  ;;  %v6245_v15 = vpop.f32.mrf.mxu1 }
 0x498   : > { %v3944_v29 = vpop.eup %3943  ;;  %v3059_v58 = vmul.f32 %v3942_v8, %v6183_v55  ;;  %3963 = vrcp.f32 %v6185_v59 }
 0x499   : > { %v3058_v52 = vmul.f32 %v3944_v29, %v6177_v48  ;;  %v2984_v46 = vpop.f32.mrf.mxu1  ;;  %v2764_v42 = vpop.xlane.xlu0 %2763 }
 0x49a   : > { %v3946_v20 = vpop.eup %3945  ;;  %3091 = vst.msk [vmem:[%s6197_s6 + $0x80] sm:$0xff] %vm1788_vm0, %v3059_v58  ;;  %3965 = vrcp.f32 %v2764_v42  ;;  %v2761_v53 = vpop.xlane.xlu1 %2760 }
 0x49b   : > { %v3948_v12 = vpop.eup %3947  ;;  %3090 = vst.msk [vmem:[%s6197_s6 + $0x78] sm:$0xff] %vm1788_vm0, %v3058_v52  ;;  %3967 = vrcp.f32 %v2761_v53  ;;  %v2852_v7 = vpop.f32.mrf.mxu0 }
 0x49c   : > { %v3950_v55 = vpop.eup %3949  ;;  %v3061_v59 = vmul.f32 %v3948_v12, %v6189_v35  ;;  %v3043_v14 = vmul.f32 %v3946_v20, %v2852_v7 }
 0x49d   : > { %v3060_v48 = vmul.f32 %v3950_v55, %v6187_v30  ;;  %v6256_v43 = vpop.f32.mrf.mxu1  ;;  %v2770_v41 = vpop.xlane.xlu0 %2769 }
 0x49e   : > { %v3952_v2 = vpop.eup %3951  ;;  %3093 = vst.msk [vmem:[%s6197_s6 + $0x90] sm:$0xff] %vm1788_vm0, %v3061_v59  ;;  %3075 = vst.msk [vmem:[%s6197_s6] sm:$0xff] %vm1788_vm0, %v3043_v14  ;;  %3969 = vrcp.f32 %v2770_v41  ;;  %v2854_v60 = vpop.f32.mrf.mxu0 }
 0x49f   : > { %v2767_v21 = vpop.xlane.xlu1 %2766  ;;  %v3954_v63 = vpop.eup %3953  ;;  %3092 = vst.msk [vmem:[%s6197_s6 + $0x88] sm:$0xff] %vm1788_vm0, %v3060_v48 }
 0x4a0   : > { %v2989_v35 = vpop.f32.mrf.mxu1  ;;  %3971 = vrcp.f32 %v2767_v21  ;;  %v3956_v30 = vpop.eup %3955  ;;  %v3063_v40 = vmul.f32 %v3954_v63, %v6199_v62 }
 0x4a1   : > { %v2857_v26 = vpop.f32.mrf.mxu0  ;;  %v3062_v54 = vmul.f32 %v3956_v30, %v6191_v22  ;;  %v2776_v3 = vpop.xlane.xlu0 %2775 }
 0x4a2   : > { %v3044_v6 = vmul.f32 %v3952_v2, %v2857_v26  ;;  %v2992_v39 = vpop.f32.mrf.mxu1  ;;  %v3958_v11 = vpop.eup %3957  ;;  %3095 = vst.msk [vmem:[%s6197_s6 + $0xa0] sm:$0xff] %vm1788_vm0, %v3063_v40  ;;  %3973 = vrcp.f32 %v2776_v3 }
 0x4a3   : > { %v2859_v9 = vpop.f32.mrf.mxu0  ;;  %v2773_v36 = vpop.xlane.xlu1 %2772  ;;  %3094 = vst.msk [vmem:[%s6197_s6 + $0x98] sm:$0xff] %vm1788_vm0, %v3062_v54 }
 0x4a4   : > { %v3960_v56 = vpop.eup %3959  ;;  %3076 = vst.msk [vmem:[%s6197_s6 + $0x8] sm:$0xff] %vm1788_vm0, %v3044_v6  ;;  %v2994_v62 = vpop.f32.mrf.mxu1  ;;  %3975 = vrcp.f32 %v2773_v36 }
 0x4a5   : > { %v3962_v22 = vpop.eup %3961  ;;  %v3065_v18 = vmul.f32 %v3960_v56, %v6210_v51  ;;  %v2862_v45 = vpop.f32.mrf.mxu0 }
 0x4a6   : > { %v3064_v33 = vmul.f32 %v3962_v22, %v6203_v49  ;;  %v3045_v38 = vmul.f32 %v3958_v11, %v2862_v45  ;;  %v2997_v34 = vpop.f32.mrf.mxu1  ;;  %v2782_v57 = vpop.xlane.xlu0 %2781 }
 0x4a7   : > { %v3964_v17 = vpop.eup %3963  ;;  %3097 = vst.msk [vmem:[%s6197_s6 + $0xb0] sm:$0xff] %vm1788_vm0, %v3065_v18  ;;  %3977 = vrcp.f32 %v2782_v57  ;;  %v2864_v10 = vpop.f32.mrf.mxu0 }
 0x4a8   : > { %v2779_v25 = vpop.xlane.xlu1 %2778  ;;  %v3966_v61 = vpop.eup %3965  ;;  %3096 = vst.msk [vmem:[%s6197_s6 + $0xa8] sm:$0xff] %vm1788_vm0, %v3064_v33  ;;  %3077 = vst.msk [vmem:[%s6197_s6 + $0x10] sm:$0xff] %vm1788_vm0, %v3045_v38 }
 0x4a9   : > { %v2999_v51 = vpop.f32.mrf.mxu1  ;;  %3979 = vrcp.f32 %v2779_v25  ;;  %v3968_v49 = vpop.eup %3967  ;;  %v3067_v23 = vmul.f32 %v3966_v61, %v6227_v1 }
 0x4aa   : > { %v2867_v44 = vpop.f32.mrf.mxu0  ;;  %v3066_v19 = vmul.f32 %v3968_v49, %v6218_v24 }
 0x4ab   : > { %v3046_v31 = vmul.f32 %v3964_v17, %v2867_v44  ;;  %v3002_v28 = vpop.f32.mrf.mxu1  ;;  %3099 = vst.msk [vmem:[%s6197_s6 + $0xc0] sm:$0xff] %vm1788_vm0, %v3067_v23  ;;  %v3970_v5 = vpop.eup %3969 }
 0x4ac   : > { %v2869_v0 = vpop.f32.mrf.mxu0  ;;  %v2785_v27 = vpop.xlane.xlu1 %2784  ;;  %3098 = vst.msk [vmem:[%s6197_s6 + $0xb8] sm:$0xff] %vm1788_vm0, %v3066_v19  ;;  %v3069_v47 = vmul.f32 %v3970_v5, %v6245_v15 }
 0x4ad   : > { %3078 = vst.msk [vmem:[%s6197_s6 + $0x18] sm:$0xff] %vm1788_vm0, %v3046_v31  ;;  %v3004_v32 = vpop.f32.mrf.mxu1  ;;  %3981 = vrcp.f32 %v2785_v27  ;;  %v3972_v1 = vpop.eup %3971 }
 0x4ae   : > { %v3068_v24 = vmul.f32 %v3972_v1, %v6236_v37  ;;  %3101 = vst.msk [vmem:[%s6197_s6 + $0xd0] sm:$0xff] %vm1788_vm0, %v3069_v47 }
 0x4af   : > { %v3007_v50 = vpop.f32.mrf.mxu1  ;;  %v3974_v16 = vpop.eup %3973 }
 0x4b0   : > { %3100 = vst.msk [vmem:[%s6197_s6 + $0xc8] sm:$0xff] %vm1788_vm0, %v3068_v24  ;;  %v3071_v8 = vmul.f32 %v3974_v16, %v2992_v39 }
 0x4b1   : > { %v3009_v13 = vpop.f32.mrf.mxu1  ;;  %v3976_v4 = vpop.eup %3975 }
 0x4b2   : > { %v3070_v29 = vmul.f32 %v3976_v4, %v6256_v43  ;;  %3103 = vst.msk [vmem:[%s6197_s6 + $0xe0] sm:$0xff] %vm1788_vm0, %v3071_v8 }
 0x4b4   : > { %v3978_v58 = vpop.eup %3977  ;;  %3102 = vst.msk [vmem:[%s6197_s6 + $0xd8] sm:$0xff] %vm1788_vm0, %v3070_v29 }
 0x4b5   : > { %v3073_v37 = vmul.f32 %v3978_v58, %v3002_v28 }
 0x4b6   : > { %v3980_v15 = vpop.eup %3979 }
 0x4b7   : > { %v3072_v52 = vmul.f32 %v3980_v15, %v2997_v34  ;;  %3105 = vst.msk [vmem:[%s6197_s6 + $0xf0] sm:$0xff] %vm1788_vm0, %v3073_v37 }
 0x4b9   : > { %3104 = vst.msk [vmem:[%s6197_s6 + $0xe8] sm:$0xff] %vm1788_vm0, %v3072_v52 }
 0x4ba   : > { %v3982_v46 = vpop.eup %3981 }
 0x4bb   : > { %v3074_v42 = vmul.f32 %v3982_v46, %v3007_v50 }
 0x4bd   : > { %3106 = vst.msk [vmem:[%s6197_s6 + $0xf8] sm:$0xff] %vm1788_vm0, %v3074_v42 }
 0x4be PF: > { %s14_s15 = sadd.s32 1, %s4034_s15  }
 0x4bf   : > { %p11_p4 = scmp.ge.s32.totalorder %s14_s15, 4  }
 0x4c1   :  { %13 = sbr.rel (!%p11_p4) target bundleno = 1 (0x1), region = 66 }

</bundles_post_ra>
